<compile_context>
chip_gen: v6e
topology: v6e:2x2x1
jax: 0.10.0
libtpu: 0.0.40
codegen_flags: <defaults>
</compile_context>

<pallas_src>
import jax
import jax.numpy as jnp
import numpy as np
from jax import lax
from jax.experimental import pallas as pl
from jax.experimental.pallas import tpu as pltpu


# ---------------------------------------------------------------------------
# Fused LeNet kernel: conv1+pool1 -> conv2+pool2 -> fc1 -> fc2 -> fc3
# ---------------------------------------------------------------------------
def _lenet_kernel(x_ref, wb1_ref, bc1_ref, wb2_ref, bc2_ref,
                  w1q_ref, b1_ref, w2_ref, b2_ref, w3_ref, b3_ref,
                  o_ref, y1s_ref):
    blk = x_ref.shape[0]
    f32 = jnp.float32

    # ---- conv1 (5x5, 3->16) as 2x5 banded matmuls over (w*3+c) lanes --------
    # x_ref: (blk, 32, 96) bf16, lanes = width*3 + channel (NHWC merged).
    # wb1_ref[dw, kh]: (96, 224), lanes = pooled-col*16 + cout; dw is the
    # column offset of the 2x2 pool window, kw is folded into the band.
    x2 = x_ref[...].reshape(blk * 32, 96)              # trivial: 32 % 8 == 0
    acc1 = []
    for dw in range(2):
        a = jnp.zeros((blk, 28, 224), f32)
        for kh in range(5):
            full = jnp.dot(x2, wb1_ref[dw, kh],
                           preferred_element_type=f32).reshape(blk, 32, 224)
            a = a + full[:, kh:kh + 28, :]             # kh tap = row shift
        acc1.append(a)

    # 2x2 max-pool: columns were handled by dw, rows by a neighbour max.
    m1 = jnp.maximum(acc1[0], acc1[1])
    mp1 = jnp.maximum(m1[:, 0:27, :], m1[:, 1:28, :])  # row i vs i+1
    bc1 = bc1_ref[...]                                 # (1, 224) f32
    # y1 scratch: (blk, 16, 224) bf16, rows 0..13 real, 14..15 zero padding.
    y1s_ref[...] = jnp.zeros(y1s_ref.shape, y1s_ref.dtype)
    for pi in range(14):
        y1s_ref[:, pi, :] = jnp.maximum(mp1[:, 2 * pi, :] + bc1,
                                        0.0).astype(y1s_ref.dtype)

    # ---- conv2 (5x5, 16->32), same banded structure over (pj*16+c) lanes ----
    y2in = y1s_ref[...].reshape(blk * 16, 224)         # trivial: 16 % 16 == 0
    acc2 = []
    for dw in range(2):
        a = jnp.zeros((blk, 10, 160), f32)
        for kh in range(5):
            full = jnp.dot(y2in, wb2_ref[dw, kh],
                           preferred_element_type=f32).reshape(blk, 16, 160)
            a = a + full[:, kh:kh + 10, :]
        acc2.append(a)
    m2 = jnp.maximum(acc2[0], acc2[1])
    mp2 = jnp.maximum(m2[:, 0:9, :], m2[:, 1:10, :])
    bc2 = bc2_ref[...]                                 # (1, 160) f32

    # ---- fc1 folded over the 5 pooled conv2 rows (flatten perm is in w1q) ---
    h1 = jnp.zeros((blk, 128), f32)
    for qi in range(5):
        row = jnp.maximum(mp2[:, 2 * qi, :] + bc2, 0.0).astype(jnp.bfloat16)
        h1 = h1 + jnp.dot(row, w1q_ref[qi], preferred_element_type=f32)
    h1 = jnp.maximum(h1 + b1_ref[...], 0.0).astype(jnp.bfloat16)

    # ---- fc2 -> relu -> fc3 -------------------------------------------------
    h2 = jnp.maximum(jnp.dot(h1, w2_ref[...], preferred_element_type=f32)
                     + b2_ref[...], 0.0).astype(jnp.bfloat16)
    out = jnp.dot(h2, w3_ref[...], preferred_element_type=f32) + b3_ref[...]
    o_ref[:, 0, :] = out.astype(o_ref.dtype)


def _pick_batch_block(n):
    # >= 2 grid steps whenever n >= 2 (both v7x TensorCores busy); blocks of 8
    # once there is enough work so the ~0.35us/step grid overhead is amortized.
    if n >= 16:
        return 8
    return max(1, (n + 1) // 2)


# ---------------------------------------------------------------------------
# Full forward pass (= Net.forward).  x is NCHW float32 like PyTorch.
# ---------------------------------------------------------------------------
def lenet_forward(x_nchw, pp):
    N = x_nchw.shape[0]
    bblk = _pick_batch_block(N)
    npad = ((N + bblk - 1) // bblk) * bblk

    # Tiny XLA glue: NCHW -> (N, 32, 96) with lanes = width*3 + channel, bf16.
    xm = jnp.transpose(x_nchw, (0, 2, 3, 1)).reshape(N, 32, 96)
    if npad > N:
        xm = jnp.pad(xm, ((0, npad - N), (0, 0), (0, 0)))
    xm = xm.astype(jnp.bfloat16)

    out3 = pl.pallas_call(
        _lenet_kernel,
        out_shape=jax.ShapeDtypeStruct((npad, 1, 128), jnp.float32),
        grid=(npad // bblk,),
        in_specs=[
            pl.BlockSpec((bblk, 32, 96), lambda n: (n, 0, 0)),       # x
            pl.BlockSpec((2, 5, 96, 224), lambda n: (0, 0, 0, 0)),   # conv1 band
            pl.BlockSpec((1, 224), lambda n: (0, 0)),                # conv1 bias
            pl.BlockSpec((2, 5, 224, 160), lambda n: (0, 0, 0, 0)),  # conv2 band
            pl.BlockSpec((1, 160), lambda n: (0, 0)),                # conv2 bias
            pl.BlockSpec((5, 160, 128), lambda n: (0, 0, 0)),        # fc1 (per qi)
            pl.BlockSpec((1, 128), lambda n: (0, 0)),                # fc1 bias
            pl.BlockSpec((128, 128), lambda n: (0, 0)),              # fc2
            pl.BlockSpec((1, 128), lambda n: (0, 0)),                # fc2 bias
            pl.BlockSpec((128, 128), lambda n: (0, 0)),              # fc3
            pl.BlockSpec((1, 128), lambda n: (0, 0)),                # fc3 bias
        ],
        out_specs=pl.BlockSpec((bblk, 1, 128), lambda n: (n, 0, 0)),
        scratch_shapes=[pltpu.VMEM((bblk, 16, 224), jnp.bfloat16)],  # y1 tile
        compiler_params=pltpu.CompilerParams(
            dimension_semantics=("parallel",)),
    )(xm, pp["wb1"], pp["bc1"], pp["wb2"], pp["bc2"],
      pp["w1q"], pp["b1"], pp["w2"], pp["b2"], pp["w3"], pp["b3"])

    return out3[:N, 0, :10]


# ---------------------------------------------------------------------------
# One-time parameter prep (off the hot path): build the banded conv matrices,
# fold the NCHW flatten permutation into fc1, pad fc lanes to 128, cast bf16.
# ---------------------------------------------------------------------------
def prepare_params(params):
    (c1w, c1b, c2w, c2b, f1w, f1b, f2w, f2b, f3w, f3b) = [
        np.asarray(p, np.float32) for p in params]

    # conv1 band: wb1[dw, kh, w*3+c, pj*16+co] = c1w[co, c, kh, kw],
    # with w = 2*pj + dw + kw (column pool offset dw, kw folded into the band).
    wb1 = np.zeros((2, 5, 96, 224), np.float32)
    for dw in range(2):
        for kh in range(5):
            for pj in range(14):
                for kw in range(5):
                    w = 2 * pj + dw + kw
                    for c in range(3):
                        wb1[dw, kh, w * 3 + c,
                            pj * 16:(pj + 1) * 16] = c1w[:, c, kh, kw]

    # conv2 band: wb2[dw, kh, pj*16+c, qj*32+co] = c2w[co, c, kh, kw],
    # with pj = 2*qj + dw + kw over the (14*16)-lane y1 layout.
    wb2 = np.zeros((2, 5, 224, 160), np.float32)
    for dw in range(2):
        for kh in range(5):
            for qj in range(5):
                for kw in range(5):
                    pj = 2 * qj + dw + kw
                    for c in range(16):
                        wb2[dw, kh, pj * 16 + c,
                            qj * 32:(qj + 1) * 32] = c2w[:, c, kh, kw]

    # fc1 per pooled-row qi; absorbs PyTorch's NCHW flatten (c*25 + qi*5 + qj).
    w1q = np.zeros((5, 160, 128), np.float32)
    for qi in range(5):
        for qj in range(5):
            for c in range(32):
                w1q[qi, qj * 32 + c, :120] = f1w[:, c * 25 + qi * 5 + qj]

    def pad2(mat, rows, cols):
        out = np.zeros((rows, cols), np.float32)
        out[:mat.shape[0], :mat.shape[1]] = mat
        return out

    return dict(
        wb1=jnp.asarray(wb1, jnp.bfloat16),
        bc1=jnp.asarray(np.tile(c1b, 14).reshape(1, 224), jnp.float32),
        wb2=jnp.asarray(wb2, jnp.bfloat16),
        bc2=jnp.asarray(np.tile(c2b, 5).reshape(1, 160), jnp.float32),
        w1q=jnp.asarray(w1q, jnp.bfloat16),
        b1=jnp.asarray(pad2(f1b.reshape(1, -1), 1, 128), jnp.float32),
        w2=jnp.asarray(pad2(f2w.T, 128, 128), jnp.bfloat16),
        b2=jnp.asarray(pad2(f2b.reshape(1, -1), 1, 128), jnp.float32),
        w3=jnp.asarray(pad2(f3w.T, 128, 128), jnp.bfloat16),
        b3=jnp.asarray(pad2(f3b.reshape(1, -1), 1, 128), jnp.float32),
    )


# ---------------------------------------------------------------------------
# Deterministic parameter init (PyTorch default-ish: U(-1/sqrt(fan_in), ...))
# ---------------------------------------------------------------------------
def init_params(key):
    def u(k, shape, fan_in):
        bound = 1.0 / np.sqrt(fan_in)
        return jax.random.uniform(k, shape, jnp.float32, -bound, bound)

    ks = jax.random.split(key, 10)
    return (
        u(ks[0], (16, 3, 5, 5), 3 * 25), u(ks[1], (16,), 3 * 25),      # conv1
        u(ks[2], (32, 16, 5, 5), 16 * 25), u(ks[3], (32,), 16 * 25),   # conv2
        u(ks[4], (120, 800), 800), u(ks[5], (120,), 800),              # fc1
        u(ks[6], (84, 120), 120), u(ks[7], (84,), 120),                # fc2
        u(ks[8], (10, 84), 84), u(ks[9], (10,), 84),                   # fc3
    )


# ---------------------------------------------------------------------------
# Pure-JAX f32 reference (lax.conv / reduce_window) for the sanity check
# ---------------------------------------------------------------------------
def reference_forward(x, params):
    (c1w, c1b, c2w, c2b, f1w, f1b, f2w, f2b, f3w, f3b) = params
    hp = lax.Precision.HIGHEST

    def conv(xin, w, b):
        dn = lax.conv_dimension_numbers(xin.shape, w.shape, ('NCHW', 'OIHW', 'NCHW'))
        y = lax.conv_general_dilated(xin, w, (1, 1), 'VALID',
                                     dimension_numbers=dn, precision=hp)
        return jnp.maximum(y + b[None, :, None, None], 0.0)

    def pool(y):
        return lax.reduce_window(y, -jnp.inf, lax.max,
                                 (1, 1, 2, 2), (1, 1, 2, 2), 'VALID')

    y = pool(conv(x, c1w, c1b))
    y = pool(conv(y, c2w, c2b))
    y = y.reshape(y.shape[0], -1)
    y = jnp.maximum(jnp.dot(y, f1w.T, precision=hp) + f1b, 0.0)
    y = jnp.maximum(jnp.dot(y, f2w.T, precision=hp) + f2b, 0.0)
    return jnp.dot(y, f3w.T, precision=hp) + f3b


if __name__ == "__main__":
    key = jax.random.PRNGKey(0)
    k_x, k_p = jax.random.split(key)
    # Architecture requires 32x32 spatial, 3 channels; small batch of 2.
    x = jax.random.normal(k_x, (2, 3, 32, 32), jnp.float32)   # NCHW like PyTorch
    params = init_params(k_p)
    prepped = prepare_params(params)          # one-time weight prep, off hot path

    out = jax.jit(lenet_forward)(x, prepped)
    out = jax.block_until_ready(out)
    assert out.shape == (2, 10) and out.dtype == jnp.float32

    ref = jax.block_until_ready(reference_forward(x, params))
    # bf16 matmul operands with f32 accumulation -> compare at bf16 tolerance.
    np.testing.assert_allclose(np.asarray(out), np.asarray(ref),
                               rtol=2e-2, atol=2e-2)
    print("KERNEL_OK")
</pallas_src>

<mosaic_0001>
module attributes {stable_mosaic.version = 11 : i64} {
  func.func @_lenet_kernel(%arg0: i32, %arg1: memref<1x32x96xbf16, #tpu.memory_space<vmem>>, %arg2: memref<2x5x96x224xbf16, #tpu.memory_space<vmem>>, %arg3: memref<1x224xf32, #tpu.memory_space<vmem>>, %arg4: memref<2x5x224x160xbf16, #tpu.memory_space<vmem>>, %arg5: memref<1x160xf32, #tpu.memory_space<vmem>>, %arg6: memref<5x160x128xbf16, #tpu.memory_space<vmem>>, %arg7: memref<1x128xf32, #tpu.memory_space<vmem>>, %arg8: memref<128x128xbf16, #tpu.memory_space<vmem>>, %arg9: memref<1x128xf32, #tpu.memory_space<vmem>>, %arg10: memref<128x128xbf16, #tpu.memory_space<vmem>>, %arg11: memref<1x128xf32, #tpu.memory_space<vmem>>, %arg12: memref<1x1x128xf32, #tpu.memory_space<vmem>>, %arg13: memref<1x16x224xbf16, #tpu.memory_space<vmem>>) attributes {dimension_semantics = [#tpu.dimension_semantics<parallel>], iteration_bounds = array<i64: 2>, scalar_prefetch = 0 : i64, scratch_operands = 1 : i64, tpu.core_type = #tpu.core_type<tc>, window_params = [{transform_indices = @transform_0, window_bounds = array<i64: 1, 32, 96>}, {pipeline_mode = #tpu.pipeline_mode<synchronous>, transform_indices = @transform_1, window_bounds = array<i64: 2, 5, 96, 224>}, {pipeline_mode = #tpu.pipeline_mode<synchronous>, transform_indices = @transform_2, window_bounds = array<i64: 1, 224>}, {pipeline_mode = #tpu.pipeline_mode<synchronous>, transform_indices = @transform_3, window_bounds = array<i64: 2, 5, 224, 160>}, {pipeline_mode = #tpu.pipeline_mode<synchronous>, transform_indices = @transform_4, window_bounds = array<i64: 1, 160>}, {pipeline_mode = #tpu.pipeline_mode<synchronous>, transform_indices = @transform_5, window_bounds = array<i64: 5, 160, 128>}, {pipeline_mode = #tpu.pipeline_mode<synchronous>, transform_indices = @transform_6, window_bounds = array<i64: 1, 128>}, {pipeline_mode = #tpu.pipeline_mode<synchronous>, transform_indices = @transform_7, window_bounds = array<i64: 128, 128>}, {pipeline_mode = #tpu.pipeline_mode<synchronous>, transform_indices = @transform_8, window_bounds = array<i64: 1, 128>}, {pipeline_mode = #tpu.pipeline_mode<synchronous>, transform_indices = @transform_9, window_bounds = array<i64: 128, 128>}, {pipeline_mode = #tpu.pipeline_mode<synchronous>, transform_indices = @transform_10, window_bounds = array<i64: 1, 128>}, {transform_indices = @transform_11, window_bounds = array<i64: 1, 1, 128>}]} {
    %c0 = arith.constant 0 : index
    %c0_0 = arith.constant 0 : index
    %c0_1 = arith.constant 0 : index
    %0 = vector.load %arg1[%c0, %c0_0, %c0_1] : memref<1x32x96xbf16, #tpu.memory_space<vmem>>, vector<1x32x96xbf16>
    %1 = vector.shape_cast %0 : vector<1x32x96xbf16> to vector<32x96xbf16>
    %cst = arith.constant 0.000000e+00 : f32
    %2 = vector.broadcast %cst : f32 to vector<1x28x224xf32>
    %c0_2 = arith.constant 0 : index
    %c0_3 = arith.constant 0 : index
    %c0_4 = arith.constant 0 : index
    %c0_5 = arith.constant 0 : index
    %3 = vector.load %arg2[%c0_2, %c0_3, %c0_4, %c0_5] : memref<2x5x96x224xbf16, #tpu.memory_space<vmem>>, vector<1x1x96x224xbf16>
    %4 = vector.shape_cast %3 : vector<1x1x96x224xbf16> to vector<96x224xbf16>
    %cst_6 = arith.constant dense<0.000000e+00> : vector<32x224xf32>
    %5 = tpu.matmul %1, %4, %cst_6 {dimension_numbers = #tpu.dot_dimension_numbers<[1], [0], [0], [1], [0, 0, 1, 1], [], []>} : vector<32x96xbf16>, vector<96x224xbf16>, vector<32x224xf32> -> vector<32x224xf32>
    %6 = vector.shape_cast %5 : vector<32x224xf32> to vector<1x32x224xf32>
    %7 = vector.extract_strided_slice %6 {offsets = [0, 0, 0], sizes = [1, 28, 224], strides = [1, 1, 1]} : vector<1x32x224xf32> to vector<1x28x224xf32>
    %8 = arith.addf %2, %7 : vector<1x28x224xf32>
    %c0_7 = arith.constant 0 : index
    %c1 = arith.constant 1 : index
    %c0_8 = arith.constant 0 : index
    %c0_9 = arith.constant 0 : index
    %9 = vector.load %arg2[%c0_7, %c1, %c0_8, %c0_9] : memref<2x5x96x224xbf16, #tpu.memory_space<vmem>>, vector<1x1x96x224xbf16>
    %10 = vector.shape_cast %9 : vector<1x1x96x224xbf16> to vector<96x224xbf16>
    %cst_10 = arith.constant dense<0.000000e+00> : vector<32x224xf32>
    %11 = tpu.matmul %1, %10, %cst_10 {dimension_numbers = #tpu.dot_dimension_numbers<[1], [0], [0], [1], [0, 0, 1, 1], [], []>} : vector<32x96xbf16>, vector<96x224xbf16>, vector<32x224xf32> -> vector<32x224xf32>
    %12 = vector.shape_cast %11 : vector<32x224xf32> to vector<1x32x224xf32>
    %13 = vector.extract_strided_slice %12 {offsets = [0, 1, 0], sizes = [1, 28, 224], strides = [1, 1, 1]} : vector<1x32x224xf32> to vector<1x28x224xf32>
    %14 = arith.addf %8, %13 : vector<1x28x224xf32>
    %c0_11 = arith.constant 0 : index
    %c2 = arith.constant 2 : index
    %c0_12 = arith.constant 0 : index
    %c0_13 = arith.constant 0 : index
    %15 = vector.load %arg2[%c0_11, %c2, %c0_12, %c0_13] : memref<2x5x96x224xbf16, #tpu.memory_space<vmem>>, vector<1x1x96x224xbf16>
    %16 = vector.shape_cast %15 : vector<1x1x96x224xbf16> to vector<96x224xbf16>
    %cst_14 = arith.constant dense<0.000000e+00> : vector<32x224xf32>
    %17 = tpu.matmul %1, %16, %cst_14 {dimension_numbers = #tpu.dot_dimension_numbers<[1], [0], [0], [1], [0, 0, 1, 1], [], []>} : vector<32x96xbf16>, vector<96x224xbf16>, vector<32x224xf32> -> vector<32x224xf32>
    %18 = vector.shape_cast %17 : vector<32x224xf32> to vector<1x32x224xf32>
    %19 = vector.extract_strided_slice %18 {offsets = [0, 2, 0], sizes = [1, 28, 224], strides = [1, 1, 1]} : vector<1x32x224xf32> to vector<1x28x224xf32>
    %20 = arith.addf %14, %19 : vector<1x28x224xf32>
    %c0_15 = arith.constant 0 : index
    %c3 = arith.constant 3 : index
    %c0_16 = arith.constant 0 : index
    %c0_17 = arith.constant 0 : index
    %21 = vector.load %arg2[%c0_15, %c3, %c0_16, %c0_17] : memref<2x5x96x224xbf16, #tpu.memory_space<vmem>>, vector<1x1x96x224xbf16>
    %22 = vector.shape_cast %21 : vector<1x1x96x224xbf16> to vector<96x224xbf16>
    %cst_18 = arith.constant dense<0.000000e+00> : vector<32x224xf32>
    %23 = tpu.matmul %1, %22, %cst_18 {dimension_numbers = #tpu.dot_dimension_numbers<[1], [0], [0], [1], [0, 0, 1, 1], [], []>} : vector<32x96xbf16>, vector<96x224xbf16>, vector<32x224xf32> -> vector<32x224xf32>
    %24 = vector.shape_cast %23 : vector<32x224xf32> to vector<1x32x224xf32>
    %25 = vector.extract_strided_slice %24 {offsets = [0, 3, 0], sizes = [1, 28, 224], strides = [1, 1, 1]} : vector<1x32x224xf32> to vector<1x28x224xf32>
    %26 = arith.addf %20, %25 : vector<1x28x224xf32>
    %c0_19 = arith.constant 0 : index
    %c4 = arith.constant 4 : index
    %c0_20 = arith.constant 0 : index
    %c0_21 = arith.constant 0 : index
    %27 = vector.load %arg2[%c0_19, %c4, %c0_20, %c0_21] : memref<2x5x96x224xbf16, #tpu.memory_space<vmem>>, vector<1x1x96x224xbf16>
    %28 = vector.shape_cast %27 : vector<1x1x96x224xbf16> to vector<96x224xbf16>
    %cst_22 = arith.constant dense<0.000000e+00> : vector<32x224xf32>
    %29 = tpu.matmul %1, %28, %cst_22 {dimension_numbers = #tpu.dot_dimension_numbers<[1], [0], [0], [1], [0, 0, 1, 1], [], []>} : vector<32x96xbf16>, vector<96x224xbf16>, vector<32x224xf32> -> vector<32x224xf32>
    %30 = vector.shape_cast %29 : vector<32x224xf32> to vector<1x32x224xf32>
    %31 = vector.extract_strided_slice %30 {offsets = [0, 4, 0], sizes = [1, 28, 224], strides = [1, 1, 1]} : vector<1x32x224xf32> to vector<1x28x224xf32>
    %32 = arith.addf %26, %31 : vector<1x28x224xf32>
    %cst_23 = arith.constant 0.000000e+00 : f32
    %33 = vector.broadcast %cst_23 : f32 to vector<1x28x224xf32>
    %c1_24 = arith.constant 1 : index
    %c0_25 = arith.constant 0 : index
    %c0_26 = arith.constant 0 : index
    %c0_27 = arith.constant 0 : index
    %34 = vector.load %arg2[%c1_24, %c0_25, %c0_26, %c0_27] : memref<2x5x96x224xbf16, #tpu.memory_space<vmem>>, vector<1x1x96x224xbf16>
    %35 = vector.shape_cast %34 : vector<1x1x96x224xbf16> to vector<96x224xbf16>
    %cst_28 = arith.constant dense<0.000000e+00> : vector<32x224xf32>
    %36 = tpu.matmul %1, %35, %cst_28 {dimension_numbers = #tpu.dot_dimension_numbers<[1], [0], [0], [1], [0, 0, 1, 1], [], []>} : vector<32x96xbf16>, vector<96x224xbf16>, vector<32x224xf32> -> vector<32x224xf32>
    %37 = vector.shape_cast %36 : vector<32x224xf32> to vector<1x32x224xf32>
    %38 = vector.extract_strided_slice %37 {offsets = [0, 0, 0], sizes = [1, 28, 224], strides = [1, 1, 1]} : vector<1x32x224xf32> to vector<1x28x224xf32>
    %39 = arith.addf %33, %38 : vector<1x28x224xf32>
    %c1_29 = arith.constant 1 : index
    %c1_30 = arith.constant 1 : index
    %c0_31 = arith.constant 0 : index
    %c0_32 = arith.constant 0 : index
    %40 = vector.load %arg2[%c1_29, %c1_30, %c0_31, %c0_32] : memref<2x5x96x224xbf16, #tpu.memory_space<vmem>>, vector<1x1x96x224xbf16>
    %41 = vector.shape_cast %40 : vector<1x1x96x224xbf16> to vector<96x224xbf16>
    %cst_33 = arith.constant dense<0.000000e+00> : vector<32x224xf32>
    %42 = tpu.matmul %1, %41, %cst_33 {dimension_numbers = #tpu.dot_dimension_numbers<[1], [0], [0], [1], [0, 0, 1, 1], [], []>} : vector<32x96xbf16>, vector<96x224xbf16>, vector<32x224xf32> -> vector<32x224xf32>
    %43 = vector.shape_cast %42 : vector<32x224xf32> to vector<1x32x224xf32>
    %44 = vector.extract_strided_slice %43 {offsets = [0, 1, 0], sizes = [1, 28, 224], strides = [1, 1, 1]} : vector<1x32x224xf32> to vector<1x28x224xf32>
    %45 = arith.addf %39, %44 : vector<1x28x224xf32>
    %c1_34 = arith.constant 1 : index
    %c2_35 = arith.constant 2 : index
    %c0_36 = arith.constant 0 : index
    %c0_37 = arith.constant 0 : index
    %46 = vector.load %arg2[%c1_34, %c2_35, %c0_36, %c0_37] : memref<2x5x96x224xbf16, #tpu.memory_space<vmem>>, vector<1x1x96x224xbf16>
    %47 = vector.shape_cast %46 : vector<1x1x96x224xbf16> to vector<96x224xbf16>
    %cst_38 = arith.constant dense<0.000000e+00> : vector<32x224xf32>
    %48 = tpu.matmul %1, %47, %cst_38 {dimension_numbers = #tpu.dot_dimension_numbers<[1], [0], [0], [1], [0, 0, 1, 1], [], []>} : vector<32x96xbf16>, vector<96x224xbf16>, vector<32x224xf32> -> vector<32x224xf32>
    %49 = vector.shape_cast %48 : vector<32x224xf32> to vector<1x32x224xf32>
    %50 = vector.extract_strided_slice %49 {offsets = [0, 2, 0], sizes = [1, 28, 224], strides = [1, 1, 1]} : vector<1x32x224xf32> to vector<1x28x224xf32>
    %51 = arith.addf %45, %50 : vector<1x28x224xf32>
    %c1_39 = arith.constant 1 : index
    %c3_40 = arith.constant 3 : index
    %c0_41 = arith.constant 0 : index
    %c0_42 = arith.constant 0 : index
    %52 = vector.load %arg2[%c1_39, %c3_40, %c0_41, %c0_42] : memref<2x5x96x224xbf16, #tpu.memory_space<vmem>>, vector<1x1x96x224xbf16>
    %53 = vector.shape_cast %52 : vector<1x1x96x224xbf16> to vector<96x224xbf16>
    %cst_43 = arith.constant dense<0.000000e+00> : vector<32x224xf32>
    %54 = tpu.matmul %1, %53, %cst_43 {dimension_numbers = #tpu.dot_dimension_numbers<[1], [0], [0], [1], [0, 0, 1, 1], [], []>} : vector<32x96xbf16>, vector<96x224xbf16>, vector<32x224xf32> -> vector<32x224xf32>
    %55 = vector.shape_cast %54 : vector<32x224xf32> to vector<1x32x224xf32>
    %56 = vector.extract_strided_slice %55 {offsets = [0, 3, 0], sizes = [1, 28, 224], strides = [1, 1, 1]} : vector<1x32x224xf32> to vector<1x28x224xf32>
    %57 = arith.addf %51, %56 : vector<1x28x224xf32>
    %c1_44 = arith.constant 1 : index
    %c4_45 = arith.constant 4 : index
    %c0_46 = arith.constant 0 : index
    %c0_47 = arith.constant 0 : index
    %58 = vector.load %arg2[%c1_44, %c4_45, %c0_46, %c0_47] : memref<2x5x96x224xbf16, #tpu.memory_space<vmem>>, vector<1x1x96x224xbf16>
    %59 = vector.shape_cast %58 : vector<1x1x96x224xbf16> to vector<96x224xbf16>
    %cst_48 = arith.constant dense<0.000000e+00> : vector<32x224xf32>
    %60 = tpu.matmul %1, %59, %cst_48 {dimension_numbers = #tpu.dot_dimension_numbers<[1], [0], [0], [1], [0, 0, 1, 1], [], []>} : vector<32x96xbf16>, vector<96x224xbf16>, vector<32x224xf32> -> vector<32x224xf32>
    %61 = vector.shape_cast %60 : vector<32x224xf32> to vector<1x32x224xf32>
    %62 = vector.extract_strided_slice %61 {offsets = [0, 4, 0], sizes = [1, 28, 224], strides = [1, 1, 1]} : vector<1x32x224xf32> to vector<1x28x224xf32>
    %63 = arith.addf %57, %62 : vector<1x28x224xf32>
    %64 = arith.maximumf %32, %63 : vector<1x28x224xf32>
    %65 = vector.extract_strided_slice %64 {offsets = [0, 0, 0], sizes = [1, 27, 224], strides = [1, 1, 1]} : vector<1x28x224xf32> to vector<1x27x224xf32>
    %66 = vector.extract_strided_slice %64 {offsets = [0, 1, 0], sizes = [1, 27, 224], strides = [1, 1, 1]} : vector<1x28x224xf32> to vector<1x27x224xf32>
    %67 = arith.maximumf %65, %66 : vector<1x27x224xf32>
    %c0_49 = arith.constant 0 : index
    %c0_50 = arith.constant 0 : index
    %68 = vector.load %arg3[%c0_49, %c0_50] : memref<1x224xf32, #tpu.memory_space<vmem>>, vector<1x224xf32>
    %cst_51 = arith.constant 0.000000e+00 : bf16
    %69 = vector.broadcast %cst_51 : bf16 to vector<1x16x224xbf16>
    %c0_52 = arith.constant 0 : index
    %c0_53 = arith.constant 0 : index
    %c0_54 = arith.constant 0 : index
    %70 = vector.load %arg13[%c0_52, %c0_53, %c0_54] : memref<1x16x224xbf16, #tpu.memory_space<vmem>>, vector<1x16x224xbf16>
    tpu.vector_store %arg13[%c0_52, %c0_53, %c0_54], %69 {strides = array<i32>} : memref<1x16x224xbf16, #tpu.memory_space<vmem>>, vector<1x16x224xbf16>,
    %71 = vector.extract_strided_slice %67 {offsets = [0, 0, 0], sizes = [1, 1, 224], strides = [1, 1, 1]} : vector<1x27x224xf32> to vector<1x1x224xf32>
    %72 = vector.shape_cast %71 : vector<1x1x224xf32> to vector<1x224xf32>
    %73 = arith.addf %72, %68 : vector<1x224xf32>
    %cst_55 = arith.constant 0.000000e+00 : f32
    %74 = vector.broadcast %cst_55 : f32 to vector<1x224xf32>
    %75 = arith.maximumf %73, %74 : vector<1x224xf32>
    %76 = arith.truncf %75 : vector<1x224xf32> to vector<1x224xbf16>
    %c0_56 = arith.constant 0 : index
    %c0_57 = arith.constant 0 : index
    %c0_58 = arith.constant 0 : index
    %77 = vector.load %arg13[%c0_56, %c0_57, %c0_58] : memref<1x16x224xbf16, #tpu.memory_space<vmem>>, vector<1x1x224xbf16>
    %78 = vector.shape_cast %77 : vector<1x1x224xbf16> to vector<1x224xbf16>
    %79 = vector.shape_cast %76 : vector<1x224xbf16> to vector<1x1x224xbf16>
    tpu.vector_store %arg13[%c0_56, %c0_57, %c0_58], %79 {strides = array<i32>} : memref<1x16x224xbf16, #tpu.memory_space<vmem>>, vector<1x1x224xbf16>,
    %80 = vector.extract_strided_slice %67 {offsets = [0, 2, 0], sizes = [1, 1, 224], strides = [1, 1, 1]} : vector<1x27x224xf32> to vector<1x1x224xf32>
    %81 = vector.shape_cast %80 : vector<1x1x224xf32> to vector<1x224xf32>
    %82 = arith.addf %81, %68 : vector<1x224xf32>
    %cst_59 = arith.constant 0.000000e+00 : f32
    %83 = vector.broadcast %cst_59 : f32 to vector<1x224xf32>
    %84 = arith.maximumf %82, %83 : vector<1x224xf32>
    %85 = arith.truncf %84 : vector<1x224xf32> to vector<1x224xbf16>
    %c0_60 = arith.constant 0 : index
    %c1_61 = arith.constant 1 : index
    %c0_62 = arith.constant 0 : index
    %86 = vector.load %arg13[%c0_60, %c1_61, %c0_62] : memref<1x16x224xbf16, #tpu.memory_space<vmem>>, vector<1x1x224xbf16>
    %87 = vector.shape_cast %86 : vector<1x1x224xbf16> to vector<1x224xbf16>
    %88 = vector.shape_cast %85 : vector<1x224xbf16> to vector<1x1x224xbf16>
    tpu.vector_store %arg13[%c0_60, %c1_61, %c0_62], %88 {strides = array<i32>} : memref<1x16x224xbf16, #tpu.memory_space<vmem>>, vector<1x1x224xbf16>,
    %89 = vector.extract_strided_slice %67 {offsets = [0, 4, 0], sizes = [1, 1, 224], strides = [1, 1, 1]} : vector<1x27x224xf32> to vector<1x1x224xf32>
    %90 = vector.shape_cast %89 : vector<1x1x224xf32> to vector<1x224xf32>
    %91 = arith.addf %90, %68 : vector<1x224xf32>
    %cst_63 = arith.constant 0.000000e+00 : f32
    %92 = vector.broadcast %cst_63 : f32 to vector<1x224xf32>
    %93 = arith.maximumf %91, %92 : vector<1x224xf32>
    %94 = arith.truncf %93 : vector<1x224xf32> to vector<1x224xbf16>
    %c0_64 = arith.constant 0 : index
    %c2_65 = arith.constant 2 : index
    %c0_66 = arith.constant 0 : index
    %95 = vector.load %arg13[%c0_64, %c2_65, %c0_66] : memref<1x16x224xbf16, #tpu.memory_space<vmem>>, vector<1x1x224xbf16>
    %96 = vector.shape_cast %95 : vector<1x1x224xbf16> to vector<1x224xbf16>
    %97 = vector.shape_cast %94 : vector<1x224xbf16> to vector<1x1x224xbf16>
    tpu.vector_store %arg13[%c0_64, %c2_65, %c0_66], %97 {strides = array<i32>} : memref<1x16x224xbf16, #tpu.memory_space<vmem>>, vector<1x1x224xbf16>,
    %98 = vector.extract_strided_slice %67 {offsets = [0, 6, 0], sizes = [1, 1, 224], strides = [1, 1, 1]} : vector<1x27x224xf32> to vector<1x1x224xf32>
    %99 = vector.shape_cast %98 : vector<1x1x224xf32> to vector<1x224xf32>
    %100 = arith.addf %99, %68 : vector<1x224xf32>
    %cst_67 = arith.constant 0.000000e+00 : f32
    %101 = vector.broadcast %cst_67 : f32 to vector<1x224xf32>
    %102 = arith.maximumf %100, %101 : vector<1x224xf32>
    %103 = arith.truncf %102 : vector<1x224xf32> to vector<1x224xbf16>
    %c0_68 = arith.constant 0 : index
    %c3_69 = arith.constant 3 : index
    %c0_70 = arith.constant 0 : index
    %104 = vector.load %arg13[%c0_68, %c3_69, %c0_70] : memref<1x16x224xbf16, #tpu.memory_space<vmem>>, vector<1x1x224xbf16>
    %105 = vector.shape_cast %104 : vector<1x1x224xbf16> to vector<1x224xbf16>
    %106 = vector.shape_cast %103 : vector<1x224xbf16> to vector<1x1x224xbf16>
    tpu.vector_store %arg13[%c0_68, %c3_69, %c0_70], %106 {strides = array<i32>} : memref<1x16x224xbf16, #tpu.memory_space<vmem>>, vector<1x1x224xbf16>,
    %107 = vector.extract_strided_slice %67 {offsets = [0, 8, 0], sizes = [1, 1, 224], strides = [1, 1, 1]} : vector<1x27x224xf32> to vector<1x1x224xf32>
    %108 = vector.shape_cast %107 : vector<1x1x224xf32> to vector<1x224xf32>
    %109 = arith.addf %108, %68 : vector<1x224xf32>
    %cst_71 = arith.constant 0.000000e+00 : f32
    %110 = vector.broadcast %cst_71 : f32 to vector<1x224xf32>
    %111 = arith.maximumf %109, %110 : vector<1x224xf32>
    %112 = arith.truncf %111 : vector<1x224xf32> to vector<1x224xbf16>
    %c0_72 = arith.constant 0 : index
    %c4_73 = arith.constant 4 : index
    %c0_74 = arith.constant 0 : index
    %113 = vector.load %arg13[%c0_72, %c4_73, %c0_74] : memref<1x16x224xbf16, #tpu.memory_space<vmem>>, vector<1x1x224xbf16>
    %114 = vector.shape_cast %113 : vector<1x1x224xbf16> to vector<1x224xbf16>
    %115 = vector.shape_cast %112 : vector<1x224xbf16> to vector<1x1x224xbf16>
    tpu.vector_store %arg13[%c0_72, %c4_73, %c0_74], %115 {strides = array<i32>} : memref<1x16x224xbf16, #tpu.memory_space<vmem>>, vector<1x1x224xbf16>,
    %116 = vector.extract_strided_slice %67 {offsets = [0, 10, 0], sizes = [1, 1, 224], strides = [1, 1, 1]} : vector<1x27x224xf32> to vector<1x1x224xf32>
    %117 = vector.shape_cast %116 : vector<1x1x224xf32> to vector<1x224xf32>
    %118 = arith.addf %117, %68 : vector<1x224xf32>
    %cst_75 = arith.constant 0.000000e+00 : f32
    %119 = vector.broadcast %cst_75 : f32 to vector<1x224xf32>
    %120 = arith.maximumf %118, %119 : vector<1x224xf32>
    %121 = arith.truncf %120 : vector<1x224xf32> to vector<1x224xbf16>
    %c0_76 = arith.constant 0 : index
    %c5 = arith.constant 5 : index
    %c0_77 = arith.constant 0 : index
    %122 = vector.load %arg13[%c0_76, %c5, %c0_77] : memref<1x16x224xbf16, #tpu.memory_space<vmem>>, vector<1x1x224xbf16>
    %123 = vector.shape_cast %122 : vector<1x1x224xbf16> to vector<1x224xbf16>
    %124 = vector.shape_cast %121 : vector<1x224xbf16> to vector<1x1x224xbf16>
    tpu.vector_store %arg13[%c0_76, %c5, %c0_77], %124 {strides = array<i32>} : memref<1x16x224xbf16, #tpu.memory_space<vmem>>, vector<1x1x224xbf16>,
    %125 = vector.extract_strided_slice %67 {offsets = [0, 12, 0], sizes = [1, 1, 224], strides = [1, 1, 1]} : vector<1x27x224xf32> to vector<1x1x224xf32>
    %126 = vector.shape_cast %125 : vector<1x1x224xf32> to vector<1x224xf32>
    %127 = arith.addf %126, %68 : vector<1x224xf32>
    %cst_78 = arith.constant 0.000000e+00 : f32
    %128 = vector.broadcast %cst_78 : f32 to vector<1x224xf32>
    %129 = arith.maximumf %127, %128 : vector<1x224xf32>
    %130 = arith.truncf %129 : vector<1x224xf32> to vector<1x224xbf16>
    %c0_79 = arith.constant 0 : index
    %c6 = arith.constant 6 : index
    %c0_80 = arith.constant 0 : index
    %131 = vector.load %arg13[%c0_79, %c6, %c0_80] : memref<1x16x224xbf16, #tpu.memory_space<vmem>>, vector<1x1x224xbf16>
    %132 = vector.shape_cast %131 : vector<1x1x224xbf16> to vector<1x224xbf16>
    %133 = vector.shape_cast %130 : vector<1x224xbf16> to vector<1x1x224xbf16>
    tpu.vector_store %arg13[%c0_79, %c6, %c0_80], %133 {strides = array<i32>} : memref<1x16x224xbf16, #tpu.memory_space<vmem>>, vector<1x1x224xbf16>,
    %134 = vector.extract_strided_slice %67 {offsets = [0, 14, 0], sizes = [1, 1, 224], strides = [1, 1, 1]} : vector<1x27x224xf32> to vector<1x1x224xf32>
    %135 = vector.shape_cast %134 : vector<1x1x224xf32> to vector<1x224xf32>
    %136 = arith.addf %135, %68 : vector<1x224xf32>
    %cst_81 = arith.constant 0.000000e+00 : f32
    %137 = vector.broadcast %cst_81 : f32 to vector<1x224xf32>
    %138 = arith.maximumf %136, %137 : vector<1x224xf32>
    %139 = arith.truncf %138 : vector<1x224xf32> to vector<1x224xbf16>
    %c0_82 = arith.constant 0 : index
    %c7 = arith.constant 7 : index
    %c0_83 = arith.constant 0 : index
    %140 = vector.load %arg13[%c0_82, %c7, %c0_83] : memref<1x16x224xbf16, #tpu.memory_space<vmem>>, vector<1x1x224xbf16>
    %141 = vector.shape_cast %140 : vector<1x1x224xbf16> to vector<1x224xbf16>
    %142 = vector.shape_cast %139 : vector<1x224xbf16> to vector<1x1x224xbf16>
    tpu.vector_store %arg13[%c0_82, %c7, %c0_83], %142 {strides = array<i32>} : memref<1x16x224xbf16, #tpu.memory_space<vmem>>, vector<1x1x224xbf16>,
    %143 = vector.extract_strided_slice %67 {offsets = [0, 16, 0], sizes = [1, 1, 224], strides = [1, 1, 1]} : vector<1x27x224xf32> to vector<1x1x224xf32>
    %144 = vector.shape_cast %143 : vector<1x1x224xf32> to vector<1x224xf32>
    %145 = arith.addf %144, %68 : vector<1x224xf32>
    %cst_84 = arith.constant 0.000000e+00 : f32
    %146 = vector.broadcast %cst_84 : f32 to vector<1x224xf32>
    %147 = arith.maximumf %145, %146 : vector<1x224xf32>
    %148 = arith.truncf %147 : vector<1x224xf32> to vector<1x224xbf16>
    %c0_85 = arith.constant 0 : index
    %c8 = arith.constant 8 : index
    %c0_86 = arith.constant 0 : index
    %149 = vector.load %arg13[%c0_85, %c8, %c0_86] : memref<1x16x224xbf16, #tpu.memory_space<vmem>>, vector<1x1x224xbf16>
    %150 = vector.shape_cast %149 : vector<1x1x224xbf16> to vector<1x224xbf16>
    %151 = vector.shape_cast %148 : vector<1x224xbf16> to vector<1x1x224xbf16>
    tpu.vector_store %arg13[%c0_85, %c8, %c0_86], %151 {strides = array<i32>} : memref<1x16x224xbf16, #tpu.memory_space<vmem>>, vector<1x1x224xbf16>,
    %152 = vector.extract_strided_slice %67 {offsets = [0, 18, 0], sizes = [1, 1, 224], strides = [1, 1, 1]} : vector<1x27x224xf32> to vector<1x1x224xf32>
    %153 = vector.shape_cast %152 : vector<1x1x224xf32> to vector<1x224xf32>
    %154 = arith.addf %153, %68 : vector<1x224xf32>
    %cst_87 = arith.constant 0.000000e+00 : f32
    %155 = vector.broadcast %cst_87 : f32 to vector<1x224xf32>
    %156 = arith.maximumf %154, %155 : vector<1x224xf32>
    %157 = arith.truncf %156 : vector<1x224xf32> to vector<1x224xbf16>
    %c0_88 = arith.constant 0 : index
    %c9 = arith.constant 9 : index
    %c0_89 = arith.constant 0 : index
    %158 = vector.load %arg13[%c0_88, %c9, %c0_89] : memref<1x16x224xbf16, #tpu.memory_space<vmem>>, vector<1x1x224xbf16>
    %159 = vector.shape_cast %158 : vector<1x1x224xbf16> to vector<1x224xbf16>
    %160 = vector.shape_cast %157 : vector<1x224xbf16> to vector<1x1x224xbf16>
    tpu.vector_store %arg13[%c0_88, %c9, %c0_89], %160 {strides = array<i32>} : memref<1x16x224xbf16, #tpu.memory_space<vmem>>, vector<1x1x224xbf16>,
    %161 = vector.extract_strided_slice %67 {offsets = [0, 20, 0], sizes = [1, 1, 224], strides = [1, 1, 1]} : vector<1x27x224xf32> to vector<1x1x224xf32>
    %162 = vector.shape_cast %161 : vector<1x1x224xf32> to vector<1x224xf32>
    %163 = arith.addf %162, %68 : vector<1x224xf32>
    %cst_90 = arith.constant 0.000000e+00 : f32
    %164 = vector.broadcast %cst_90 : f32 to vector<1x224xf32>
    %165 = arith.maximumf %163, %164 : vector<1x224xf32>
    %166 = arith.truncf %165 : vector<1x224xf32> to vector<1x224xbf16>
    %c0_91 = arith.constant 0 : index
    %c10 = arith.constant 10 : index
    %c0_92 = arith.constant 0 : index
    %167 = vector.load %arg13[%c0_91, %c10, %c0_92] : memref<1x16x224xbf16, #tpu.memory_space<vmem>>, vector<1x1x224xbf16>
    %168 = vector.shape_cast %167 : vector<1x1x224xbf16> to vector<1x224xbf16>
    %169 = vector.shape_cast %166 : vector<1x224xbf16> to vector<1x1x224xbf16>
    tpu.vector_store %arg13[%c0_91, %c10, %c0_92], %169 {strides = array<i32>} : memref<1x16x224xbf16, #tpu.memory_space<vmem>>, vector<1x1x224xbf16>,
    %170 = vector.extract_strided_slice %67 {offsets = [0, 22, 0], sizes = [1, 1, 224], strides = [1, 1, 1]} : vector<1x27x224xf32> to vector<1x1x224xf32>
    %171 = vector.shape_cast %170 : vector<1x1x224xf32> to vector<1x224xf32>
    %172 = arith.addf %171, %68 : vector<1x224xf32>
    %cst_93 = arith.constant 0.000000e+00 : f32
    %173 = vector.broadcast %cst_93 : f32 to vector<1x224xf32>
    %174 = arith.maximumf %172, %173 : vector<1x224xf32>
    %175 = arith.truncf %174 : vector<1x224xf32> to vector<1x224xbf16>
    %c0_94 = arith.constant 0 : index
    %c11 = arith.constant 11 : index
    %c0_95 = arith.constant 0 : index
    %176 = vector.load %arg13[%c0_94, %c11, %c0_95] : memref<1x16x224xbf16, #tpu.memory_space<vmem>>, vector<1x1x224xbf16>
    %177 = vector.shape_cast %176 : vector<1x1x224xbf16> to vector<1x224xbf16>
    %178 = vector.shape_cast %175 : vector<1x224xbf16> to vector<1x1x224xbf16>
    tpu.vector_store %arg13[%c0_94, %c11, %c0_95], %178 {strides = array<i32>} : memref<1x16x224xbf16, #tpu.memory_space<vmem>>, vector<1x1x224xbf16>,
    %179 = vector.extract_strided_slice %67 {offsets = [0, 24, 0], sizes = [1, 1, 224], strides = [1, 1, 1]} : vector<1x27x224xf32> to vector<1x1x224xf32>
    %180 = vector.shape_cast %179 : vector<1x1x224xf32> to vector<1x224xf32>
    %181 = arith.addf %180, %68 : vector<1x224xf32>
    %cst_96 = arith.constant 0.000000e+00 : f32
    %182 = vector.broadcast %cst_96 : f32 to vector<1x224xf32>
    %183 = arith.maximumf %181, %182 : vector<1x224xf32>
    %184 = arith.truncf %183 : vector<1x224xf32> to vector<1x224xbf16>
    %c0_97 = arith.constant 0 : index
    %c12 = arith.constant 12 : index
    %c0_98 = arith.constant 0 : index
    %185 = vector.load %arg13[%c0_97, %c12, %c0_98] : memref<1x16x224xbf16, #tpu.memory_space<vmem>>, vector<1x1x224xbf16>
    %186 = vector.shape_cast %185 : vector<1x1x224xbf16> to vector<1x224xbf16>
    %187 = vector.shape_cast %184 : vector<1x224xbf16> to vector<1x1x224xbf16>
    tpu.vector_store %arg13[%c0_97, %c12, %c0_98], %187 {strides = array<i32>} : memref<1x16x224xbf16, #tpu.memory_space<vmem>>, vector<1x1x224xbf16>,
    %188 = vector.extract_strided_slice %67 {offsets = [0, 26, 0], sizes = [1, 1, 224], strides = [1, 1, 1]} : vector<1x27x224xf32> to vector<1x1x224xf32>
    %189 = vector.shape_cast %188 : vector<1x1x224xf32> to vector<1x224xf32>
    %190 = arith.addf %189, %68 : vector<1x224xf32>
    %cst_99 = arith.constant 0.000000e+00 : f32
    %191 = vector.broadcast %cst_99 : f32 to vector<1x224xf32>
    %192 = arith.maximumf %190, %191 : vector<1x224xf32>
    %193 = arith.truncf %192 : vector<1x224xf32> to vector<1x224xbf16>
    %c0_100 = arith.constant 0 : index
    %c13 = arith.constant 13 : index
    %c0_101 = arith.constant 0 : index
    %194 = vector.load %arg13[%c0_100, %c13, %c0_101] : memref<1x16x224xbf16, #tpu.memory_space<vmem>>, vector<1x1x224xbf16>
    %195 = vector.shape_cast %194 : vector<1x1x224xbf16> to vector<1x224xbf16>
    %196 = vector.shape_cast %193 : vector<1x224xbf16> to vector<1x1x224xbf16>
    tpu.vector_store %arg13[%c0_100, %c13, %c0_101], %196 {strides = array<i32>} : memref<1x16x224xbf16, #tpu.memory_space<vmem>>, vector<1x1x224xbf16>,
    %c0_102 = arith.constant 0 : index
    %c0_103 = arith.constant 0 : index
    %c0_104 = arith.constant 0 : index
    %197 = vector.load %arg13[%c0_102, %c0_103, %c0_104] : memref<1x16x224xbf16, #tpu.memory_space<vmem>>, vector<1x16x224xbf16>
    %198 = vector.shape_cast %197 : vector<1x16x224xbf16> to vector<16x224xbf16>
    %cst_105 = arith.constant 0.000000e+00 : f32
    %199 = vector.broadcast %cst_105 : f32 to vector<1x10x160xf32>
    %c0_106 = arith.constant 0 : index
    %c0_107 = arith.constant 0 : index
    %c0_108 = arith.constant 0 : index
    %c0_109 = arith.constant 0 : index
    %200 = vector.load %arg4[%c0_106, %c0_107, %c0_108, %c0_109] : memref<2x5x224x160xbf16, #tpu.memory_space<vmem>>, vector<1x1x224x160xbf16>
    %201 = vector.shape_cast %200 : vector<1x1x224x160xbf16> to vector<224x160xbf16>
    %cst_110 = arith.constant dense<0.000000e+00> : vector<16x160xf32>
    %202 = tpu.matmul %198, %201, %cst_110 {dimension_numbers = #tpu.dot_dimension_numbers<[1], [0], [0], [1], [0, 0, 1, 1], [], []>} : vector<16x224xbf16>, vector<224x160xbf16>, vector<16x160xf32> -> vector<16x160xf32>
    %203 = vector.shape_cast %202 : vector<16x160xf32> to vector<1x16x160xf32>
    %204 = vector.extract_strided_slice %203 {offsets = [0, 0, 0], sizes = [1, 10, 160], strides = [1, 1, 1]} : vector<1x16x160xf32> to vector<1x10x160xf32>
    %205 = arith.addf %199, %204 : vector<1x10x160xf32>
    %c0_111 = arith.constant 0 : index
    %c1_112 = arith.constant 1 : index
    %c0_113 = arith.constant 0 : index
    %c0_114 = arith.constant 0 : index
    %206 = vector.load %arg4[%c0_111, %c1_112, %c0_113, %c0_114] : memref<2x5x224x160xbf16, #tpu.memory_space<vmem>>, vector<1x1x224x160xbf16>
    %207 = vector.shape_cast %206 : vector<1x1x224x160xbf16> to vector<224x160xbf16>
    %cst_115 = arith.constant dense<0.000000e+00> : vector<16x160xf32>
    %208 = tpu.matmul %198, %207, %cst_115 {dimension_numbers = #tpu.dot_dimension_numbers<[1], [0], [0], [1], [0, 0, 1, 1], [], []>} : vector<16x224xbf16>, vector<224x160xbf16>, vector<16x160xf32> -> vector<16x160xf32>
    %209 = vector.shape_cast %208 : vector<16x160xf32> to vector<1x16x160xf32>
    %210 = vector.extract_strided_slice %209 {offsets = [0, 1, 0], sizes = [1, 10, 160], strides = [1, 1, 1]} : vector<1x16x160xf32> to vector<1x10x160xf32>
    %211 = arith.addf %205, %210 : vector<1x10x160xf32>
    %c0_116 = arith.constant 0 : index
    %c2_117 = arith.constant 2 : index
    %c0_118 = arith.constant 0 : index
    %c0_119 = arith.constant 0 : index
    %212 = vector.load %arg4[%c0_116, %c2_117, %c0_118, %c0_119] : memref<2x5x224x160xbf16, #tpu.memory_space<vmem>>, vector<1x1x224x160xbf16>
    %213 = vector.shape_cast %212 : vector<1x1x224x160xbf16> to vector<224x160xbf16>
    %cst_120 = arith.constant dense<0.000000e+00> : vector<16x160xf32>
    %214 = tpu.matmul %198, %213, %cst_120 {dimension_numbers = #tpu.dot_dimension_numbers<[1], [0], [0], [1], [0, 0, 1, 1], [], []>} : vector<16x224xbf16>, vector<224x160xbf16>, vector<16x160xf32> -> vector<16x160xf32>
    %215 = vector.shape_cast %214 : vector<16x160xf32> to vector<1x16x160xf32>
    %216 = vector.extract_strided_slice %215 {offsets = [0, 2, 0], sizes = [1, 10, 160], strides = [1, 1, 1]} : vector<1x16x160xf32> to vector<1x10x160xf32>
    %217 = arith.addf %211, %216 : vector<1x10x160xf32>
    %c0_121 = arith.constant 0 : index
    %c3_122 = arith.constant 3 : index
    %c0_123 = arith.constant 0 : index
    %c0_124 = arith.constant 0 : index
    %218 = vector.load %arg4[%c0_121, %c3_122, %c0_123, %c0_124] : memref<2x5x224x160xbf16, #tpu.memory_space<vmem>>, vector<1x1x224x160xbf16>
    %219 = vector.shape_cast %218 : vector<1x1x224x160xbf16> to vector<224x160xbf16>
    %cst_125 = arith.constant dense<0.000000e+00> : vector<16x160xf32>
    %220 = tpu.matmul %198, %219, %cst_125 {dimension_numbers = #tpu.dot_dimension_numbers<[1], [0], [0], [1], [0, 0, 1, 1], [], []>} : vector<16x224xbf16>, vector<224x160xbf16>, vector<16x160xf32> -> vector<16x160xf32>
    %221 = vector.shape_cast %220 : vector<16x160xf32> to vector<1x16x160xf32>
    %222 = vector.extract_strided_slice %221 {offsets = [0, 3, 0], sizes = [1, 10, 160], strides = [1, 1, 1]} : vector<1x16x160xf32> to vector<1x10x160xf32>
    %223 = arith.addf %217, %222 : vector<1x10x160xf32>
    %c0_126 = arith.constant 0 : index
    %c4_127 = arith.constant 4 : index
    %c0_128 = arith.constant 0 : index
    %c0_129 = arith.constant 0 : index
    %224 = vector.load %arg4[%c0_126, %c4_127, %c0_128, %c0_129] : memref<2x5x224x160xbf16, #tpu.memory_space<vmem>>, vector<1x1x224x160xbf16>
    %225 = vector.shape_cast %224 : vector<1x1x224x160xbf16> to vector<224x160xbf16>
    %cst_130 = arith.constant dense<0.000000e+00> : vector<16x160xf32>
    %226 = tpu.matmul %198, %225, %cst_130 {dimension_numbers = #tpu.dot_dimension_numbers<[1], [0], [0], [1], [0, 0, 1, 1], [], []>} : vector<16x224xbf16>, vector<224x160xbf16>, vector<16x160xf32> -> vector<16x160xf32>
    %227 = vector.shape_cast %226 : vector<16x160xf32> to vector<1x16x160xf32>
    %228 = vector.extract_strided_slice %227 {offsets = [0, 4, 0], sizes = [1, 10, 160], strides = [1, 1, 1]} : vector<1x16x160xf32> to vector<1x10x160xf32>
    %229 = arith.addf %223, %228 : vector<1x10x160xf32>
    %cst_131 = arith.constant 0.000000e+00 : f32
    %230 = vector.broadcast %cst_131 : f32 to vector<1x10x160xf32>
    %c1_132 = arith.constant 1 : index
    %c0_133 = arith.constant 0 : index
    %c0_134 = arith.constant 0 : index
    %c0_135 = arith.constant 0 : index
    %231 = vector.load %arg4[%c1_132, %c0_133, %c0_134, %c0_135] : memref<2x5x224x160xbf16, #tpu.memory_space<vmem>>, vector<1x1x224x160xbf16>
    %232 = vector.shape_cast %231 : vector<1x1x224x160xbf16> to vector<224x160xbf16>
    %cst_136 = arith.constant dense<0.000000e+00> : vector<16x160xf32>
    %233 = tpu.matmul %198, %232, %cst_136 {dimension_numbers = #tpu.dot_dimension_numbers<[1], [0], [0], [1], [0, 0, 1, 1], [], []>} : vector<16x224xbf16>, vector<224x160xbf16>, vector<16x160xf32> -> vector<16x160xf32>
    %234 = vector.shape_cast %233 : vector<16x160xf32> to vector<1x16x160xf32>
    %235 = vector.extract_strided_slice %234 {offsets = [0, 0, 0], sizes = [1, 10, 160], strides = [1, 1, 1]} : vector<1x16x160xf32> to vector<1x10x160xf32>
    %236 = arith.addf %230, %235 : vector<1x10x160xf32>
    %c1_137 = arith.constant 1 : index
    %c1_138 = arith.constant 1 : index
    %c0_139 = arith.constant 0 : index
    %c0_140 = arith.constant 0 : index
    %237 = vector.load %arg4[%c1_137, %c1_138, %c0_139, %c0_140] : memref<2x5x224x160xbf16, #tpu.memory_space<vmem>>, vector<1x1x224x160xbf16>
    %238 = vector.shape_cast %237 : vector<1x1x224x160xbf16> to vector<224x160xbf16>
    %cst_141 = arith.constant dense<0.000000e+00> : vector<16x160xf32>
    %239 = tpu.matmul %198, %238, %cst_141 {dimension_numbers = #tpu.dot_dimension_numbers<[1], [0], [0], [1], [0, 0, 1, 1], [], []>} : vector<16x224xbf16>, vector<224x160xbf16>, vector<16x160xf32> -> vector<16x160xf32>
    %240 = vector.shape_cast %239 : vector<16x160xf32> to vector<1x16x160xf32>
    %241 = vector.extract_strided_slice %240 {offsets = [0, 1, 0], sizes = [1, 10, 160], strides = [1, 1, 1]} : vector<1x16x160xf32> to vector<1x10x160xf32>
    %242 = arith.addf %236, %241 : vector<1x10x160xf32>
    %c1_142 = arith.constant 1 : index
    %c2_143 = arith.constant 2 : index
    %c0_144 = arith.constant 0 : index
    %c0_145 = arith.constant 0 : index
    %243 = vector.load %arg4[%c1_142, %c2_143, %c0_144, %c0_145] : memref<2x5x224x160xbf16, #tpu.memory_space<vmem>>, vector<1x1x224x160xbf16>
    %244 = vector.shape_cast %243 : vector<1x1x224x160xbf16> to vector<224x160xbf16>
    %cst_146 = arith.constant dense<0.000000e+00> : vector<16x160xf32>
    %245 = tpu.matmul %198, %244, %cst_146 {dimension_numbers = #tpu.dot_dimension_numbers<[1], [0], [0], [1], [0, 0, 1, 1], [], []>} : vector<16x224xbf16>, vector<224x160xbf16>, vector<16x160xf32> -> vector<16x160xf32>
    %246 = vector.shape_cast %245 : vector<16x160xf32> to vector<1x16x160xf32>
    %247 = vector.extract_strided_slice %246 {offsets = [0, 2, 0], sizes = [1, 10, 160], strides = [1, 1, 1]} : vector<1x16x160xf32> to vector<1x10x160xf32>
    %248 = arith.addf %242, %247 : vector<1x10x160xf32>
    %c1_147 = arith.constant 1 : index
    %c3_148 = arith.constant 3 : index
    %c0_149 = arith.constant 0 : index
    %c0_150 = arith.constant 0 : index
    %249 = vector.load %arg4[%c1_147, %c3_148, %c0_149, %c0_150] : memref<2x5x224x160xbf16, #tpu.memory_space<vmem>>, vector<1x1x224x160xbf16>
    %250 = vector.shape_cast %249 : vector<1x1x224x160xbf16> to vector<224x160xbf16>
    %cst_151 = arith.constant dense<0.000000e+00> : vector<16x160xf32>
    %251 = tpu.matmul %198, %250, %cst_151 {dimension_numbers = #tpu.dot_dimension_numbers<[1], [0], [0], [1], [0, 0, 1, 1], [], []>} : vector<16x224xbf16>, vector<224x160xbf16>, vector<16x160xf32> -> vector<16x160xf32>
    %252 = vector.shape_cast %251 : vector<16x160xf32> to vector<1x16x160xf32>
    %253 = vector.extract_strided_slice %252 {offsets = [0, 3, 0], sizes = [1, 10, 160], strides = [1, 1, 1]} : vector<1x16x160xf32> to vector<1x10x160xf32>
    %254 = arith.addf %248, %253 : vector<1x10x160xf32>
    %c1_152 = arith.constant 1 : index
    %c4_153 = arith.constant 4 : index
    %c0_154 = arith.constant 0 : index
    %c0_155 = arith.constant 0 : index
    %255 = vector.load %arg4[%c1_152, %c4_153, %c0_154, %c0_155] : memref<2x5x224x160xbf16, #tpu.memory_space<vmem>>, vector<1x1x224x160xbf16>
    %256 = vector.shape_cast %255 : vector<1x1x224x160xbf16> to vector<224x160xbf16>
    %cst_156 = arith.constant dense<0.000000e+00> : vector<16x160xf32>
    %257 = tpu.matmul %198, %256, %cst_156 {dimension_numbers = #tpu.dot_dimension_numbers<[1], [0], [0], [1], [0, 0, 1, 1], [], []>} : vector<16x224xbf16>, vector<224x160xbf16>, vector<16x160xf32> -> vector<16x160xf32>
    %258 = vector.shape_cast %257 : vector<16x160xf32> to vector<1x16x160xf32>
    %259 = vector.extract_strided_slice %258 {offsets = [0, 4, 0], sizes = [1, 10, 160], strides = [1, 1, 1]} : vector<1x16x160xf32> to vector<1x10x160xf32>
    %260 = arith.addf %254, %259 : vector<1x10x160xf32>
    %261 = arith.maximumf %229, %260 : vector<1x10x160xf32>
    %262 = vector.extract_strided_slice %261 {offsets = [0, 0, 0], sizes = [1, 9, 160], strides = [1, 1, 1]} : vector<1x10x160xf32> to vector<1x9x160xf32>
    %263 = vector.extract_strided_slice %261 {offsets = [0, 1, 0], sizes = [1, 9, 160], strides = [1, 1, 1]} : vector<1x10x160xf32> to vector<1x9x160xf32>
    %264 = arith.maximumf %262, %263 : vector<1x9x160xf32>
    %c0_157 = arith.constant 0 : index
    %c0_158 = arith.constant 0 : index
    %265 = vector.load %arg5[%c0_157, %c0_158] : memref<1x160xf32, #tpu.memory_space<vmem>>, vector<1x160xf32>
    %cst_159 = arith.constant 0.000000e+00 : f32
    %266 = vector.broadcast %cst_159 : f32 to vector<1x128xf32>
    %267 = vector.extract_strided_slice %264 {offsets = [0, 0, 0], sizes = [1, 1, 160], strides = [1, 1, 1]} : vector<1x9x160xf32> to vector<1x1x160xf32>
    %268 = vector.shape_cast %267 : vector<1x1x160xf32> to vector<1x160xf32>
    %269 = arith.addf %268, %265 : vector<1x160xf32>
    %cst_160 = arith.constant 0.000000e+00 : f32
    %270 = vector.broadcast %cst_160 : f32 to vector<1x160xf32>
    %271 = arith.maximumf %269, %270 : vector<1x160xf32>
    %272 = arith.truncf %271 : vector<1x160xf32> to vector<1x160xbf16>
    %c0_161 = arith.constant 0 : index
    %c0_162 = arith.constant 0 : index
    %c0_163 = arith.constant 0 : index
    %273 = vector.load %arg6[%c0_161, %c0_162, %c0_163] : memref<5x160x128xbf16, #tpu.memory_space<vmem>>, vector<1x160x128xbf16>
    %274 = vector.shape_cast %273 : vector<1x160x128xbf16> to vector<160x128xbf16>
    %cst_164 = arith.constant dense<0.000000e+00> : vector<1x128xf32>
    %275 = tpu.matmul %272, %274, %cst_164 {dimension_numbers = #tpu.dot_dimension_numbers<[1], [0], [0], [1], [0, 0, 1, 1], [], []>} : vector<1x160xbf16>, vector<160x128xbf16>, vector<1x128xf32> -> vector<1x128xf32>
    %276 = arith.addf %266, %275 : vector<1x128xf32>
    %277 = vector.extract_strided_slice %264 {offsets = [0, 2, 0], sizes = [1, 1, 160], strides = [1, 1, 1]} : vector<1x9x160xf32> to vector<1x1x160xf32>
    %278 = vector.shape_cast %277 : vector<1x1x160xf32> to vector<1x160xf32>
    %279 = arith.addf %278, %265 : vector<1x160xf32>
    %cst_165 = arith.constant 0.000000e+00 : f32
    %280 = vector.broadcast %cst_165 : f32 to vector<1x160xf32>
    %281 = arith.maximumf %279, %280 : vector<1x160xf32>
    %282 = arith.truncf %281 : vector<1x160xf32> to vector<1x160xbf16>
    %c1_166 = arith.constant 1 : index
    %c0_167 = arith.constant 0 : index
    %c0_168 = arith.constant 0 : index
    %283 = vector.load %arg6[%c1_166, %c0_167, %c0_168] : memref<5x160x128xbf16, #tpu.memory_space<vmem>>, vector<1x160x128xbf16>
    %284 = vector.shape_cast %283 : vector<1x160x128xbf16> to vector<160x128xbf16>
    %cst_169 = arith.constant dense<0.000000e+00> : vector<1x128xf32>
    %285 = tpu.matmul %282, %284, %cst_169 {dimension_numbers = #tpu.dot_dimension_numbers<[1], [0], [0], [1], [0, 0, 1, 1], [], []>} : vector<1x160xbf16>, vector<160x128xbf16>, vector<1x128xf32> -> vector<1x128xf32>
    %286 = arith.addf %276, %285 : vector<1x128xf32>
    %287 = vector.extract_strided_slice %264 {offsets = [0, 4, 0], sizes = [1, 1, 160], strides = [1, 1, 1]} : vector<1x9x160xf32> to vector<1x1x160xf32>
    %288 = vector.shape_cast %287 : vector<1x1x160xf32> to vector<1x160xf32>
    %289 = arith.addf %288, %265 : vector<1x160xf32>
    %cst_170 = arith.constant 0.000000e+00 : f32
    %290 = vector.broadcast %cst_170 : f32 to vector<1x160xf32>
    %291 = arith.maximumf %289, %290 : vector<1x160xf32>
    %292 = arith.truncf %291 : vector<1x160xf32> to vector<1x160xbf16>
    %c2_171 = arith.constant 2 : index
    %c0_172 = arith.constant 0 : index
    %c0_173 = arith.constant 0 : index
    %293 = vector.load %arg6[%c2_171, %c0_172, %c0_173] : memref<5x160x128xbf16, #tpu.memory_space<vmem>>, vector<1x160x128xbf16>
    %294 = vector.shape_cast %293 : vector<1x160x128xbf16> to vector<160x128xbf16>
    %cst_174 = arith.constant dense<0.000000e+00> : vector<1x128xf32>
    %295 = tpu.matmul %292, %294, %cst_174 {dimension_numbers = #tpu.dot_dimension_numbers<[1], [0], [0], [1], [0, 0, 1, 1], [], []>} : vector<1x160xbf16>, vector<160x128xbf16>, vector<1x128xf32> -> vector<1x128xf32>
    %296 = arith.addf %286, %295 : vector<1x128xf32>
    %297 = vector.extract_strided_slice %264 {offsets = [0, 6, 0], sizes = [1, 1, 160], strides = [1, 1, 1]} : vector<1x9x160xf32> to vector<1x1x160xf32>
    %298 = vector.shape_cast %297 : vector<1x1x160xf32> to vector<1x160xf32>
    %299 = arith.addf %298, %265 : vector<1x160xf32>
    %cst_175 = arith.constant 0.000000e+00 : f32
    %300 = vector.broadcast %cst_175 : f32 to vector<1x160xf32>
    %301 = arith.maximumf %299, %300 : vector<1x160xf32>
    %302 = arith.truncf %301 : vector<1x160xf32> to vector<1x160xbf16>
    %c3_176 = arith.constant 3 : index
    %c0_177 = arith.constant 0 : index
    %c0_178 = arith.constant 0 : index
    %303 = vector.load %arg6[%c3_176, %c0_177, %c0_178] : memref<5x160x128xbf16, #tpu.memory_space<vmem>>, vector<1x160x128xbf16>
    %304 = vector.shape_cast %303 : vector<1x160x128xbf16> to vector<160x128xbf16>
    %cst_179 = arith.constant dense<0.000000e+00> : vector<1x128xf32>
    %305 = tpu.matmul %302, %304, %cst_179 {dimension_numbers = #tpu.dot_dimension_numbers<[1], [0], [0], [1], [0, 0, 1, 1], [], []>} : vector<1x160xbf16>, vector<160x128xbf16>, vector<1x128xf32> -> vector<1x128xf32>
    %306 = arith.addf %296, %305 : vector<1x128xf32>
    %307 = vector.extract_strided_slice %264 {offsets = [0, 8, 0], sizes = [1, 1, 160], strides = [1, 1, 1]} : vector<1x9x160xf32> to vector<1x1x160xf32>
    %308 = vector.shape_cast %307 : vector<1x1x160xf32> to vector<1x160xf32>
    %309 = arith.addf %308, %265 : vector<1x160xf32>
    %cst_180 = arith.constant 0.000000e+00 : f32
    %310 = vector.broadcast %cst_180 : f32 to vector<1x160xf32>
    %311 = arith.maximumf %309, %310 : vector<1x160xf32>
    %312 = arith.truncf %311 : vector<1x160xf32> to vector<1x160xbf16>
    %c4_181 = arith.constant 4 : index
    %c0_182 = arith.constant 0 : index
    %c0_183 = arith.constant 0 : index
    %313 = vector.load %arg6[%c4_181, %c0_182, %c0_183] : memref<5x160x128xbf16, #tpu.memory_space<vmem>>, vector<1x160x128xbf16>
    %314 = vector.shape_cast %313 : vector<1x160x128xbf16> to vector<160x128xbf16>
    %cst_184 = arith.constant dense<0.000000e+00> : vector<1x128xf32>
    %315 = tpu.matmul %312, %314, %cst_184 {dimension_numbers = #tpu.dot_dimension_numbers<[1], [0], [0], [1], [0, 0, 1, 1], [], []>} : vector<1x160xbf16>, vector<160x128xbf16>, vector<1x128xf32> -> vector<1x128xf32>
    %316 = arith.addf %306, %315 : vector<1x128xf32>
    %c0_185 = arith.constant 0 : index
    %c0_186 = arith.constant 0 : index
    %317 = vector.load %arg7[%c0_185, %c0_186] : memref<1x128xf32, #tpu.memory_space<vmem>>, vector<1x128xf32>
    %318 = arith.addf %316, %317 : vector<1x128xf32>
    %cst_187 = arith.constant 0.000000e+00 : f32
    %319 = vector.broadcast %cst_187 : f32 to vector<1x128xf32>
    %320 = arith.maximumf %318, %319 : vector<1x128xf32>
    %321 = arith.truncf %320 : vector<1x128xf32> to vector<1x128xbf16>
    %c0_188 = arith.constant 0 : index
    %c0_189 = arith.constant 0 : index
    %322 = vector.load %arg8[%c0_188, %c0_189] : memref<128x128xbf16, #tpu.memory_space<vmem>>, vector<128x128xbf16>
    %cst_190 = arith.constant dense<0.000000e+00> : vector<1x128xf32>
    %323 = tpu.matmul %321, %322, %cst_190 {dimension_numbers = #tpu.dot_dimension_numbers<[1], [0], [0], [1], [0, 0, 1, 1], [], []>} : vector<1x128xbf16>, vector<128x128xbf16>, vector<1x128xf32> -> vector<1x128xf32>
    %c0_191 = arith.constant 0 : index
    %c0_192 = arith.constant 0 : index
    %324 = vector.load %arg9[%c0_191, %c0_192] : memref<1x128xf32, #tpu.memory_space<vmem>>, vector<1x128xf32>
    %325 = arith.addf %323, %324 : vector<1x128xf32>
    %cst_193 = arith.constant 0.000000e+00 : f32
    %326 = vector.broadcast %cst_193 : f32 to vector<1x128xf32>
    %327 = arith.maximumf %325, %326 : vector<1x128xf32>
    %328 = arith.truncf %327 : vector<1x128xf32> to vector<1x128xbf16>
    %c0_194 = arith.constant 0 : index
    %c0_195 = arith.constant 0 : index
    %329 = vector.load %arg10[%c0_194, %c0_195] : memref<128x128xbf16, #tpu.memory_space<vmem>>, vector<128x128xbf16>
    %cst_196 = arith.constant dense<0.000000e+00> : vector<1x128xf32>
    %330 = tpu.matmul %328, %329, %cst_196 {dimension_numbers = #tpu.dot_dimension_numbers<[1], [0], [0], [1], [0, 0, 1, 1], [], []>} : vector<1x128xbf16>, vector<128x128xbf16>, vector<1x128xf32> -> vector<1x128xf32>
    %c0_197 = arith.constant 0 : index
    %c0_198 = arith.constant 0 : index
    %331 = vector.load %arg11[%c0_197, %c0_198] : memref<1x128xf32, #tpu.memory_space<vmem>>, vector<1x128xf32>
    %332 = arith.addf %330, %331 : vector<1x128xf32>
    %c0_199 = arith.constant 0 : index
    %c0_200 = arith.constant 0 : index
    %c0_201 = arith.constant 0 : index
    %333 = vector.load %arg12[%c0_199, %c0_200, %c0_201] : memref<1x1x128xf32, #tpu.memory_space<vmem>>, vector<1x1x128xf32>
    %334 = vector.shape_cast %333 : vector<1x1x128xf32> to vector<1x128xf32>
    %335 = vector.shape_cast %332 : vector<1x128xf32> to vector<1x1x128xf32>
    tpu.vector_store %arg12[%c0_199, %c0_200, %c0_201], %335 {strides = array<i32>} : memref<1x1x128xf32, #tpu.memory_space<vmem>>, vector<1x1x128xf32>,
    return
  }
  func.func @transform_0(%arg0: i32) -> (i32, i32, i32) {
    %c0_i32 = arith.constant 0 : i32
    %c0_i32_0 = arith.constant 0 : i32
    %c0_i32_1 = arith.constant 0 : i32
    return %arg0, %c0_i32, %c0_i32_0 : i32, i32, i32
  }
  func.func @transform_1(%arg0: i32) -> (i32, i32, i32, i32) {
    %c0_i32 = arith.constant 0 : i32
    %c0_i32_0 = arith.constant 0 : i32
    %c0_i32_1 = arith.constant 0 : i32
    %c0_i32_2 = arith.constant 0 : i32
    %c0_i32_3 = arith.constant 0 : i32
    return %c0_i32, %c0_i32_0, %c0_i32_1, %c0_i32_2 : i32, i32, i32, i32
  }
  func.func @transform_2(%arg0: i32) -> (i32, i32) {
    %c0_i32 = arith.constant 0 : i32
    %c0_i32_0 = arith.constant 0 : i32
    %c0_i32_1 = arith.constant 0 : i32
    return %c0_i32, %c0_i32_0 : i32, i32
  }
  func.func @transform_3(%arg0: i32) -> (i32, i32, i32, i32) {
    %c0_i32 = arith.constant 0 : i32
    %c0_i32_0 = arith.constant 0 : i32
    %c0_i32_1 = arith.constant 0 : i32
    %c0_i32_2 = arith.constant 0 : i32
    %c0_i32_3 = arith.constant 0 : i32
    return %c0_i32, %c0_i32_0, %c0_i32_1, %c0_i32_2 : i32, i32, i32, i32
  }
  func.func @transform_4(%arg0: i32) -> (i32, i32) {
    %c0_i32 = arith.constant 0 : i32
    %c0_i32_0 = arith.constant 0 : i32
    %c0_i32_1 = arith.constant 0 : i32
    return %c0_i32, %c0_i32_0 : i32, i32
  }
  func.func @transform_5(%arg0: i32) -> (i32, i32, i32) {
    %c0_i32 = arith.constant 0 : i32
    %c0_i32_0 = arith.constant 0 : i32
    %c0_i32_1 = arith.constant 0 : i32
    %c0_i32_2 = arith.constant 0 : i32
    return %c0_i32, %c0_i32_0, %c0_i32_1 : i32, i32, i32
  }
  func.func @transform_6(%arg0: i32) -> (i32, i32) {
    %c0_i32 = arith.constant 0 : i32
    %c0_i32_0 = arith.constant 0 : i32
    %c0_i32_1 = arith.constant 0 : i32
    return %c0_i32, %c0_i32_0 : i32, i32
  }
  func.func @transform_7(%arg0: i32) -> (i32, i32) {
    %c0_i32 = arith.constant 0 : i32
    %c0_i32_0 = arith.constant 0 : i32
    %c0_i32_1 = arith.constant 0 : i32
    return %c0_i32, %c0_i32_0 : i32, i32
  }
  func.func @transform_8(%arg0: i32) -> (i32, i32) {
    %c0_i32 = arith.constant 0 : i32
    %c0_i32_0 = arith.constant 0 : i32
    %c0_i32_1 = arith.constant 0 : i32
    return %c0_i32, %c0_i32_0 : i32, i32
  }
  func.func @transform_9(%arg0: i32) -> (i32, i32) {
    %c0_i32 = arith.constant 0 : i32
    %c0_i32_0 = arith.constant 0 : i32
    %c0_i32_1 = arith.constant 0 : i32
    return %c0_i32, %c0_i32_0 : i32, i32
  }
  func.func @transform_10(%arg0: i32) -> (i32, i32) {
    %c0_i32 = arith.constant 0 : i32
    %c0_i32_0 = arith.constant 0 : i32
    %c0_i32_1 = arith.constant 0 : i32
    return %c0_i32, %c0_i32_0 : i32, i32
  }
  func.func @transform_11(%arg0: i32) -> (i32, i32, i32) {
    %c0_i32 = arith.constant 0 : i32
    %c0_i32_0 = arith.constant 0 : i32
    %c0_i32_1 = arith.constant 0 : i32
    return %arg0, %c0_i32, %c0_i32_0 : i32, i32, i32
  }
}

</mosaic_0001>

<bundles_post_ra>
// kernel: lenet_forward.1
= control target key start
LH: loop header
LB: loop body
LE: loop exit
PB: predicated region body
PF: predicated region fallthrough
CT: control target
= control target key end

     0   :  { %16 = vsyncpa [#allocation4], 0  ;;  %s9568_s0 = inlined_call_operand.vmem [shape: bf16[2,32,96], index: 0, kind: input, shape index: {}]   ;;  %s9569_s1 = inlined_call_operand.vmem [shape: bf16[2,5,96,224], index: 1, kind: input, shape index: {}]   ;;  %s9570_s2 = inlined_call_operand.vmem [shape: f32[1,224], index: 2, kind: input, shape index: {}]   ;;  %s9571_s3 = inlined_call_operand.vmem [shape: bf16[2,5,224,160], index: 3, kind: input, shape index: {}]   ;;  %s9572_s4 = inlined_call_operand.vmem [shape: f32[1,160], index: 4, kind: input, shape index: {}]   ;;  %s9573_s5 = inlined_call_operand.vmem [shape: bf16[5,160,128], index: 5, kind: input, shape index: {}]   ;;  %s9574_s6 = inlined_call_operand.vmem [shape: f32[1,128], index: 6, kind: input, shape index: {}]   ;;  %s9575_s7 = inlined_call_operand.vmem [shape: bf16[128,128], index: 7, kind: input, shape index: {}]   ;;  %s9576_s8 = inlined_call_operand.vmem [shape: f32[1,128], index: 8, kind: input, shape index: {}]   ;;  %s9577_s9 = inlined_call_operand.vmem [shape: bf16[128,128], index: 9, kind: input, shape index: {}]   ;;  %s9578_s10 = inlined_call_operand.vmem [shape: f32[1,128], index: 10, kind: input, shape index: {}]   ;;  %s9579_s11 = inlined_call_operand.hbm [shape: f32[2,1,128], index: 11, kind: output, shape index: {}]  }
   0x1   :  { %18 = vsyncpa [#allocation4 + $0x1], 0  ;;  %s7344_s17 = smov 0   ;;  %s7346_s18 = smov 0  }
   0x2   :  { %s7348_s19 = smov 0   ;;  %s7350_s20 = smov 0  }
   0x3 LB: > { %9596 = sst [smem:[#allocation6_spill]] %s7274_s19  ;;  %s7365_s21 = sadd.s32 4294967295, %s7278_s20   ;;  %s7278_s20 = sphi %s7350_s20, %s9697_s20   ;;  %s7274_s19 = sphi %s7348_s19, %s9694_s19   ;;  %s7270_s18 = sphi %s7346_s18, %s9696_s18   ;;  %s7266_s17 = sphi %s7344_s17, %s9695_s17  }
   0x4   : > { %s5478_s22 = sadd.s32 4294967294, %s7278_s20   ;;  %s7369_s23 = sadd.s32 1, %s7278_s20  }
   0x5   : > { %s267_s24 = sadd.s32 1, %s7274_s19  ;;  %s264_s25 = ssub.s32 %s7278_s20, %s7369_s23 }
   0x6   : > { %p277_p0 = scmp.ne.s32.totalorder %s7274_s19, %s7270_s18  ;;  %p265_p1 = scmp.eq.s32.totalorder %s264_s25, 0 }
   0x7   : > { %p278_p2 = scmp.eq.s32.totalorder %s7365_s21, 1  ;;  %p283_p3 = scmp.ne.s32.totalorder %s7270_s18, %s7266_s17 }
   0x8   : > { %p284_p4 = scmp.eq.s32.totalorder %s5478_s22, 1  ;;  %p5481_p7 = scmp.ge.s32.totalorder %s7278_s20, 1 }
   0x9   : > { %s7380_s26 = scalar_select %p265_p1, %s7274_s19, %s267_s24  }
   0xa   : > { %p7382_p5 = por %p278_p2, %p277_p0  ;;  %p7386_p6 = por %p284_p4, %p283_p3 }
   0xb   : > { %9597 = sst [smem:[#allocation7_spill]] %s7380_s26  ;;  %p340_p8 = scmp.lt.s32.totalorder %s7278_s20, 3 }
   0xd   : > { %p341_p9 = pnand %p5481_p7, %p340_p8 }
   0xe   : > { %p379_p10 = scmp.lt.s32.totalorder (!%p341_p9), %s7365_s21, 1  ;;  %s6439_s24 = sshll.u32 (!%p341_p9), %s7365_s21, 4 }
   0xf   : > { %344 = sbr.rel (%p341_p9) target bundleno = 1532 (0x5fc), region = 64  ;;  %s9527_s12 = scalar_lea.hbm (!%p341_p9), %s9579_s11, %s6439_s24 }
  0x14   : > { %v6547_v0 = vld [vmem:[%s9569_s1 + $0x54] ss:$8 sps:$4 sm:$0xff]   ;;  %v7280_v2 = vmov 0   ;;  %v6551_v3 = vld [vmem:[%s9569_s1 + $0x50] ss:$8 sps:$4 sm:$0xff]   ;;  %s380_s16 = scalar_select %p379_p10, %s7365_s21, 1 }
  0x15   : > { %v6549_v1 = vld [vmem:[%s9569_s1 + $0xb4] ss:$8 sps:$4 sm:$0xff]   ;;  %510 = vmatprep.mubr.bf16.mxu0 %v7280_v2  ;;  %644 = vmatprep.mubr.bf16.mxu1 %v7280_v2  ;;  %v6552_v4 = vld [vmem:[%s9569_s1 + $0xb0] ss:$8 sps:$4 sm:$0xff]   ;;  %v6553_v5 = vld [vmem:[%s9569_s1 + $0x44] ss:$8 sps:$4 sm:$0xff]  }
  0x16   : > { %482 = vmatprep.subr.bf16.mxu0 %v6547_v0  ;;  %616 = vmatprep.subr.bf16.mxu1 %v6549_v1  ;;  %v6555_v6 = vld [vmem:[%s9569_s1 + $0xa4] ss:$8 sps:$4 sm:$0xff]   ;;  %v6557_v7 = vld [vmem:[%s9569_s1 + $0x40] ss:$8 sps:$4 sm:$0xff]   ;;  %v6559_v9 = vld [vmem:[%s9569_s1 + $0x34] ss:$8 sps:$4 sm:$0xff]  }
  0x17   : > { %483 = vmatpush1.bf16.msra.mxu0 %v6551_v3  ;;  %617 = vmatpush1.bf16.msra.mxu1 %v6552_v4  ;;  %v6558_v8 = vld [vmem:[%s9569_s1 + $0xa0] ss:$8 sps:$4 sm:$0xff]   ;;  %v6561_v10 = vld [vmem:[%s9569_s1 + $0x94] ss:$8 sps:$4 sm:$0xff]   ;;  %v6563_v11 = vld [vmem:[%s9569_s1 + $0x30] ss:$8 sps:$4 sm:$0xff]  }
  0x18   : > { %484 = vmatprep.subr.bf16.mxu0 %v6553_v5  ;;  %618 = vmatprep.subr.bf16.mxu1 %v6555_v6  ;;  %v6564_v12 = vld [vmem:[%s9569_s1 + $0x90] ss:$8 sps:$4 sm:$0xff]   ;;  %v6565_v13 = vld [vmem:[%s9569_s1 + $0x24] ss:$8 sps:$4 sm:$0xff]   ;;  %v6569_v15 = vld [vmem:[%s9569_s1 + $0x20] ss:$8 sps:$4 sm:$0xff]  }
  0x19   : > { %v6567_v14 = vld [vmem:[%s9569_s1 + $0x84] ss:$8 sps:$4 sm:$0xff]   ;;  %v6570_v16 = vld [vmem:[%s9569_s1 + $0x80] ss:$8 sps:$4 sm:$0xff]   ;;  %v6571_v17 = vld [vmem:[%s9569_s1 + $0x14] ss:$8 sps:$4 sm:$0xff]  }
  0x1a   : > { %s6442_s15 = sshll.u32 %s380_s16, 4  ;;  %v6573_v18 = vld [vmem:[%s9569_s1 + $0x74] ss:$8 sps:$4 sm:$0xff]   ;;  %v6575_v19 = vld [vmem:[%s9569_s1 + $0x10] ss:$8 sps:$4 sm:$0xff]   ;;  %vm9584_vm0 = vcmask 785408  }
  0x1b   : > { %485 = vmatpush1.bf16.msra.mxu0 %v6557_v7  ;;  %619 = vmatpush1.bf16.msra.mxu1 %v6558_v8  ;;  %v6576_v20 = vld [vmem:[%s9569_s1 + $0x70] ss:$8 sps:$4 sm:$0xff]   ;;  %s7459_s13 = scalar_lea.vmem %s9568_s0, %s6442_s15  ;;  %v6577_v21 = vld [vmem:[%s9569_s1 + $0x4] ss:$8 sps:$4 sm:$0xff]   ;;  %v6581_v23 = vld [vmem:[%s9569_s1] ss:$8 sps:$4 sm:$0xff]  }
  0x1c   : > { %486 = vmatprep.subr.bf16.mxu0 %v6559_v9  ;;  %620 = vmatprep.subr.bf16.mxu1 %v6561_v10  ;;  %v6579_v22 = vld [vmem:[%s9569_s1 + $0x64] ss:$8 sps:$4 sm:$0xff]   ;;  %v6582_v24 = vld [vmem:[%s9569_s1 + $0x60] ss:$8 sps:$4 sm:$0xff]   ;;  %v6586_v25 = vld [vmem:[%s9569_s1 + $0x114] ss:$8 sps:$4 sm:$0xff]  }
  0x1d   : > { %v6589_v26 = vld [vmem:[%s9569_s1 + $0x174] ss:$8 sps:$4 sm:$0xff]   ;;  %v7480_v27 = vld [vmem:[%s7459_s13] sm:$0xff]   ;;  %v6584_v28 = vld [vmem:[%s9569_s1 + $0x110] ss:$8 sps:$4 sm:$0xff]   ;;  %vm9585_vm1 = vcmask 1043456  }
  0x1e   : > { %v6587_v29 = vld [vmem:[%s9569_s1 + $0x170] ss:$8 sps:$4 sm:$0xff]   ;;  %v6592_v30 = vld [vmem:[%s9569_s1 + $0x104] ss:$8 sps:$4 sm:$0xff]   ;;  %v6590_v32 = vld [vmem:[%s9569_s1 + $0x100] ss:$8 sps:$4 sm:$0xff]  }
  0x1f   : > { %487 = vmatpush1.bf16.msra.mxu0 %v6563_v11  ;;  %621 = vmatpush1.bf16.msra.mxu1 %v6564_v12  ;;  %v6595_v31 = vld [vmem:[%s9569_s1 + $0x164] ss:$8 sps:$4 sm:$0xff]   ;;  %v6593_v33 = vld [vmem:[%s9569_s1 + $0x160] ss:$8 sps:$4 sm:$0xff]   ;;  %v6599_v34 = vld [vmem:[%s9569_s1 + $0xf4] ss:$8 sps:$4 sm:$0xff]  }
  0x20   : > { %488 = vmatprep.subr.bf16.mxu0 %v6565_v13  ;;  %622 = vmatprep.subr.bf16.mxu1 %v6567_v14  ;;  %v6602_v35 = vld [vmem:[%s9569_s1 + $0x154] ss:$8 sps:$4 sm:$0xff]   ;;  %v7513_v36 = vld [vmem:[%s7459_s13 + $0x8] sm:$0xff]   ;;  %v6597_v37 = vld [vmem:[%s9569_s1 + $0xf0] ss:$8 sps:$4 sm:$0xff]   ;;  %vm2036_vm2 = vcmask 785412  }
  0x21   : > { %v6600_v38 = vld [vmem:[%s9569_s1 + $0x150] ss:$8 sps:$4 sm:$0xff]   ;;  %v6605_v39 = vld [vmem:[%s9569_s1 + $0xe4] ss:$8 sps:$4 sm:$0xff]   ;;  %v6603_v41 = vld [vmem:[%s9569_s1 + $0xe0] ss:$8 sps:$4 sm:$0xff]  }
  0x22   : > { %v6608_v40 = vld [vmem:[%s9569_s1 + $0x144] ss:$8 sps:$4 sm:$0xff]   ;;  %v6606_v42 = vld [vmem:[%s9569_s1 + $0x140] ss:$8 sps:$4 sm:$0xff]   ;;  %v6611_v43 = vld [vmem:[%s9569_s1 + $0xd4] ss:$8 sps:$4 sm:$0xff]  }
  0x23   : > { %489 = vmatpush1.bf16.msra.mxu0 %v6569_v15  ;;  %623 = vmatpush1.bf16.msra.mxu1 %v6570_v16  ;;  %v6614_v44 = vld [vmem:[%s9569_s1 + $0x134] ss:$8 sps:$4 sm:$0xff]   ;;  %v6609_v45 = vld [vmem:[%s9569_s1 + $0xd0] ss:$8 sps:$4 sm:$0xff]   ;;  %v6617_v47 = vld [vmem:[%s9569_s1 + $0xc4] ss:$8 sps:$4 sm:$0xff]  }
  0x24   : > { %490 = vmatprep.subr.bf16.mxu0 %v6571_v17  ;;  %624 = vmatprep.subr.bf16.mxu1 %v6573_v18  ;;  %v6612_v46 = vld [vmem:[%s9569_s1 + $0x130] ss:$8 sps:$4 sm:$0xff]   ;;  %v6620_v48 = vld [vmem:[%s9569_s1 + $0x124] ss:$8 sps:$4 sm:$0xff]   ;;  %v6615_v49 = vld [vmem:[%s9569_s1 + $0xc0] ss:$8 sps:$4 sm:$0xff]  }
  0x25   : > { %v6618_v50 = vld [vmem:[%s9569_s1 + $0x120] ss:$8 sps:$4 sm:$0xff]   ;;  %v6623_v51 = vld [vmem:[%s9569_s1 + $0x1d4] ss:$8 sps:$4 sm:$0xff]   ;;  %v6621_v53 = vld [vmem:[%s9569_s1 + $0x1d0] ss:$8 sps:$4 sm:$0xff]  }
  0x26   : > { %v6626_v52 = vld [vmem:[%s9569_s1 + $0x234] ss:$8 sps:$4 sm:$0xff]   ;;  %v6624_v54 = vld [vmem:[%s9569_s1 + $0x230] ss:$8 sps:$4 sm:$0xff]   ;;  %v6629_v55 = vld [vmem:[%s9569_s1 + $0x1c4] ss:$8 sps:$4 sm:$0xff]  }
  0x27   : > { %491 = vmatpush1.bf16.msra.mxu0 %v6575_v19  ;;  %625 = vmatpush1.bf16.msra.mxu1 %v6576_v20  ;;  %v6632_v56 = vld [vmem:[%s9569_s1 + $0x224] ss:$8 sps:$4 sm:$0xff]   ;;  %v6627_v57 = vld [vmem:[%s9569_s1 + $0x1c0] ss:$8 sps:$4 sm:$0xff]   ;;  %v6635_v59 = vld [vmem:[%s9569_s1 + $0x1b4] ss:$8 sps:$4 sm:$0xff]  }
  0x28   : > { %492 = vmatprep.subr.bf16.mxu0 %v6577_v21  ;;  %626 = vmatprep.subr.bf16.mxu1 %v6579_v22  ;;  %v6630_v58 = vld [vmem:[%s9569_s1 + $0x220] ss:$8 sps:$4 sm:$0xff]   ;;  %v6638_v60 = vld [vmem:[%s9569_s1 + $0x214] ss:$8 sps:$4 sm:$0xff]   ;;  %v6633_v61 = vld [vmem:[%s9569_s1 + $0x1b0] ss:$8 sps:$4 sm:$0xff]  }
  0x29   : > { %v6636_v62 = vld [vmem:[%s9569_s1 + $0x210] ss:$8 sps:$4 sm:$0xff]   ;;  %v6641_v63 = vld [vmem:[%s9569_s1 + $0x1a4] ss:$8 sps:$4 sm:$0xff]   ;;  %v6639_v1 = vld [vmem:[%s9569_s1 + $0x1a0] ss:$8 sps:$4 sm:$0xff]  }
  0x2a   : > { %v6644_v0 = vld [vmem:[%s9569_s1 + $0x204] ss:$8 sps:$4 sm:$0xff]   ;;  %v6642_v3 = vld [vmem:[%s9569_s1 + $0x200] ss:$8 sps:$4 sm:$0xff]   ;;  %v6647_v4 = vld [vmem:[%s9569_s1 + $0x194] ss:$8 sps:$4 sm:$0xff]  }
  0x2b   : > { %493 = vmatpush1.bf16.msra.mxu0 %v6581_v23  ;;  %627 = vmatpush1.bf16.msra.mxu1 %v6582_v24  ;;  %v6650_v5 = vld [vmem:[%s9569_s1 + $0x1f4] ss:$8 sps:$4 sm:$0xff]   ;;  %v6645_v6 = vld [vmem:[%s9569_s1 + $0x190] ss:$8 sps:$4 sm:$0xff]   ;;  %v6653_v8 = vld [vmem:[%s9569_s1 + $0x184] ss:$8 sps:$4 sm:$0xff]  }
  0x2c   : > { %781 = vmatprep.subr.bf16.mxu0 %v6586_v25  ;;  %946 = vmatprep.subr.bf16.mxu1 %v6589_v26  ;;  %v6648_v7 = vld [vmem:[%s9569_s1 + $0x1f0] ss:$8 sps:$4 sm:$0xff]   ;;  %v6656_v9 = vld [vmem:[%s9569_s1 + $0x1e4] ss:$8 sps:$4 sm:$0xff]   ;;  %v6651_v10 = vld [vmem:[%s9569_s1 + $0x180] ss:$8 sps:$4 sm:$0xff]  }
  0x2d   : > { %v6654_v11 = vld [vmem:[%s9569_s1 + $0x1e0] ss:$8 sps:$4 sm:$0xff]   ;;  %v6659_v12 = vld [vmem:[%s9569_s1 + $0x294] ss:$8 sps:$4 sm:$0xff]   ;;  %v6657_v14 = vld [vmem:[%s9569_s1 + $0x290] ss:$8 sps:$4 sm:$0xff]  }
  0x2e   : > { %5498 = vmatmul.mubr.msk.bf16.vlgmr.msra.gmra.mxu0 %vm9584_vm0, %v7480_v27  ;;  %5524 = vmatmul.mubr.msk.bf16.vlgmr.msra.gmra.mxu1 %vm9584_vm0, %v7480_v27  ;;  %v6662_v13 = vld [vmem:[%s9569_s1 + $0x2f4] ss:$8 sps:$4 sm:$0xff]   ;;  %v6660_v15 = vld [vmem:[%s9569_s1 + $0x2f0] ss:$8 sps:$4 sm:$0xff]   ;;  %v6665_v16 = vld [vmem:[%s9569_s1 + $0x284] ss:$8 sps:$4 sm:$0xff]  }
  0x2f   : > { %782 = vmatpush1.bf16.msra.mxu0 %v6584_v28  ;;  %947 = vmatpush1.bf16.msra.mxu1 %v6587_v29  ;;  %v6668_v17 = vld [vmem:[%s9569_s1 + $0x2e4] ss:$8 sps:$4 sm:$0xff]   ;;  %v6663_v18 = vld [vmem:[%s9569_s1 + $0x280] ss:$8 sps:$4 sm:$0xff]   ;;  %v6671_v20 = vld [vmem:[%s9569_s1 + $0x274] ss:$8 sps:$4 sm:$0xff]  }
  0x30   : > { %783 = vmatprep.subr.bf16.mxu0 %v6592_v30  ;;  %948 = vmatprep.subr.bf16.mxu1 %v6595_v31  ;;  %v6666_v19 = vld [vmem:[%s9569_s1 + $0x2e0] ss:$8 sps:$4 sm:$0xff]   ;;  %v6674_v21 = vld [vmem:[%s9569_s1 + $0x2d4] ss:$8 sps:$4 sm:$0xff]   ;;  %v6669_v22 = vld [vmem:[%s9569_s1 + $0x270] ss:$8 sps:$4 sm:$0xff]  }
  0x31   : > { %654 = vmatprep.mubr.bf16.mxu1 %v7280_v2  ;;  %520 = vmatprep.mubr.bf16.mxu0 %v7280_v2  ;;  %v6672_v23 = vld [vmem:[%s9569_s1 + $0x2d0] ss:$8 sps:$4 sm:$0xff]   ;;  %v6677_v24 = vld [vmem:[%s9569_s1 + $0x264] ss:$8 sps:$4 sm:$0xff]   ;;  %v6675_v26 = vld [vmem:[%s9569_s1 + $0x260] ss:$8 sps:$4 sm:$0xff]  }
  0x32   : > { %v6680_v25 = vld [vmem:[%s9569_s1 + $0x2c4] ss:$8 sps:$4 sm:$0xff]   ;;  %v6678_v28 = vld [vmem:[%s9569_s1 + $0x2c0] ss:$8 sps:$4 sm:$0xff]   ;;  %v6683_v29 = vld [vmem:[%s9569_s1 + $0x254] ss:$8 sps:$4 sm:$0xff]  }
  0x33   : > { %784 = vmatpush1.bf16.msra.mxu0 %v6590_v32  ;;  %949 = vmatpush1.bf16.msra.mxu1 %v6593_v33  ;;  %v6686_v30 = vld [vmem:[%s9569_s1 + $0x2b4] ss:$8 sps:$4 sm:$0xff]   ;;  %v6681_v31 = vld [vmem:[%s9569_s1 + $0x250] ss:$8 sps:$4 sm:$0xff]   ;;  %v6689_v33 = vld [vmem:[%s9569_s1 + $0x244] ss:$8 sps:$4 sm:$0xff]  }
  0x34   : > { %785 = vmatprep.subr.bf16.mxu0 %v6599_v34  ;;  %950 = vmatprep.subr.bf16.mxu1 %v6602_v35  ;;  %v6684_v32 = vld [vmem:[%s9569_s1 + $0x2b0] ss:$8 sps:$4 sm:$0xff]   ;;  %v6692_v34 = vld [vmem:[%s9569_s1 + $0x2a4] ss:$8 sps:$4 sm:$0xff]   ;;  %v6687_v35 = vld [vmem:[%s9569_s1 + $0x240] ss:$8 sps:$4 sm:$0xff]  }
  0x35   : > { %vm2037_vm3 = vmor %vm2036_vm2, %vm9585_vm1  ;;  %vm9589_vm4 = vcmask 1046528   ;;  %vm9583_vm5 = vcmask 1045504   ;;  %vm9586_vm6 = vcmask 1044480   ;;  %vm2063_vm7 = vcmask 1040384   ;;  %s377_s13 = sand.u32 1, %s7270_s18   ;;  %s7283_s21 = smov [#allocation3]  }
  0x36   : > { %5525 = vmatmul.mubr.msk.bf16.gmra.mxu1 %vm9584_vm0, %v7513_v36  ;;  %5499 = vmatmul.mubr.msk.bf16.gmra.mxu0 %vm9584_vm0, %v7513_v36  ;;  %2038 = vst.msk [vmem:[#allocation2] sm:$0xff] %vm2037_vm3, %v7280_v2  ;;  %2039 = vst.msk [vmem:[#allocation2 + $0x8] sm:$0xff] %vm2037_vm3, %v7280_v2  ;;  %vm2064_vm8 = vsmask.f32 256  ;;  %vm2066_vm9 = vcmask 782340   ;;  %vm9587_vm11 = vcmask 1041409  }
  0x37   : > { %786 = vmatpush1.bf16.msra.mxu0 %v6597_v37  ;;  %951 = vmatpush1.bf16.msra.mxu1 %v6600_v38  ;;  %v6690_v37 = vld [vmem:[%s9569_s1 + $0x2a0] ss:$8 sps:$4 sm:$0xff]   ;;  %v6695_v38 = vld [vmem:[%s9569_s1 + $0x354] ss:$8 sps:$4 sm:$0xff]   ;;  %vm2067_vm10 = vsmask.f32 4352 }
  0x38   : > { %787 = vmatprep.subr.bf16.mxu0 %v6605_v39  ;;  %952 = vmatprep.subr.bf16.mxu1 %v6608_v40  ;;  %v6698_v39 = vld [vmem:[%s9569_s1 + $0x3b4] ss:$8 sps:$4 sm:$0xff]   ;;  %v6693_v40 = vld [vmem:[%s9569_s1 + $0x350] ss:$8 sps:$4 sm:$0xff]   ;;  %vm2091_vm12 = vsmask.f32 1280  ;;  %vm8271_vm3 = vmand %vm2066_vm9, %vm2067_vm10 }
  0x39   : > { %809 = vmatprep.mubr.bf16.mxu0 %v7280_v2  ;;  %974 = vmatprep.mubr.bf16.mxu1 %v7280_v2  ;;  %vm9588_vm13 = vcmask 783365   ;;  %vm2094_vm14 = vsmask.f32 5376  ;;  %vm2128_vm15 = vsmask.f32 6400  ;;  %vm9624_vm2 = vcmask 1043459  }
  0x3a   : > { %s378_s15 = scalar_lea.vmem [#allocation3], %s377_s13  ;;  %s5411_s16 = scalar_lea.sflag [#allocation4], %s377_s13 }
  0x3b   : > { %788 = vmatpush1.bf16.msra.mxu0 %v6603_v41  ;;  %953 = vmatpush1.bf16.msra.mxu1 %v6606_v42  ;;  %v6696_v41 = vld [vmem:[%s9569_s1 + $0x3b0] ss:$8 sps:$4 sm:$0xff]   ;;  %v6701_v42 = vld [vmem:[%s9569_s1 + $0x344] ss:$8 sps:$4 sm:$0xff]   ;;  %s5423_s25 = sshll.u32 %s378_s15, 4  ;;  %s7222_s26 = sshll.u32 %s7283_s21, 4  ;;  %s9529_s25 = int_to_ptr.vmem [resolvable:$true] %s5423_s25  ;;  %s7223_s26 = int_to_ptr.vmem [resolvable:$false] %s7222_s26 }
  0x3c   : > { %789 = vmatprep.subr.bf16.mxu0 %v6611_v43  ;;  %954 = vmatprep.subr.bf16.mxu1 %v6614_v44  ;;  %v6704_v43 = vld [vmem:[%s9569_s1 + $0x3a4] ss:$8 sps:$4 sm:$0xff]   ;;  %v6699_v44 = vld [vmem:[%s9569_s1 + $0x340] ss:$8 sps:$4 sm:$0xff]   ;;  %s7218_s14 = scalar_lea.vmem %s9529_s25, 16  ;;  %s7224_s22 = scalar_lea.vmem %s7223_s26, 32 }
  0x3d   : > { %p7219_p11 = scmp.ne.s32.totalorder %s9529_s25, %s7218_s14  ;;  %p7225_p0 = scmp.lt.s32.totalorder %s9529_s25, %s7223_s26 }
  0x3e   : > { %p7226_p1 = scmp.lt.s32.totalorder %s7224_s22, %s7218_s14 }
  0x3f   : > { %790 = vmatpush1.bf16.msra.mxu0 %v6609_v45  ;;  %955 = vmatpush1.bf16.msra.mxu1 %v6612_v46  ;;  %v6702_v45 = vld [vmem:[%s9569_s1 + $0x3a0] ss:$8 sps:$4 sm:$0xff]   ;;  %v6707_v46 = vld [vmem:[%s9569_s1 + $0x334] ss:$8 sps:$4 sm:$0xff]   ;;  %p7220_p12 = pnand %p7219_p11, %p7382_p5 }
  0x40   : > { %791 = vmatprep.subr.bf16.mxu0 %v6617_v47  ;;  %956 = vmatprep.subr.bf16.mxu1 %v6620_v48  ;;  %v6710_v47 = vld [vmem:[%s9569_s1 + $0x394] ss:$8 sps:$4 sm:$0xff]   ;;  %v6705_v48 = vld [vmem:[%s9569_s1 + $0x330] ss:$8 sps:$4 sm:$0xff]   ;;  %p7227_p2 = por %p7226_p1, %p7225_p0 }
  0x41   : > { %p7221_p13 = pneg %p7220_p12 }
  0x43   : > { %792 = vmatpush1.bf16.msra.mxu0 %v6615_v49  ;;  %957 = vmatpush1.bf16.msra.mxu1 %v6618_v50  ;;  %v6708_v49 = vld [vmem:[%s9569_s1 + $0x390] ss:$8 sps:$4 sm:$0xff]   ;;  %v6713_v50 = vld [vmem:[%s9569_s1 + $0x324] ss:$8 sps:$4 sm:$0xff]   ;;  %p7228_p3 = pnand %p7227_p2, %p7221_p13 }
  0x44   : > { %1111 = vmatprep.subr.bf16.mxu0 %v6623_v51  ;;  %1276 = vmatprep.subr.bf16.mxu1 %v6626_v52  ;;  %v6716_v51 = vld [vmem:[%s9569_s1 + $0x384] ss:$8 sps:$4 sm:$0xff]   ;;  %v6711_v52 = vld [vmem:[%s9569_s1 + $0x320] ss:$8 sps:$4 sm:$0xff]  }
  0x46   : > { %5550 = vmatmul.mubr.msk.bf16.vlgmr.msra.gmra.mxu0 %vm9584_vm0, %v7480_v27  ;;  %5576 = vmatmul.mubr.msk.bf16.vlgmr.msra.gmra.mxu1 %vm9584_vm0, %v7480_v27 }
  0x47   : > { %1112 = vmatpush1.bf16.msra.mxu0 %v6621_v53  ;;  %1277 = vmatpush1.bf16.msra.mxu1 %v6624_v54  ;;  %v6714_v53 = vld [vmem:[%s9569_s1 + $0x380] ss:$8 sps:$4 sm:$0xff]   ;;  %v6719_v54 = vld [vmem:[%s9569_s1 + $0x314] ss:$8 sps:$4 sm:$0xff]  }
  0x48   : > { %1113 = vmatprep.subr.bf16.mxu0 %v6629_v55  ;;  %1278 = vmatprep.subr.bf16.mxu1 %v6632_v56  ;;  %v6722_v55 = vld [vmem:[%s9569_s1 + $0x374] ss:$8 sps:$4 sm:$0xff]   ;;  %v6717_v56 = vld [vmem:[%s9569_s1 + $0x310] ss:$8 sps:$4 sm:$0xff]  }
  0x49   : > { %819 = vmatprep.mubr.bf16.mxu0 %v7280_v2  ;;  %984 = vmatprep.mubr.bf16.mxu1 %v7280_v2 }
  0x4b   : > { %1114 = vmatpush1.bf16.msra.mxu0 %v6627_v57  ;;  %1279 = vmatpush1.bf16.msra.mxu1 %v6630_v58  ;;  %v6720_v57 = vld [vmem:[%s9569_s1 + $0x370] ss:$8 sps:$4 sm:$0xff]   ;;  %v6725_v58 = vld [vmem:[%s9569_s1 + $0x304] ss:$8 sps:$4 sm:$0xff]  }
  0x4c   : > { %1115 = vmatprep.subr.bf16.mxu0 %v6635_v59  ;;  %1280 = vmatprep.subr.bf16.mxu1 %v6638_v60  ;;  %v6728_v59 = vld [vmem:[%s9569_s1 + $0x364] ss:$8 sps:$4 sm:$0xff]   ;;  %v6723_v60 = vld [vmem:[%s9569_s1 + $0x300] ss:$8 sps:$4 sm:$0xff]  }
  0x4e   : > { %5551 = vmatmul.mubr.msk.bf16.gmra.mxu0 %vm9584_vm0, %v7513_v36  ;;  %5577 = vmatmul.mubr.msk.bf16.gmra.mxu1 %vm9584_vm0, %v7513_v36 }
  0x4f   : > { %1116 = vmatpush1.bf16.msra.mxu0 %v6633_v61  ;;  %1281 = vmatpush1.bf16.msra.mxu1 %v6636_v62  ;;  %v6726_v61 = vld [vmem:[%s9569_s1 + $0x360] ss:$8 sps:$4 sm:$0xff]   ;;  %v6731_v62 = vld [vmem:[%s9571_s3 + $0x74] ss:$8 sps:$4 sm:$0xff]  }
  0x50   : > { %1117 = vmatprep.subr.bf16.mxu0 %v6641_v63  ;;  %1282 = vmatprep.subr.bf16.mxu1 %v6644_v0  ;;  %v6734_v63 = vld [vmem:[%s9571_s3 + $0x154] ss:$8 sps:$4 sm:$0xff]   ;;  %v6732_v0 = vld [vmem:[%s9571_s3 + $0x150] ss:$8 sps:$4 sm:$0xff]  }
  0x51   : > { %1139 = vmatprep.mubr.bf16.mxu0 %v7280_v2  ;;  %1304 = vmatprep.mubr.bf16.mxu1 %v7280_v2 }
  0x53   : > { %1118 = vmatpush1.bf16.msra.mxu0 %v6639_v1  ;;  %1283 = vmatpush1.bf16.msra.mxu1 %v6642_v3  ;;  %v6740_v1 = vld [vmem:[%s9571_s3 + $0x144] ss:$8 sps:$4 sm:$0xff]   ;;  %v6735_v3 = vld [vmem:[%s9571_s3 + $0x60] ss:$8 sps:$4 sm:$0xff]  }
  0x54   : > { %1119 = vmatprep.subr.bf16.mxu0 %v6647_v4  ;;  %1284 = vmatprep.subr.bf16.mxu1 %v6650_v5  ;;  %v6738_v4 = vld [vmem:[%s9571_s3 + $0x140] ss:$8 sps:$4 sm:$0xff]   ;;  %v6743_v5 = vld [vmem:[%s9571_s3 + $0x54] ss:$8 sps:$4 sm:$0xff]  }
  0x57   : > { %1120 = vmatpush1.bf16.msra.mxu0 %v6645_v6  ;;  %1285 = vmatpush1.bf16.msra.mxu1 %v6648_v7  ;;  %v6746_v6 = vld [vmem:[%s9571_s3 + $0x134] ss:$8 sps:$4 sm:$0xff]   ;;  %v6741_v7 = vld [vmem:[%s9571_s3 + $0x50] ss:$8 sps:$4 sm:$0xff]  }
  0x58   : > { %1121 = vmatprep.subr.bf16.mxu0 %v6653_v8  ;;  %1286 = vmatprep.subr.bf16.mxu1 %v6656_v9  ;;  %v6744_v8 = vld [vmem:[%s9571_s3 + $0x130] ss:$8 sps:$4 sm:$0xff]   ;;  %v6749_v9 = vld [vmem:[%s9571_s3 + $0x44] ss:$8 sps:$4 sm:$0xff]  }
  0x5b   : > { %1122 = vmatpush1.bf16.msra.mxu0 %v6651_v10  ;;  %1287 = vmatpush1.bf16.msra.mxu1 %v6654_v11  ;;  %v6752_v10 = vld [vmem:[%s9571_s3 + $0x124] ss:$8 sps:$4 sm:$0xff]   ;;  %v6747_v11 = vld [vmem:[%s9571_s3 + $0x40] ss:$8 sps:$4 sm:$0xff]  }
  0x5c   : > { %1410 = vmatprep.subr.bf16.mxu0 %v6659_v12  ;;  %1574 = vmatprep.subr.bf16.mxu1 %v6662_v13  ;;  %v6750_v12 = vld [vmem:[%s9571_s3 + $0x120] ss:$8 sps:$4 sm:$0xff]   ;;  %v6755_v13 = vld [vmem:[%s9571_s3 + $0x34] ss:$8 sps:$4 sm:$0xff]  }
  0x5e   : > { %5602 = vmatmul.mubr.msk.bf16.vlgmr.msra.gmra.mxu0 %vm9584_vm0, %v7480_v27  ;;  %5628 = vmatmul.mubr.msk.bf16.vlgmr.msra.gmra.mxu1 %vm9584_vm0, %v7480_v27 }
  0x5f   : > { %1411 = vmatpush1.bf16.msra.mxu0 %v6657_v14  ;;  %1575 = vmatpush1.bf16.msra.mxu1 %v6660_v15  ;;  %v6758_v14 = vld [vmem:[%s9571_s3 + $0x114] ss:$8 sps:$4 sm:$0xff]   ;;  %v6753_v15 = vld [vmem:[%s9571_s3 + $0x30] ss:$8 sps:$4 sm:$0xff]  }
  0x60   : > { %1412 = vmatprep.subr.bf16.mxu0 %v6665_v16  ;;  %1576 = vmatprep.subr.bf16.mxu1 %v6668_v17  ;;  %v6756_v16 = vld [vmem:[%s9571_s3 + $0x110] ss:$8 sps:$4 sm:$0xff]   ;;  %v6761_v17 = vld [vmem:[%s9571_s3 + $0x24] ss:$8 sps:$4 sm:$0xff]  }
  0x61   : > { %1149 = vmatprep.mubr.bf16.mxu0 %v7280_v2  ;;  %1314 = vmatprep.mubr.bf16.mxu1 %v7280_v2 }
  0x63   : > { %1413 = vmatpush1.bf16.msra.mxu0 %v6663_v18  ;;  %1577 = vmatpush1.bf16.msra.mxu1 %v6666_v19  ;;  %v6764_v18 = vld [vmem:[%s9571_s3 + $0x104] ss:$8 sps:$4 sm:$0xff]   ;;  %v6759_v19 = vld [vmem:[%s9571_s3 + $0x20] ss:$8 sps:$4 sm:$0xff]  }
  0x64   : > { %1414 = vmatprep.subr.bf16.mxu0 %v6671_v20  ;;  %1578 = vmatprep.subr.bf16.mxu1 %v6674_v21  ;;  %v6762_v20 = vld [vmem:[%s9571_s3 + $0x100] ss:$8 sps:$4 sm:$0xff]   ;;  %v6767_v21 = vld [vmem:[%s9571_s3 + $0x14] ss:$8 sps:$4 sm:$0xff]  }
  0x66   : > { %5603 = vmatmul.mubr.msk.bf16.gmra.mxu0 %vm9584_vm0, %v7513_v36  ;;  %5629 = vmatmul.mubr.msk.bf16.gmra.mxu1 %vm9584_vm0, %v7513_v36 }
  0x67   : > { %1415 = vmatpush1.bf16.msra.mxu0 %v6669_v22  ;;  %1579 = vmatpush1.bf16.msra.mxu1 %v6672_v23  ;;  %v6770_v22 = vld [vmem:[%s9571_s3 + $0xf4] ss:$8 sps:$4 sm:$0xff]   ;;  %v6765_v23 = vld [vmem:[%s9571_s3 + $0x10] ss:$8 sps:$4 sm:$0xff]  }
  0x68   : > { %1416 = vmatprep.subr.bf16.mxu0 %v6677_v24  ;;  %1580 = vmatprep.subr.bf16.mxu1 %v6680_v25  ;;  %v6768_v24 = vld [vmem:[%s9571_s3 + $0xf0] ss:$8 sps:$4 sm:$0xff]   ;;  %v6773_v25 = vld [vmem:[%s9571_s3 + $0x4] ss:$8 sps:$4 sm:$0xff]  }
  0x69   : > { %1438 = vmatprep.mubr.bf16.mxu0 %v7280_v2  ;;  %1602 = vmatprep.mubr.bf16.mxu1 %v7280_v2 }
  0x6b   : > { %1417 = vmatpush1.bf16.msra.mxu0 %v6675_v26  ;;  %1581 = vmatpush1.bf16.msra.mxu1 %v6678_v28  ;;  %v6776_v26 = vld [vmem:[%s9571_s3 + $0xe4] ss:$8 sps:$4 sm:$0xff]   ;;  %v6771_v28 = vld [vmem:[%s9571_s3] ss:$8 sps:$4 sm:$0xff]  }
  0x6c   : > { %1418 = vmatprep.subr.bf16.mxu0 %v6683_v29  ;;  %1582 = vmatprep.subr.bf16.mxu1 %v6686_v30  ;;  %v6774_v29 = vld [vmem:[%s9571_s3 + $0xe0] ss:$8 sps:$4 sm:$0xff]  }
  0x6f   : > { %1419 = vmatpush1.bf16.msra.mxu0 %v6681_v31  ;;  %1583 = vmatpush1.bf16.msra.mxu1 %v6684_v32  ;;  %v6779_v32 = vld [vmem:[%s9571_s3 + $0xd4] ss:$8 sps:$4 sm:$0xff]  }
  0x70   : > { %1420 = vmatprep.subr.bf16.mxu0 %v6689_v33  ;;  %1584 = vmatprep.subr.bf16.mxu1 %v6692_v34 }
  0x73   : > { %1421 = vmatpush1.bf16.msra.mxu0 %v6687_v35  ;;  %1585 = vmatpush1.bf16.msra.mxu1 %v6690_v37 }
  0x74   : > { %1738 = vmatprep.subr.bf16.mxu0 %v6695_v38  ;;  %1902 = vmatprep.subr.bf16.mxu1 %v6698_v39 }
  0x76   : > { %5654 = vmatmul.mubr.msk.bf16.vlgmr.msra.gmra.mxu0 %vm9584_vm0, %v7480_v27  ;;  %5680 = vmatmul.mubr.msk.bf16.vlgmr.msra.gmra.mxu1 %vm9584_vm0, %v7480_v27 }
  0x77   : > { %1739 = vmatpush1.bf16.msra.mxu0 %v6693_v40  ;;  %1903 = vmatpush1.bf16.msra.mxu1 %v6696_v41 }
  0x78   : > { %1740 = vmatprep.subr.bf16.mxu0 %v6701_v42  ;;  %1904 = vmatprep.subr.bf16.mxu1 %v6704_v43 }
  0x79   : > { %1448 = vmatprep.mubr.bf16.mxu0 %v7280_v2  ;;  %1612 = vmatprep.mubr.bf16.mxu1 %v7280_v2 }
  0x7b   : > { %1741 = vmatpush1.bf16.msra.mxu0 %v6699_v44  ;;  %1905 = vmatpush1.bf16.msra.mxu1 %v6702_v45 }
  0x7c   : > { %1742 = vmatprep.subr.bf16.mxu0 %v6707_v46  ;;  %1906 = vmatprep.subr.bf16.mxu1 %v6710_v47  ;;  %v6777_v47 = vld [vmem:[%s9571_s3 + $0xd0] ss:$8 sps:$4 sm:$0xff]  }
  0x7e   : > { %5655 = vmatmul.mubr.msk.bf16.gmra.mxu0 %vm9584_vm0, %v7513_v36  ;;  %5681 = vmatmul.mubr.msk.bf16.gmra.mxu1 %vm9584_vm0, %v7513_v36 }
  0x7f   : > { %1743 = vmatpush1.bf16.msra.mxu0 %v6705_v48  ;;  %1907 = vmatpush1.bf16.msra.mxu1 %v6708_v49 }
  0x80   : > { %1744 = vmatprep.subr.bf16.mxu0 %v6713_v50  ;;  %1908 = vmatprep.subr.bf16.mxu1 %v6716_v51  ;;  %v6780_v50 = vld [vmem:[%s9571_s3 + $0x1b0] ss:$8 sps:$4 sm:$0xff]  }
  0x81   : > { %1766 = vmatprep.mubr.bf16.mxu0 %v7280_v2  ;;  %1930 = vmatprep.mubr.bf16.mxu1 %v7280_v2 }
  0x83   : > { %1745 = vmatpush1.bf16.msra.mxu0 %v6711_v52  ;;  %1909 = vmatpush1.bf16.msra.mxu1 %v6714_v53  ;;  %v6782_v53 = vld [vmem:[%s9571_s3 + $0x1b4] ss:$8 sps:$4 sm:$0xff]  }
  0x84   : > { %1746 = vmatprep.subr.bf16.mxu0 %v6719_v54  ;;  %1910 = vmatprep.subr.bf16.mxu1 %v6722_v55  ;;  %v6783_v55 = vld [vmem:[%s9571_s3 + $0xc0] ss:$8 sps:$4 sm:$0xff]  }
  0x87   : > { %1747 = vmatpush1.bf16.msra.mxu0 %v6717_v56  ;;  %1911 = vmatpush1.bf16.msra.mxu1 %v6720_v57  ;;  %v6785_v57 = vld [vmem:[%s9571_s3 + $0xc4] ss:$8 sps:$4 sm:$0xff]  }
  0x88   : > { %1748 = vmatprep.subr.bf16.mxu0 %v6725_v58  ;;  %1912 = vmatprep.subr.bf16.mxu1 %v6728_v59  ;;  %v6786_v58 = vld [vmem:[%s9571_s3 + $0x1a0] ss:$8 sps:$4 sm:$0xff]  }
  0x8b   : > { %1749 = vmatpush1.bf16.msra.mxu0 %v6723_v60  ;;  %1913 = vmatpush1.bf16.msra.mxu1 %v6726_v61  ;;  %v6788_v61 = vld [vmem:[%s9571_s3 + $0x1a4] ss:$8 sps:$4 sm:$0xff]  }
  0x8c   : > { %2410 = vmatprep.subr.bf16.mxu0 %v6731_v62  ;;  %2626 = vmatprep.subr.bf16.mxu1 %v6734_v63  ;;  %v6789_v62 = vld [vmem:[%s9571_s3 + $0xb0] ss:$8 sps:$4 sm:$0xff]   ;;  %v6791_v63 = vld [vmem:[%s9571_s3 + $0xb4] ss:$8 sps:$4 sm:$0xff]  }
  0x8e   : > { %5706 = vmatmul.mubr.msk.bf16.vlgmr.msra.gmra.mxu0 %vm9584_vm0, %v7480_v27  ;;  %5732 = vmatmul.mubr.msk.bf16.vlgmr.msra.gmra.mxu1 %vm9584_vm0, %v7480_v27  ;;  %v6729_v27 = vld [vmem:[%s9571_s3 + $0x70] ss:$8 sps:$4 sm:$0xff]  }
  0x8f   : > { %1776 = vmatprep.mubr.bf16.mxu0 %v7280_v2  ;;  %1940 = vmatprep.mubr.bf16.mxu1 %v7280_v2 }
  0x90   : > { %2411 = vmatpush1.bf16.msra.mxu0 %v6729_v27  ;;  %2627 = vmatpush1.bf16.msra.mxu1 %v6732_v0  ;;  %v6794_v27 = vld [vmem:[%s9571_s3 + $0x194] ss:$8 sps:$4 sm:$0xff]   ;;  %v6792_v0 = vld [vmem:[%s9571_s3 + $0x190] ss:$8 sps:$4 sm:$0xff]  }
  0x91   : > { %2628 = vmatprep.subr.bf16.mxu1 %v6740_v1 }
  0x94   : > { %2629 = vmatpush1.bf16.msra.mxu1 %v6738_v4  ;;  %v6800_v4 = vld [vmem:[%s9571_s3 + $0x184] ss:$8 sps:$4 sm:$0xff]  }
  0x95   : > { %2630 = vmatprep.subr.bf16.mxu1 %v6746_v6  ;;  %v6803_v6 = vld [vmem:[%s9571_s3 + $0x94] ss:$8 sps:$4 sm:$0xff]  }
  0x96   : > { %5707 = vmatmul.mubr.msk.bf16.gmra.mxu0 %vm9584_vm0, %v7513_v36  ;;  %5733 = vmatmul.mubr.msk.bf16.gmra.mxu1 %vm9584_vm0, %v7513_v36  ;;  %v6737_v36 = vld [vmem:[%s9571_s3 + $0x64] ss:$8 sps:$4 sm:$0xff]   ;;  %vm8264_vm0 = vmand %vm2063_vm7, %vm2064_vm8 }
  0x97   : > { %2412 = vmatprep.subr.bf16.mxu0 %v6737_v36  ;;  %v6797_v36 = vld [vmem:[%s9571_s3 + $0xa4] ss:$8 sps:$4 sm:$0xff]   ;;  %vm8295_vm8 = vmand %vm9588_vm13, %vm2094_vm14  ;;  %vm2103_vm13 = vsmask.f32 7942 }
  0x98   : > { %2413 = vmatpush1.bf16.msra.mxu0 %v6735_v3  ;;  %2631 = vmatpush1.bf16.msra.mxu1 %v6744_v8  ;;  %v6801_v8 = vld [vmem:[%s9571_s3 + $0x90] ss:$8 sps:$4 sm:$0xff]  }
  0x99   : > { %2414 = vmatprep.subr.bf16.mxu0 %v6743_v5  ;;  %2632 = vmatprep.subr.bf16.mxu1 %v6752_v10  ;;  %v6795_v5 = vld [vmem:[%s9571_s3 + $0xa0] ss:$8 sps:$4 sm:$0xff]  }
  0x9c   : > { %2415 = vmatpush1.bf16.msra.mxu0 %v6741_v7  ;;  %2633 = vmatpush1.bf16.msra.mxu1 %v6750_v12  ;;  %v6798_v7 = vld [vmem:[%s9571_s3 + $0x180] ss:$8 sps:$4 sm:$0xff]   ;;  %v6809_v12 = vld [vmem:[%s9571_s3 + $0x84] ss:$8 sps:$4 sm:$0xff]  }
  0x9d   : > { %2416 = vmatprep.subr.bf16.mxu0 %v6749_v9  ;;  %2634 = vmatprep.subr.bf16.mxu1 %v6758_v14 }
  0xa0   : > { %2417 = vmatpush1.bf16.msra.mxu0 %v6747_v11  ;;  %2635 = vmatpush1.bf16.msra.mxu1 %v6756_v16  ;;  %v6806_v11 = vld [vmem:[%s9571_s3 + $0x174] ss:$8 sps:$4 sm:$0xff]  }
  0xa1   : > { %2418 = vmatprep.subr.bf16.mxu0 %v6755_v13  ;;  %2636 = vmatprep.subr.bf16.mxu1 %v6764_v18  ;;  %v6812_v18 = vld [vmem:[%s9571_s3 + $0x164] ss:$8 sps:$4 sm:$0xff]  }
  0xa4   : > { %2419 = vmatpush1.bf16.msra.mxu0 %v6753_v15  ;;  %2637 = vmatpush1.bf16.msra.mxu1 %v6762_v20  ;;  %v6804_v15 = vld [vmem:[%s9571_s3 + $0x170] ss:$8 sps:$4 sm:$0xff]  }
  0xa5   : > { %2420 = vmatprep.subr.bf16.mxu0 %v6761_v17  ;;  %2638 = vmatprep.subr.bf16.mxu1 %v6770_v22  ;;  %v6817_v22 = vld [vmem:[%s9571_s3 + $0x234] ss:$8 sps:$4 sm:$0xff]  }
  0xa8   : > { %2421 = vmatpush1.bf16.msra.mxu0 %v6759_v19  ;;  %2639 = vmatpush1.bf16.msra.mxu1 %v6768_v24  ;;  %v6807_v19 = vld [vmem:[%s9571_s3 + $0x80] ss:$8 sps:$4 sm:$0xff]   ;;  %v6820_v24 = vld [vmem:[%s9571_s3 + $0x314] ss:$8 sps:$4 sm:$0xff]  }
  0xa9   : > { %2422 = vmatprep.subr.bf16.mxu0 %v6767_v21  ;;  %2640 = vmatprep.subr.bf16.mxu1 %v6776_v26 }
  0xac   : > { %2423 = vmatpush1.bf16.msra.mxu0 %v6765_v23  ;;  %2641 = vmatpush1.bf16.msra.mxu1 %v6774_v29  ;;  %v6810_v23 = vld [vmem:[%s9571_s3 + $0x160] ss:$8 sps:$4 sm:$0xff]  }
  0xad   : > { %2424 = vmatprep.subr.bf16.mxu0 %v6773_v25  ;;  %2646 = vmatprep.subr.bf16.mxu1 %v6782_v53 }
  0xb0   : > { %2425 = vmatpush1.bf16.msra.mxu0 %v6771_v28  ;;  %2647 = vmatpush2.bf16.msra.mxu1 %v6780_v50 }
  0xb1   : > { %2430 = vmatprep.subr.bf16.mxu0 %v6779_v32  ;;  %2648 = vmatprep.subr.bf16.mxu1 %v6788_v61 }
  0xb4   : > { %2431 = vmatpush2.bf16.msra.mxu0 %v6777_v47  ;;  %2649 = vmatpush2.bf16.msra.mxu1 %v6786_v58  ;;  %v2041_v58 = vlaneseq }
  0xb5   : > { %2432 = vmatprep.subr.bf16.mxu0 %v6785_v57  ;;  %2650 = vmatprep.subr.bf16.mxu1 %v6794_v27 }
  0xb8   : > { %2433 = vmatpush2.bf16.msra.mxu0 %v6783_v55  ;;  %2651 = vmatpush2.bf16.msra.mxu1 %v6792_v0 }
  0xb9   : > { %2434 = vmatprep.subr.bf16.mxu0 %v6791_v63  ;;  %2652 = vmatprep.subr.bf16.mxu1 %v6800_v4  ;;  %v8097_v63 = vshrl.u32 %v2041_v58, 7 }
  0xbc   : > { %2435 = vmatpush2.bf16.msra.mxu0 %v6789_v62  ;;  %2653 = vmatpush2.bf16.msra.mxu1 %v6798_v7  ;;  %v9582_v7 = vsub.s32 1, %v8097_v63 }
  0xbd   : > { %2436 = vmatprep.subr.bf16.mxu0 %v6797_v36  ;;  %2654 = vmatprep.subr.bf16.mxu1 %v6806_v11 }
  0xc0   : > { %2437 = vmatpush2.bf16.msra.mxu0 %v6795_v5  ;;  %2655 = vmatpush2.bf16.msra.mxu1 %v6804_v15 }
  0xc1   : > { %2438 = vmatprep.subr.bf16.mxu0 %v6803_v6  ;;  %2656 = vmatprep.subr.bf16.mxu1 %v6812_v18  ;;  %v9581_v6 = vsub.s32 0, %v8097_v63  ;;  %v2035_v18 = vld [vmem:[%s9570_s2] sm:$0x3] }
  0xc4   : > { %2439 = vmatpush2.bf16.msra.mxu0 %v6801_v8  ;;  %2657 = vmatpush2.bf16.msra.mxu1 %v6810_v23 }
  0xc5   : > { %2440 = vmatprep.subr.bf16.mxu0 %v6809_v12  ;;  %3086 = vmatprep.subr.bf16.mxu1 %v6820_v24 }
  0xc8   : > { %2441 = vmatpush2.bf16.msra.mxu0 %v6807_v19 }
  0xc9   : > { %2856 = vmatprep.subr.bf16.mxu0 %v6817_v22 }
  0xee   : > { %v512_v30 = vpop.f32.mrf.mxu0  ;;  %v646_v31 = vpop.f32.mrf.mxu1 }
  0xef   : > { %v674_v35 = vrot.slane %v646_v31, 1 }
  0xf0   : > { %v514_v33 = vpop.f32.mrf.mxu0  ;;  %v648_v34 = vpop.f32.mrf.mxu1 }
  0xf1   : > { %v677_v41 = vrot.slane %v648_v34, 1 }
  0xf2   : > { %v516_v37 = vpop.f32.mrf.mxu0  ;;  %v650_v38 = vpop.f32.mrf.mxu1 }
  0xf3   : > { %v675_v39 = vrot.slane %v650_v38, 1 }
  0xf4   : > { %v7927_v40 = vpop.f32.mrf.mxu1  ;;  %v7933_v45 = vpop.f32.mrf.mxu0 }
  0xf5   : > { %v676_v42 = vsel %vm9589_vm4, %v674_v35, %v675_v39  ;;  %v678_v43 = vrot.slane %v7927_v40, 1  ;;  %v8132_v40 = vrot.slane %v2035_v18, %v9581_v6 }
  0xf6   : > { %v7931_v44 = vadd.f32 %v676_v42, %v512_v30  ;;  %v7935_v46 = vpop.f32.mrf.mxu1  ;;  %v7949_v52 = vpop.f32.mrf.mxu0 }
  0xf7   : > { %v679_v48 = vsel %vm9589_vm4, %v677_v41, %v678_v43  ;;  %v680_v49 = vrot.slane %v7935_v46, 1 }
  0xf8   : > { %v7947_v51 = vadd.f32 %v679_v48, %v514_v33  ;;  %v7968_v59 = vpop.f32.mrf.mxu1  ;;  %v7970_v60 = vpop.f32.mrf.mxu0 }
  0xf9   : > { %v681_v54 = vsel %vm9589_vm4, %v675_v39, %v680_v49  ;;  %v682_v27 = vrot.slane %v7968_v59, 1 }
  0xfa   : > { %v7960_v56 = vadd.f32 %v681_v54, %v516_v37  ;;  %v7990_v1 = vpop.f32.mrf.mxu1  ;;  %v7992_v3 = vpop.f32.mrf.mxu0 }
  0xfb   : > { %v684_v8 = vrot.slane %v7990_v1, 1  ;;  %v683_v19 = vsel %vm9589_vm4, %v678_v43, %v682_v27  ;;  %v8136_v43 = vrot.slane %v2035_v18, %v9582_v7 }
  0xfc   : > { %v8009_v9 = vpop.f32.mrf.mxu1  ;;  %v8011_v10 = vpop.f32.mrf.mxu0 }
  0xfd   : > { %v686_v11 = vrot.slane %v8009_v9, 1 }
 0x106   : > { %v8019_v13 = vpop.f32.mrf.mxu0  ;;  %v8021_v14 = vpop.f32.mrf.mxu1 }
 0x107   : > { %v839_v12 = vrot.slane %v8019_v13, 2 }
 0x108   : > { %v8026_v16 = vpop.f32.mrf.mxu0  ;;  %v8028_v17 = vpop.f32.mrf.mxu1 }
 0x10a   : > { %v8036_v20 = vpop.f32.mrf.mxu0  ;;  %v8038_v21 = vpop.f32.mrf.mxu1 }
 0x10b   : > { %v840_v0 = vrot.slane %v8036_v20, 2  ;;  %v842_v20 = vrot.slane %v8026_v16, 2  ;;  %v699_v16 = vadd.f32 %v683_v19, %v7933_v45  ;;  %v1005_v6 = vrot.slane %v8038_v21, 3 }
 0x10c   : > { %v8049_v25 = vpop.f32.mrf.mxu0  ;;  %v8051_v26 = vpop.f32.mrf.mxu1  ;;  %v1007_v21 = vrot.slane %v8028_v17, 3 }
 0x10d   : > { %v843_v5 = vrot.slane %v8049_v25, 2  ;;  %v841_v9 = vsel %vm9583_vm5, %v839_v12, %v840_v0  ;;  %v685_v25 = vsel %vm9589_vm4, %v680_v49, %v684_v8  ;;  %v1008_v18 = vrot.slane %v8051_v26, 3 }
 0x10e   : > { %v8053_v28 = vpop.f32.mrf.mxu0  ;;  %v8055_v29 = vpop.f32.mrf.mxu1  ;;  %v700_v7 = vadd.f32 %v685_v25, %v7949_v52 }
 0x10f   : > { %v845_v1 = vrot.slane %v8053_v28, 2  ;;  %v844_v24 = vsel %vm9583_vm5, %v842_v20, %v843_v5  ;;  %v687_v28 = vsel %vm9589_vm4, %v682_v27, %v686_v11  ;;  %v861_v20 = vadd.f32 %v841_v9, %v7931_v44 }
 0x110   : > { %v8057_v30 = vpop.f32.mrf.mxu0  ;;  %v8059_v31 = vpop.f32.mrf.mxu1  ;;  %v862_v46 = vadd.f32 %v844_v24, %v7947_v51  ;;  %v1010_v49 = vrot.slane %v8055_v29, 3  ;;  %v702_v44 = vadd.f32 %v684_v8, %v7992_v3  ;;  %v703_v51 = vadd.f32 %v686_v11, %v8011_v10 }
 0x111   : > { %v847_v13 = vrot.slane %v8057_v30, 2  ;;  %v1004_v30 = vrot.slane %v8021_v14, 3  ;;  %v846_v45 = vsel %vm9583_vm5, %v840_v0, %v845_v1  ;;  %v701_v0 = vadd.f32 %v687_v28, %v7970_v60 }
 0x112   : > { %v8061_v32 = vpop.f32.mrf.mxu0  ;;  %v8063_v33 = vpop.f32.mrf.mxu1  ;;  %v863_v29 = vadd.f32 %v846_v45, %v7960_v56  ;;  %v1009_v52 = vsel %vm9586_vm6, %v1007_v21, %v1008_v18 }
 0x113   : > { %v848_v27 = vsel %vm9583_vm5, %v843_v5, %v847_v13  ;;  %v849_v14 = vrot.slane %v8061_v32, 2  ;;  %v1012_v5 = vrot.slane %v8059_v31, 3  ;;  %v1006_v32 = vsel %vm9586_vm6, %v1004_v30, %v1005_v6 }
 0x114   : > { %v8065_v34 = vpop.f32.mrf.mxu0  ;;  %v8067_v35 = vpop.f32.mrf.mxu1  ;;  %v864_v24 = vadd.f32 %v848_v27, %v699_v16  ;;  %v1014_v3 = vrot.slane %v8063_v33, 3  ;;  %v1026_v17 = vadd.f32 %v1006_v32, %v861_v20  ;;  %v1027_v8 = vadd.f32 %v1009_v52, %v862_v46 }
 0x115   : > { %v851_v26 = vrot.slane %v8065_v34, 2  ;;  %v1011_v34 = vsel %vm9586_vm6, %v1005_v6, %v1010_v49  ;;  %v850_v60 = vsel %vm9583_vm5, %v845_v1, %v849_v14  ;;  %v867_v56 = vadd.f32 %v849_v14, %v702_v44 }
 0x116   : > { %v1016_v11 = vrot.slane %v8067_v35, 3  ;;  %v1028_v28 = vadd.f32 %v1011_v34, %v863_v29  ;;  %v1013_v16 = vsel %vm9586_vm6, %v1008_v18, %v1012_v5  ;;  %v1015_v1 = vsel %vm9586_vm6, %v1010_v49, %v1014_v3 }
 0x117   : > { %v852_v31 = vsel %vm9583_vm5, %v847_v13, %v851_v26  ;;  %v1029_v6 = vadd.f32 %v1013_v16, %v864_v24  ;;  %v865_v46 = vadd.f32 %v850_v60, %v700_v7  ;;  %v868_v27 = vadd.f32 %v851_v26, %v703_v51 }
 0x118   : > { %v866_v35 = vadd.f32 %v852_v31, %v701_v0  ;;  %v1032_v18 = vadd.f32 %v1014_v3, %v867_v56 }
 0x119   : > { %v1030_v29 = vadd.f32 %v1015_v1, %v865_v46 }
 0x11e   : > { %v8069_v37 = vpop.f32.mrf.mxu0  ;;  %v8071_v38 = vpop.f32.mrf.mxu1 }
 0x11f   : > { %v1169_v45 = vrot.slane %v8069_v37, 4 }
 0x120   : > { %v8073_v39 = vpop.f32.mrf.mxu0  ;;  %v8075_v41 = vpop.f32.mrf.mxu1 }
 0x122   : > { %v8077_v42 = vpop.f32.mrf.mxu0  ;;  %v8079_v47 = vpop.f32.mrf.mxu1 }
 0x123   : > { %v1170_v25 = vrot.slane %v8077_v42, 4  ;;  %v1172_v42 = vrot.slane %v8073_v39, 4 }
 0x124   : > { %v8081_v48 = vpop.f32.mrf.mxu0  ;;  %v8083_v50 = vpop.f32.mrf.mxu1 }
 0x125   : > { %v1173_v33 = vrot.slane %v8081_v48, 4  ;;  %v1017_v48 = vsel %vm9586_vm6, %v1012_v5, %v1016_v11  ;;  %v1033_v5 = vadd.f32 %v1016_v11, %v868_v27 }
 0x126   : > { %v8085_v53 = vpop.f32.mrf.mxu0  ;;  %v8087_v54 = vpop.f32.mrf.mxu1 }
 0x127   : > { %v1175_v30 = vrot.slane %v8085_v53, 4  ;;  %v1171_v53 = vsel %vm9585_vm1, %v1169_v45, %v1170_v25  ;;  %v1174_v49 = vsel %vm9585_vm1, %v1172_v42, %v1173_v33 }
 0x128   : > { %v8089_v55 = vpop.f32.mrf.mxu0  ;;  %v8091_v57 = vpop.f32.mrf.mxu1 }
 0x129   : > { %v1177_v13 = vrot.slane %v8089_v55, 4  ;;  %v1176_v37 = vsel %vm9585_vm1, %v1170_v25, %v1175_v30 }
 0x12a   : > { %v8093_v61 = vpop.f32.mrf.mxu0  ;;  %v8095_v62 = vpop.f32.mrf.mxu1 }
 0x12b   : > { %v1179_v55 = vrot.slane %v8093_v61, 4  ;;  %v1178_v39 = vsel %vm9585_vm1, %v1173_v33, %v1177_v13  ;;  %v8203_v61 = vadd.f32 %v1171_v53, %v1026_v17 }
 0x12c   : > { %v8101_v36 = vpop.f32.mrf.mxu0  ;;  %v8103_v4 = vpop.f32.mrf.mxu1  ;;  %v8211_v60 = vadd.f32 %v1178_v39, %v1029_v6 }
 0x12d   : > { %v1181_v3 = vrot.slane %v8101_v36, 4  ;;  %v8219_v11 = vadd.f32 %v1179_v55, %v1032_v18 }
 0x12f   : > { %v8232_v42 = vadd.f32 %v1181_v3, %v1033_v5 }
 0x136   : > { %v8111_v59 = vpop.f32.mrf.mxu0  ;;  %v8113_v15 = vpop.f32.mrf.mxu1 }
 0x137   : > { %v1467_v26 = vrot.slane %v8111_v59, 1  ;;  %v8209_v59 = vadd.f32 %v1176_v37, %v1028_v28 }
 0x138   : > { %v8125_v22 = vpop.f32.mrf.mxu0  ;;  %v8127_v23 = vpop.f32.mrf.mxu1 }
 0x139   : > { %v1470_v32 = vrot.slane %v8125_v22, 1  ;;  %v1631_v22 = vrot.slane %v8113_v15, 2  ;;  %v1634_v1 = vrot.slane %v8127_v23, 2 }
 0x13a   : > { %v8144_v58 = vpop.f32.mrf.mxu0  ;;  %v8146_v12 = vpop.f32.mrf.mxu1 }
 0x13b   : > { %v1468_v44 = vrot.slane %v8144_v58, 1  ;;  %v1031_v58 = vadd.f32 %v1017_v48, %v866_v35  ;;  %v1632_v31 = vrot.slane %v8146_v12, 2 }
 0x13c   : > { %v8156_v19 = vpop.f32.mrf.mxu0  ;;  %v8166_v9 = vpop.f32.mrf.mxu1 }
 0x13d   : > { %v1471_v7 = vrot.slane %v8156_v19, 1  ;;  %v8205_v19 = vadd.f32 %v1174_v49, %v1027_v8  ;;  %v1469_v34 = vsel %vm9589_vm4, %v1467_v26, %v1468_v44  ;;  %v1635_v25 = vrot.slane %v8166_v9, 2 }
 0x13e   : > { %v8173_v10 = vpop.f32.mrf.mxu0  ;;  %v8181_v20 = vpop.f32.mrf.mxu1  ;;  %v1489_v36 = vadd.f32 %v1469_v34, %v8071_v38 }
 0x13f   : > { %v1473_v0 = vrot.slane %v8173_v10, 1  ;;  %v1180_v10 = vsel %vm9585_vm1, %v1175_v30, %v1179_v55  ;;  %v1472_v56 = vsel %vm9589_vm4, %v1470_v32, %v1471_v7  ;;  %v1182_v30 = vsel %vm9585_vm1, %v1177_v13, %v1181_v3 }
 0x140   : > { %v8187_v14 = vpop.f32.mrf.mxu0  ;;  %v8196_v21 = vpop.f32.mrf.mxu1  ;;  %v1490_v6 = vadd.f32 %v1472_v56, %v8075_v41  ;;  %v1637_v15 = vrot.slane %v8181_v20, 2  ;;  %v8230_v27 = vadd.f32 %v1180_v10, %v1030_v29  ;;  %v1633_v13 = vsel %vm9583_vm5, %v1631_v22, %v1632_v31 }
 0x141   : > { %v1475_v51 = vrot.slane %v8187_v14, 1  ;;  %v1474_v17 = vsel %vm9589_vm4, %v1468_v44, %v1473_v0  ;;  %v1639_v12 = vrot.slane %v8196_v21, 2  ;;  %v8235_v14 = vadd.f32 %v1182_v30, %v1031_v58 }
 0x142   : > { %v1454_v52 = vpop.f32.mrf.mxu0  ;;  %v1618_v24 = vpop.f32.mrf.mxu1  ;;  %v1491_v45 = vadd.f32 %v1474_v17, %v8079_v47  ;;  %v1653_v20 = vadd.f32 %v1633_v13, %v1489_v36  ;;  %v1636_v18 = vsel %vm9583_vm5, %v1634_v1, %v1635_v25  ;;  %v1638_v53 = vsel %vm9583_vm5, %v1632_v31, %v1637_v15 }
 0x143   : > { %v1476_v8 = vsel %vm9589_vm4, %v1471_v7, %v1475_v51  ;;  %v1477_v28 = vrot.slane %v1454_v52, 1  ;;  %v1641_v38 = vrot.slane %v1618_v24, 2  ;;  %v1640_v44 = vsel %vm9583_vm5, %v1635_v25, %v1639_v12 }
 0x144   : > { %v1456_v16 = vpop.f32.mrf.mxu0  ;;  %v1620_v33 = vpop.f32.mrf.mxu1  ;;  %v1492_v46 = vadd.f32 %v1476_v8, %v8083_v50  ;;  %v1654_v50 = vadd.f32 %v1636_v18, %v1490_v6  ;;  %v1655_v37 = vadd.f32 %v1638_v53, %v1491_v45 }
 0x145   : > { %v1479_v41 = vrot.slane %v1456_v16, 1  ;;  %v1495_v23 = vadd.f32 %v1477_v28, %v8095_v62  ;;  %v1478_v49 = vsel %vm9589_vm4, %v1473_v0, %v1477_v28  ;;  %v1642_v7 = vsel %vm9583_vm5, %v1637_v15, %v1641_v38 }
 0x146   : > { %v1656_v55 = vadd.f32 %v1640_v44, %v1492_v46  ;;  %v1643_v21 = vrot.slane %v1620_v33, 2  ;;  %v1493_v32 = vadd.f32 %v1478_v49, %v8087_v54 }
 0x147   : > { %v1480_v29 = vsel %vm9589_vm4, %v1475_v51, %v1479_v41  ;;  %v1496_v52 = vadd.f32 %v1479_v41, %v8103_v4  ;;  %v1659_v24 = vadd.f32 %v1641_v38, %v1495_v23 }
 0x148   : > { %v1494_v51 = vadd.f32 %v1480_v29, %v8091_v57  ;;  %v1644_v17 = vsel %vm9583_vm5, %v1639_v12, %v1643_v21  ;;  %v1657_v30 = vadd.f32 %v1642_v7, %v1493_v32  ;;  %vm2125_vm5 = vsmask.f32 2304 }
 0x149   : > { %v1660_v6 = vadd.f32 %v1643_v21, %v1496_v52 }
 0x14e   : > { %v1768_v35 = vpop.f32.mrf.mxu0  ;;  %v1932_v9 = vpop.f32.mrf.mxu1 }
 0x14f   : > { %v1795_v58 = vrot.slane %v1768_v35, 3  ;;  %v1959_v3 = vrot.slane %v1932_v9, 4  ;;  %v1658_v9 = vadd.f32 %v1644_v17, %v1494_v51 }
 0x150   : > { %v1770_v47 = vpop.f32.mrf.mxu0  ;;  %v1934_v48 = vpop.f32.mrf.mxu1 }
 0x151   : > { %v1798_v10 = vrot.slane %v1770_v47, 3  ;;  %v1962_v54 = vrot.slane %v1934_v48, 4 }
 0x152   : > { %v1772_v39 = vpop.f32.mrf.mxu0  ;;  %v1936_v26 = vpop.f32.mrf.mxu1 }
 0x153   : > { %v1796_v62 = vrot.slane %v1772_v39, 3  ;;  %v1960_v5 = vrot.slane %v1936_v26, 4 }
 0x154   : > { %v1774_v34 = vpop.f32.mrf.mxu0  ;;  %v1938_v0 = vpop.f32.mrf.mxu1 }
 0x155   : > { %v1797_v56 = vsel %vm9586_vm6, %v1795_v58, %v1796_v62  ;;  %v1799_v22 = vrot.slane %v1774_v34, 3  ;;  %v1963_v31 = vrot.slane %v1938_v0, 4  ;;  %v1961_v25 = vsel %vm9585_vm1, %v1959_v3, %v1960_v5 }
 0x156   : > { %v1817_v8 = vadd.f32 %v1797_v56, %v1653_v20  ;;  %v1778_v4 = vpop.f32.mrf.mxu0  ;;  %v1942_v36 = vpop.f32.mrf.mxu1 }
 0x157   : > { %v1800_v28 = vsel %vm9586_vm6, %v1798_v10, %v1799_v22  ;;  %v1801_v16 = vrot.slane %v1778_v4, 3  ;;  %v1965_v33 = vrot.slane %v1942_v36, 4  ;;  %v1964_v57 = vsel %vm9585_vm1, %v1962_v54, %v1963_v31 }
 0x158   : > { %v1981_v15 = vadd.f32 %v1961_v25, %v1817_v8  ;;  %v1818_v1 = vadd.f32 %v1800_v28, %v1654_v50  ;;  %v1780_v45 = vpop.f32.mrf.mxu0  ;;  %v1944_v46 = vpop.f32.mrf.mxu1 }
 0x159   : > { %v1802_v12 = vsel %vm9586_vm6, %v1796_v62, %v1801_v16  ;;  %v1803_v38 = vrot.slane %v1780_v45, 3  ;;  %v1967_v35 = vrot.slane %v1944_v46, 4  ;;  %v1966_v47 = vsel %vm9585_vm1, %v1960_v5, %v1965_v33 }
 0x15a   : > { %v1989_v13 = vmax.f32 %v8203_v61, %v1981_v15  ;;  %v1982_v41 = vadd.f32 %v1964_v57, %v1818_v1  ;;  %v1819_v20 = vadd.f32 %v1802_v12, %v1655_v37  ;;  %v1782_v18 = vpop.f32.mrf.mxu0  ;;  %v1946_v23 = vpop.f32.mrf.mxu1  ;;  %v9609_v12 = vmov 0 }
 0x15b   : > { %v1804_v48 = vsel %vm9586_vm6, %v1799_v22, %v1803_v38  ;;  %v1805_v50 = vrot.slane %v1782_v18, 3  ;;  %v1969_v53 = vrot.slane %v1946_v23, 4  ;;  %v1968_v21 = vsel %vm9585_vm1, %v1963_v31, %v1967_v35 }
 0x15c   : > { %v2005_v44 = vrot.slane %v1989_v13, 1  ;;  %v1983_v49 = vadd.f32 %v1966_v47, %v1819_v20  ;;  %v1820_v7 = vadd.f32 %v1804_v48, %v1656_v55  ;;  %v1784_v39 = vpop.f32.mrf.mxu0  ;;  %v1948_v61 = vpop.f32.mrf.mxu1  ;;  %v1990_v37 = vmax.f32 %v8205_v19, %v1982_v41 }
 0x15d   : > { %v1806_v26 = vsel %vm9586_vm6, %v1801_v16, %v1805_v50  ;;  %v1823_v29 = vadd.f32 %v1805_v50, %v1659_v24  ;;  %v1807_v58 = vrot.slane %v1784_v39, 3  ;;  %v1970_v52 = vsel %vm9585_vm1, %v1965_v33, %v1969_v53 }
 0x15e   : > { %v1991_v62 = vmax.f32 %v8209_v59, %v1983_v49  ;;  %v1984_v5 = vadd.f32 %v1968_v21, %v1820_v7  ;;  %v1821_v32 = vadd.f32 %v1806_v26, %v1657_v30  ;;  %v1971_v0 = vrot.slane %v1948_v61, 4  ;;  %v2070_v61 = vld [vmem:[#allocation2] sm:$0x11] }
 0x15f   : > { %v1987_v55 = vadd.f32 %v1969_v53, %v1823_v29  ;;  %v1808_v3 = vsel %vm9586_vm6, %v1803_v38, %v1807_v58  ;;  %v1824_v34 = vadd.f32 %v1807_v58, %v1660_v6  ;;  %v2008_v31 = vrot.slane %v1990_v37, 1 }
 0x160   : > { %v2006_v59 = vrot.slane %v1991_v62, 1  ;;  %v1992_v24 = vmax.f32 %v8211_v60, %v1984_v5  ;;  %v1985_v10 = vadd.f32 %v1970_v52, %v1821_v32  ;;  %v1822_v56 = vadd.f32 %v1808_v3, %v1658_v9  ;;  %v2097_v52 = vld [vmem:[#allocation2] sm:$0x22]  ;;  %v6828_v3 = vld [vmem:[%s9571_s3 + $0x210] ss:$8 sps:$4 sm:$0xff]  }
 0x161   : > { %v1995_v51 = vmax.f32 %v8219_v11, %v1987_v55  ;;  %v1972_v17 = vsel %vm9585_vm1, %v1967_v35, %v1971_v0  ;;  %v1988_v54 = vadd.f32 %v1971_v0, %v1824_v34  ;;  %vm8288_vm1 = vmand %vm9587_vm11, %vm2091_vm12  ;;  %vm9608_vm12 = vsmask.f32 7938 }
 0x162   : > { %v2007_v8 = vsel %vm9589_vm4, %v2005_v44, %v2006_v59  ;;  %v2009_v4 = vrot.slane %v1992_v24, 1  ;;  %v1993_v36 = vmax.f32 %v8230_v27, %v1985_v10  ;;  %v1986_v60 = vadd.f32 %v1972_v17, %v1822_v56  ;;  %vm8303_vm10 = vmand %vm2063_vm7, %vm9608_vm12  ;;  %v2180_v10 = vld [vmem:[#allocation2 + $0x8] sm:$0x11] }
 0x163   : > { %v2027_v25 = vmax.f32 %v1989_v13, %v2007_v8  ;;  %v2015_v28 = vrot.slane %v1995_v51, 1  ;;  %v1996_v16 = vmax.f32 %v8232_v42, %v1988_v54  ;;  %v9604_v27 = vmov 0 }
 0x164   : > { %v2010_v11 = vsel %vm9589_vm4, %v2008_v31, %v2009_v4  ;;  %v2011_v33 = vrot.slane %v1993_v36, 1  ;;  %v1994_v30 = vmax.f32 %v8235_v14, %v1986_v60  ;;  %v9605_v27 = vsel %vm8288_vm1, 4294967295, %v9604_v27  ;;  %v2131_v31 = vld [vmem:[#allocation2] sm:$0x44] }
 0x165   : > { %v2028_v6 = vmax.f32 %v1990_v37, %v2010_v11  ;;  %v2033_v42 = vmax.f32 %v1995_v51, %v2015_v28  ;;  %v2051_v15 = vadd.f32 %v8132_v40, %v2027_v25  ;;  %v2017_v1 = vrot.slane %v1996_v16, 1  ;;  %v2156_v51 = vld [vmem:[#allocation2] sm:$0x88] }
 0x166   : > { %v2012_v14 = vsel %vm9589_vm4, %v2006_v59, %v2011_v33  ;;  %v2016_v46 = vsel %vm9589_vm4, %v2011_v33, %v2015_v28  ;;  %v2013_v57 = vrot.slane %v1994_v30, 1  ;;  %v9610_v12 = vsel %vm8303_vm10, 4294967295, %v9609_v12  ;;  %v2195_v28 = vld [vmem:[#allocation2 + $0x8] sm:$0x22] }
 0x167   : > { %v2029_v38 = vmax.f32 %v1991_v62, %v2012_v14  ;;  %v2031_v35 = vmax.f32 %v1993_v36, %v2016_v46  ;;  %vm9611_vm11 = vsmask.f32 7954  ;;  %v9612_v9 = vmov 0  ;;  %v6824_v37 = vld [vmem:[%s9571_s3 + $0x224] ss:$8 sps:$4 sm:$0xff]  }
 0x168   : > { %vm8309_vm14 = vmand %vm2066_vm9, %vm9611_vm11  ;;  %v2014_v13 = vsel %vm9589_vm4, %v2009_v4, %v2013_v57  ;;  %v2018_v41 = vsel %vm9589_vm4, %v2013_v57, %v2017_v1  ;;  %v2034_v20 = vmax.f32 %v1996_v16, %v2017_v1  ;;  %v2052_v18 = vadd.f32 %v8136_v43, %v2028_v6  ;;  %v2217_v4 = vld [vmem:[#allocation2 + $0x8] sm:$0x44]  ;;  %v6866_v6 = vld [vmem:[%s9571_s3 + $0x294] ss:$8 sps:$4 sm:$0xff]  }
 0x169   : > { %v9613_v9 = vsel %vm8309_vm14, 4294967295, %v9612_v9  ;;  %v2053_v23 = vmax.f32 %v2051_v15, 0.0  ;;  %v2111_v47 = vadd.f32 %v8132_v40, %v2029_v38  ;;  %v2204_v48 = vadd.f32 %v8132_v40, %v2033_v42  ;;  %v6867_v42 = vld [vmem:[%s9571_s3 + $0x370] ss:$8 sps:$4 sm:$0xff]   ;;  %v6870_v14 = vld [vmem:[%s9571_s3 + $0x280] ss:$8 sps:$4 sm:$0xff]  }
 0x16a   : > { %v2030_v50 = vmax.f32 %v1992_v24, %v2014_v13  ;;  %vm9614_vm9 = vcmask 1042434   ;;  %v2168_v44 = vadd.f32 %v8132_v40, %v2031_v35  ;;  %v2032_v49 = vmax.f32 %v1994_v30, %v2018_v41  ;;  %v6876_v35 = vld [vmem:[%s9571_s3 + $0x270] ss:$8 sps:$4 sm:$0xff]  }
 0x16b   : > { %vm8324_vm11 = vmand %vm9614_vm9, %vm2125_vm5  ;;  %v2054_v7 = vmax.f32 %v2052_v18, 0.0  ;;  %vm9617_vm12 = vcmask 784390   ;;  %v2205_v39 = vadd.f32 %v8136_v43, %v2034_v20  ;;  %vm9620_vm7 = vcmask 1041409  }
 0x16c   : > { %vm8331_vm4 = vmand %vm9617_vm12, %vm2128_vm15  ;;  %vm2105_vm5 = vsmask.f32 7958  ;;  %v2112_v40 = vadd.f32 %v8136_v43, %v2030_v50  ;;  %vm9623_vm9 = vsmask.f32 3328  ;;  %v2169_v58 = vadd.f32 %v8136_v43, %v2032_v49  ;;  %v6834_v43 = vld [vmem:[%s9571_s3 + $0x200] ss:$8 sps:$4 sm:$0xff]  }
 0x16d   : > { %vm8338_vm6 = vmand %vm9620_vm7, %vm2103_vm13  ;;  %v6443_v26 = vpack.c.bf16 %v2054_v7, %v2053_v23  ;;  %v2207_v62 = vmax.f32 %v2205_v39, 0.0  ;;  %v2113_v5 = vmax.f32 %v2111_v47, 0.0  ;;  %v2206_v32 = vmax.f32 %v2204_v48, 0.0 }
 0x16e   : > { %vm8345_vm14 = vmand %vm9624_vm2, %vm9623_vm9  ;;  %v2114_v55 = vmax.f32 %v2112_v40, 0.0  ;;  %vm9627_vm13 = vsmask.f32 7424  ;;  %vm9628_vm15 = vcmask 785415   ;;  %v2170_v34 = vmax.f32 %v2168_v44, 0.0 }
 0x16f   : > { %vm8352_vm7 = vmand %vm9628_vm15, %vm9627_vm13  ;;  %v5736_v59 = vrot.slane %v6443_v26, 9  ;;  %vm9632_vm12 = vcmask 783365   ;;  %v2171_v24 = vmax.f32 %v2169_v58, 0.0  ;;  %v6446_v17 = vpack.c.bf16 %v2207_v62, %v2206_v32  ;;  %v6815_v40 = vld [vmem:[%s9571_s3 + $0x230] ss:$8 sps:$4 sm:$0xff]  }
 0x170   : > { %vm9631_vm2 = vmor %vm8271_vm3, %vm8264_vm0  ;;  %v6444_v56 = vpack.c.bf16 %v2114_v55, %v2113_v5  ;;  %v2074_v36 = vshll.u32 %v6443_v26, 16  ;;  %vm9639_vm10 = vsmask.f32 7946  ;;  %vm9640_vm13 = vcmask 1042434   ;;  %v6827_v62 = vld [vmem:[%s9571_s3 + $0x304] ss:$8 sps:$4 sm:$0xff]  }
 0x171   : > { %v2071_v0 = vsel %vm9631_vm2, %v6443_v26, %v2070_v61  ;;  %vm8362_vm9 = vmand %vm9632_vm12, %vm2105_vm5  ;;  %v6445_v8 = vpack.c.bf16 %v2171_v24, %v2170_v34  ;;  %v2215_v16 = vrot.slane %v6446_v17, 6  ;;  %vm2160_vm2 = vsmask.f32 7950  ;;  %v6818_v26 = vld [vmem:[%s9571_s3 + $0x310] ss:$8 sps:$4 sm:$0xff]  }
 0x172   : > { %2072 = vst [vmem:[#allocation2] sm:$0x11] %v2071_v0  ;;  %vm9635_vm5 = vmor %vm8295_vm8, %vm8288_vm1  ;;  %v2122_v60 = vrot.slane %v6444_v56, 6  ;;  %v2147_v25 = vrot.slane %v6444_v56, 7  ;;  %v5735_v1 = vrot.slane %v2074_v36, 9  ;;  %v2135_v38 = vshll.u32 %v6444_v56, 16 }
 0x173   : > { %v2098_v54 = vsel %vm9635_vm5, %v5736_v59, %v2097_v52  ;;  %vm9637_vm12 = vmor %vm8271_vm3, %vm8264_vm0  ;;  %v5741_v33 = vrot.slane %v6445_v8, 9  ;;  %vm2162_vm0 = vsmask.f32 7966  ;;  %v2184_v46 = vshll.u32 %v6445_v8, 16  ;;  %v6822_v5 = vld [vmem:[%s9571_s3 + $0x220] ss:$8 sps:$4 sm:$0xff]  }
 0x174   : > { %2099 = vst [vmem:[#allocation2] sm:$0x22] %v2098_v54  ;;  %v2181_v11 = vsel %vm9637_vm12, %v6445_v8, %v2180_v10  ;;  %vm9638_vm15 = vmor %vm8331_vm4, %vm8324_vm11  ;;  %vm9651_vm12 = vcmask 1043459   ;;  %vm9654_vm11 = vcmask 785415   ;;  %v5737_v13 = vrot.slane %v2074_v36, 10 }
 0x175   : > { %v2132_v30 = vsel %vm9638_vm15, %v2122_v60, %v2131_v31  ;;  %vm8399_vm1 = vmand %vm9640_vm13, %vm9639_vm10  ;;  %2182 = vst [vmem:[#allocation2 + $0x8] sm:$0x11] %v2181_v11  ;;  %vm9646_vm10 = vcmask 784390   ;;  %v5740_v18 = vrot.slane %v2184_v46, 9  ;;  %v2137_v23 = vrot.slane %v2135_v38, 7 }
 0x176   : > { %vm9643_vm5 = vmor %vm8352_vm7, %vm8345_vm14  ;;  %2133 = vst [vmem:[#allocation2] sm:$0x44] %v2132_v30  ;;  %vm9649_vm14 = vnez %v9605_v27  ;;  %v2221_v27 = vshll.u32 %v6446_v17, 16  ;;  %v5742_v48 = vrot.slane %v2184_v46, 10  ;;  %v6825_v32 = vld [vmem:[%s9571_s3 + $0x300] ss:$8 sps:$4 sm:$0xff]  }
 0x177   : > { %v2157_v19 = vsel %vm9643_vm5, %v2147_v25, %v2156_v51  ;;  %vm9644_vm3 = vmmov %vm9638_vm15  ;;  %vm9645_vm15 = vsmask.f32 7962  ;;  %v6830_v52 = vld [vmem:[%s9571_s3 + $0x214] ss:$8 sps:$4 sm:$0xff]   ;;  %v6831_v34 = vld [vmem:[%s9571_s3 + $0x2f0] ss:$8 sps:$4 sm:$0xff]  }
 0x178   : > { %v2218_v22 = vsel %vm9644_vm3, %v2215_v16, %v2217_v4  ;;  %vm8415_vm13 = vmand %vm9646_vm10, %vm9645_vm15  ;;  %2158 = vst [vmem:[#allocation2] sm:$0x88] %v2157_v19  ;;  %vm9658_vm3 = vnez %v9610_v12  ;;  %v2223_v50 = vrot.slane %v2221_v27, 7  ;;  %v6833_v55 = vld [vmem:[%s9571_s3 + $0x2f4] ss:$8 sps:$4 sm:$0xff]  }
 0x179   : > { %vm9650_vm7 = vmor %vm8295_vm8, %vm9649_vm14  ;;  %2219 = vst [vmem:[#allocation2 + $0x8] sm:$0x44] %v2218_v22  ;;  %v2084_v57 = vld [vmem:[#allocation2] sm:$0x11]  ;;  %vm9657_vm8 = vnez %v9613_v9  ;;  %v6842_v10 = vld [vmem:[%s9571_s3 + $0x1f4] ss:$8 sps:$4 sm:$0xff]  }
 0x17a   : > { %v2196_v15 = vsel %vm9650_vm7, %v5741_v33, %v2195_v28  ;;  %vm8426_vm4 = vmand %vm9651_vm12, %vm2160_vm2  ;;  %v6836_v0 = vld [vmem:[%s9571_s3 + $0x204] ss:$8 sps:$4 sm:$0xff]   ;;  %v6837_v24 = vld [vmem:[%s9571_s3 + $0x2e0] ss:$8 sps:$4 sm:$0xff]  }
 0x17b   : > { %2197 = vst [vmem:[#allocation2 + $0x8] sm:$0x22] %v2196_v15  ;;  %vm8431_vm5 = vmand %vm9654_vm11, %vm2162_vm0  ;;  %v2108_v41 = vld [vmem:[#allocation2] sm:$0x22]  ;;  %v6845_v56 = vld [vmem:[%s9571_s3 + $0x2d4] ss:$8 sps:$4 sm:$0xff]  }
 0x17c   : > { %vm9659_vm15 = vmor %vm9657_vm8, %vm9658_vm3  ;;  %v2189_v47 = vld [vmem:[#allocation2 + $0x8] sm:$0x11]  ;;  %v6840_v31 = vld [vmem:[%s9571_s3 + $0x1f0] ss:$8 sps:$4 sm:$0xff]  }
 0x17d   : > { %v2085_v45 = vsel %vm9659_vm15, %v5735_v1, %v2084_v57  ;;  %vm2143_vm2 = vmor %vm8415_vm13, %vm8399_vm1  ;;  %v2144_v53 = vld [vmem:[#allocation2] sm:$0x44]  ;;  %vm9663_vm1 = vcmask 785408   ;;  %v6843_v51 = vld [vmem:[%s9571_s3 + $0x2d0] ss:$8 sps:$4 sm:$0xff]  }
 0x17e   : > { %2086 = vst [vmem:[#allocation2] sm:$0x11] %v2085_v45  ;;  %vm9660_vm0 = vmor %vm8362_vm9, %vm8338_vm6  ;;  %v2145_v21 = vsel %vm2143_vm2, %v2137_v23, %v2144_v53  ;;  %v6839_v59 = vld [vmem:[%s9571_s3 + $0x2e4] ss:$8 sps:$4 sm:$0xff]   ;;  %v6846_v8 = vld [vmem:[%s9571_s3 + $0x1e0] ss:$8 sps:$4 sm:$0xff]  }
 0x17f   : > { %v2109_v20 = vsel %vm9660_vm0, %v5737_v13, %v2108_v41  ;;  %vm2164_vm10 = vmor %vm8431_vm5, %vm8426_vm4  ;;  %v2165_v44 = vld [vmem:[#allocation2] sm:$0x88]  ;;  %2146 = vst [vmem:[#allocation2] sm:$0x44] %v2145_v21  ;;  %v6854_v36 = vld [vmem:[%s9571_s3 + $0x1d4] ss:$8 sps:$4 sm:$0xff]  }
 0x180   : > { %2110 = vst [vmem:[#allocation2] sm:$0x22] %v2109_v20  ;;  %vm9661_vm14 = vmmov %vm9659_vm15  ;;  %v2225_v7 = vld [vmem:[#allocation2 + $0x8] sm:$0x44]  ;;  %v2166_v39 = vsel %vm2164_vm10, %v2135_v38, %v2165_v44  ;;  %v6857_v60 = vld [vmem:[%s9571_s3 + $0x2b4] ss:$8 sps:$4 sm:$0xff]  }
 0x181   : > { %v2190_v49 = vsel %vm9661_vm14, %v5740_v18, %v2189_v47  ;;  %v2226_v9 = vsel %vm2143_vm2, %v2223_v50, %v2225_v7  ;;  %2167 = vst [vmem:[#allocation2] sm:$0x88] %v2166_v39  ;;  %vm9662_vm7 = vmmov %vm9660_vm0  ;;  %v6848_v17 = vld [vmem:[%s9571_s3 + $0x1e4] ss:$8 sps:$4 sm:$0xff]   ;;  %v6849_v4 = vld [vmem:[%s9571_s3 + $0x2c0] ss:$8 sps:$4 sm:$0xff]  }
 0x182   : > { %2191 = vst [vmem:[#allocation2 + $0x8] sm:$0x11] %v2190_v49  ;;  %v2201_v61 = vld [vmem:[#allocation2 + $0x8] sm:$0x22]  ;;  %2227 = vst [vmem:[#allocation2 + $0x8] sm:$0x44] %v2226_v9 }
 0x183   : > { %v2202_v12 = vsel %vm9662_vm7, %v5742_v48, %v2201_v61  ;;  %vm9664_vm6 = vmmov %vm9663_vm1  ;;  %v6851_v54 = vld [vmem:[%s9571_s3 + $0x2c4] ss:$8 sps:$4 sm:$0xff]   ;;  %v6852_v25 = vld [vmem:[%s9571_s3 + $0x1d0] ss:$8 sps:$4 sm:$0xff]   ;;  %vm9673_vm15 = vcmask 1046528   ;;  %vm9674_vm2 = vcmask 1045504  }
 0x184   : > { %2203 = vst [vmem:[#allocation2 + $0x8] sm:$0x22] %v2202_v12  ;;  %vm9665_vm9 = vmmov %vm9663_vm1  ;;  %v6855_v28 = vld [vmem:[%s9571_s3 + $0x2b0] ss:$8 sps:$4 sm:$0xff]   ;;  %v6860_v16 = vld [vmem:[%s9571_s3 + $0x1c4] ss:$8 sps:$4 sm:$0xff]  }
 0x185   : > { %vm9666_vm13 = vmmov %vm9663_vm1  ;;  %v6863_v11 = vld [vmem:[%s9571_s3 + $0x2a4] ss:$8 sps:$4 sm:$0xff]   ;;  %v6858_v33 = vld [vmem:[%s9571_s3 + $0x1c0] ss:$8 sps:$4 sm:$0xff]   ;;  %vm9677_vm14 = vcmask 1044480  }
 0x186   : > { %v6861_v30 = vld [vmem:[%s9571_s3 + $0x2a0] ss:$8 sps:$4 sm:$0xff]   ;;  %v6869_v19 = vld [vmem:[%s9571_s3 + $0x374] ss:$8 sps:$4 sm:$0xff]   ;;  %v6864_v22 = vld [vmem:[%s9571_s3 + $0x290] ss:$8 sps:$4 sm:$0xff]  }
 0x187   : > { %v6872_v15 = vld [vmem:[%s9571_s3 + $0x284] ss:$8 sps:$4 sm:$0xff]   ;;  %v6873_v46 = vld [vmem:[%s9571_s3 + $0x360] ss:$8 sps:$4 sm:$0xff]   ;;  %v6878_v57 = vld [vmem:[%s9571_s3 + $0x274] ss:$8 sps:$4 sm:$0xff]  }
 0x188   : > { %v6875_v1 = vld [vmem:[%s9571_s3 + $0x364] ss:$8 sps:$4 sm:$0xff]   ;;  %v6881_v38 = vld [vmem:[%s9571_s3 + $0x354] ss:$8 sps:$4 sm:$0xff]   ;;  %v6879_v27 = vld [vmem:[%s9571_s3 + $0x350] ss:$8 sps:$4 sm:$0xff]  }
 0x189   : > { %v6884_v45 = vld [vmem:[%s9571_s3 + $0x264] ss:$8 sps:$4 sm:$0xff]   ;;  %v6882_v41 = vld [vmem:[%s9571_s3 + $0x260] ss:$8 sps:$4 sm:$0xff]   ;;  %v6890_v18 = vld [vmem:[%s9571_s3 + $0x254] ss:$8 sps:$4 sm:$0xff]  }
 0x18a   : > { %v6887_v13 = vld [vmem:[%s9571_s3 + $0x344] ss:$8 sps:$4 sm:$0xff]   ;;  %v6885_v20 = vld [vmem:[%s9571_s3 + $0x340] ss:$8 sps:$4 sm:$0xff]   ;;  %v6893_v23 = vld [vmem:[%s9571_s3 + $0x334] ss:$8 sps:$4 sm:$0xff]  }
 0x18b   : > { %v8479_v29 = vld [vmem:[#allocation2 + $0x4] ss:$8 sps:$4 sm:$0xff]   ;;  %v8481_v58 = vld [vmem:[#allocation2] ss:$8 sps:$4 sm:$0xff]   ;;  %v6888_v47 = vld [vmem:[%s9571_s3 + $0x250] ss:$8 sps:$4 sm:$0xff]  }
 0x18c   : > { %5774 = vmatprep.mubr.msk.bf16.mxu0 %vm9663_vm1, %v8479_v29  ;;  %5831 = vmatprep.mubr.msk.bf16.mxu1 %vm9664_vm6, %v8479_v29  ;;  %v6891_v48 = vld [vmem:[%s9571_s3 + $0x330] ss:$8 sps:$4 sm:$0xff]   ;;  %v6896_v50 = vld [vmem:[%s9571_s3 + $0x244] ss:$8 sps:$4 sm:$0xff]   ;;  %v6894_v44 = vld [vmem:[%s9571_s3 + $0x240] ss:$8 sps:$4 sm:$0xff]  }
 0x18d   : > { %2443 = vmatmul.mubr.bf16.vlgmr.msra.gmra.mxu0 %v8481_v58  ;;  %2659 = vmatmul.mubr.bf16.vlgmr.msra.gmra.mxu1 %v8481_v58  ;;  %v6899_v53 = vld [vmem:[%s9571_s3 + $0x324] ss:$8 sps:$4 sm:$0xff]   ;;  %v6897_v49 = vld [vmem:[%s9571_s3 + $0x320] ss:$8 sps:$4 sm:$0xff]   ;;  %v6902_v7 = vld [vmem:[%s9571_s3 + $0x3f4] ss:$8 sps:$4 sm:$0xff]  }
 0x18e   : > { %2857 = vmatpush1.bf16.msra.mxu0 %v6815_v40  ;;  %3087 = vmatpush1.bf16.msra.mxu1 %v6818_v26  ;;  %v6905_v21 = vld [vmem:[%s9571_s3 + $0x4d4] ss:$8 sps:$4 sm:$0xff]   ;;  %v6900_v39 = vld [vmem:[%s9571_s3 + $0x3f0] ss:$8 sps:$4 sm:$0xff]   ;;  %v6908_v9 = vld [vmem:[%s9571_s3 + $0x3e4] ss:$8 sps:$4 sm:$0xff]  }
 0x18f   : > { %5888 = vmatprep.mubr.msk.bf16.mxu0 %vm9665_vm9, %v8479_v29  ;;  %5945 = vmatprep.mubr.msk.bf16.mxu1 %vm9666_vm13, %v8479_v29  ;;  %v6903_v61 = vld [vmem:[%s9571_s3 + $0x4d0] ss:$8 sps:$4 sm:$0xff]   ;;  %v6911_v12 = vld [vmem:[%s9571_s3 + $0x4c4] ss:$8 sps:$4 sm:$0xff]   ;;  %vm9667_vm12 = vmmov %vm9663_vm1  ;;  %vm9681_vm9 = vcmask 1043456  }
 0x190   : > { %2858 = vmatprep.subr.bf16.mxu0 %v6824_v37  ;;  %3088 = vmatprep.subr.bf16.mxu1 %v6827_v62  ;;  %v6906_v40 = vld [vmem:[%s9571_s3 + $0x3e0] ss:$8 sps:$4 sm:$0xff]   ;;  %vm9668_vm4 = vmmov %vm9663_vm1  ;;  %v6914_v37 = vld [vmem:[%s9571_s3 + $0x3d4] ss:$8 sps:$4 sm:$0xff]  }
 0x191   : > { %v6909_v26 = vld [vmem:[%s9571_s3 + $0x4c0] ss:$8 sps:$4 sm:$0xff]   ;;  %v6917_v62 = vld [vmem:[%s9571_s3 + $0x4b4] ss:$8 sps:$4 sm:$0xff]   ;;  %vm9669_vm11 = vmmov %vm9663_vm1 }
 0x192   : > { %2859 = vmatpush1.bf16.msra.mxu0 %v6822_v5  ;;  %3089 = vmatpush1.bf16.msra.mxu1 %v6825_v32  ;;  %v6912_v5 = vld [vmem:[%s9571_s3 + $0x3d0] ss:$8 sps:$4 sm:$0xff]   ;;  %vm9670_vm5 = vmmov %vm9663_vm1 }
 0x193   : > { %2860 = vmatprep.subr.bf16.mxu0 %v6830_v52  ;;  %3090 = vmatprep.subr.bf16.mxu1 %v6833_v55  ;;  %v6915_v32 = vld [vmem:[%s9571_s3 + $0x4b0] ss:$8 sps:$4 sm:$0xff]   ;;  %v6920_v52 = vld [vmem:[%s9571_s3 + $0x3c4] ss:$8 sps:$4 sm:$0xff]   ;;  %vm9671_vm8 = vmmov %vm9663_vm1 }
 0x194   : > { %v6923_v55 = vld [vmem:[%s9571_s3 + $0x4a4] ss:$8 sps:$4 sm:$0xff]   ;;  %vm9672_vm3 = vmmov %vm9663_vm1 }
 0x195   : > { %vm9675_vm0 = vmmov %vm9673_vm15 }
 0x196   : > { %2861 = vmatpush1.bf16.msra.mxu0 %v6828_v3  ;;  %3091 = vmatpush1.bf16.msra.mxu1 %v6831_v34  ;;  %v6918_v3 = vld [vmem:[%s9571_s3 + $0x3c0] ss:$8 sps:$4 sm:$0xff]   ;;  %vm9676_vm10 = vmmov %vm9674_vm2 }
 0x197   : > { %2862 = vmatprep.subr.bf16.mxu0 %v6836_v0  ;;  %3092 = vmatprep.subr.bf16.mxu1 %v6839_v59  ;;  %v6921_v34 = vld [vmem:[%s9571_s3 + $0x4a0] ss:$8 sps:$4 sm:$0xff]   ;;  %v6926_v0 = vld [vmem:[%s9571_s3 + $0x3b4] ss:$8 sps:$4 sm:$0xff]   ;;  %vm9678_vm7 = vmmov %vm9675_vm0 }
 0x198   : > { %v6929_v59 = vld [vmem:[%s9571_s3 + $0x494] ss:$8 sps:$4 sm:$0xff]   ;;  %vm9679_vm1 = vmmov %vm9675_vm0 }
 0x199   : > { %vm9680_vm6 = vmmov %vm9677_vm14 }
 0x19a   : > { %2863 = vmatpush1.bf16.msra.mxu0 %v6834_v43  ;;  %3093 = vmatpush1.bf16.msra.mxu1 %v6837_v24  ;;  %v6924_v43 = vld [vmem:[%s9571_s3 + $0x3b0] ss:$8 sps:$4 sm:$0xff]   ;;  %vm9682_vm13 = vmmov %vm9681_vm9 }
 0x19b   : > { %2864 = vmatprep.subr.bf16.mxu0 %v6842_v10  ;;  %3094 = vmatprep.subr.bf16.mxu1 %v6845_v56  ;;  %v6927_v24 = vld [vmem:[%s9571_s3 + $0x490] ss:$8 sps:$4 sm:$0xff]   ;;  %v6932_v10 = vld [vmem:[%s9571_s3 + $0x3a4] ss:$8 sps:$4 sm:$0xff]  }
 0x19c   : > { %v6935_v56 = vld [vmem:[%s9571_s3 + $0x484] ss:$8 sps:$4 sm:$0xff]  }
 0x19e   : > { %2865 = vmatpush1.bf16.msra.mxu0 %v6840_v31  ;;  %3095 = vmatpush1.bf16.msra.mxu1 %v6843_v51  ;;  %v6930_v31 = vld [vmem:[%s9571_s3 + $0x3a0] ss:$8 sps:$4 sm:$0xff]  }
 0x19f   : > { %2866 = vmatprep.subr.bf16.mxu0 %v6848_v17  ;;  %3096 = vmatprep.subr.bf16.mxu1 %v6851_v54  ;;  %v6933_v51 = vld [vmem:[%s9571_s3 + $0x480] ss:$8 sps:$4 sm:$0xff]   ;;  %v6938_v17 = vld [vmem:[%s9571_s3 + $0x394] ss:$8 sps:$4 sm:$0xff]  }
 0x1a0   : > { %v6941_v54 = vld [vmem:[%s9571_s3 + $0x474] ss:$8 sps:$4 sm:$0xff]  }
 0x1a2   : > { %2867 = vmatpush1.bf16.msra.mxu0 %v6846_v8  ;;  %3097 = vmatpush1.bf16.msra.mxu1 %v6849_v4  ;;  %v6936_v8 = vld [vmem:[%s9571_s3 + $0x390] ss:$8 sps:$4 sm:$0xff]  }
 0x1a3   : > { %2868 = vmatprep.subr.bf16.mxu0 %v6854_v36  ;;  %3098 = vmatprep.subr.bf16.mxu1 %v6857_v60  ;;  %v6939_v4 = vld [vmem:[%s9571_s3 + $0x470] ss:$8 sps:$4 sm:$0xff]   ;;  %v6944_v36 = vld [vmem:[%s9571_s3 + $0x384] ss:$8 sps:$4 sm:$0xff]  }
 0x1a4   : > { %v6947_v60 = vld [vmem:[%s9571_s3 + $0x464] ss:$8 sps:$4 sm:$0xff]  }
 0x1a6   : > { %2869 = vmatpush1.bf16.msra.mxu0 %v6852_v25  ;;  %3099 = vmatpush1.bf16.msra.mxu1 %v6855_v28  ;;  %v6942_v25 = vld [vmem:[%s9571_s3 + $0x380] ss:$8 sps:$4 sm:$0xff]  }
 0x1a7   : > { %2870 = vmatprep.subr.bf16.mxu0 %v6860_v16  ;;  %3100 = vmatprep.subr.bf16.mxu1 %v6863_v11  ;;  %v6945_v28 = vld [vmem:[%s9571_s3 + $0x460] ss:$8 sps:$4 sm:$0xff]   ;;  %v6950_v16 = vld [vmem:[%s9571_s3 + $0x454] ss:$8 sps:$4 sm:$0xff]  }
 0x1a8   : > { %v6953_v11 = vld [vmem:[%s9571_s3 + $0x534] ss:$8 sps:$4 sm:$0xff]  }
 0x1aa   : > { %2871 = vmatpush1.bf16.msra.mxu0 %v6858_v33  ;;  %3101 = vmatpush1.bf16.msra.mxu1 %v6861_v30  ;;  %v6948_v33 = vld [vmem:[%s9571_s3 + $0x450] ss:$8 sps:$4 sm:$0xff]  }
 0x1ab   : > { %2876 = vmatprep.subr.bf16.mxu0 %v6866_v6  ;;  %3106 = vmatprep.subr.bf16.mxu1 %v6869_v19  ;;  %v6951_v30 = vld [vmem:[%s9571_s3 + $0x530] ss:$8 sps:$4 sm:$0xff]   ;;  %v6956_v6 = vld [vmem:[%s9571_s3 + $0x444] ss:$8 sps:$4 sm:$0xff]  }
 0x1ac   : > { %v6959_v19 = vld [vmem:[%s9571_s3 + $0x524] ss:$8 sps:$4 sm:$0xff]  }
 0x1ae   : > { %2877 = vmatpush2.bf16.msra.mxu0 %v6864_v22  ;;  %3107 = vmatpush2.bf16.msra.mxu1 %v6867_v42  ;;  %v6954_v22 = vld [vmem:[%s9571_s3 + $0x440] ss:$8 sps:$4 sm:$0xff]  }
 0x1af   : > { %2878 = vmatprep.subr.bf16.mxu0 %v6872_v15  ;;  %3108 = vmatprep.subr.bf16.mxu1 %v6875_v1  ;;  %v6957_v42 = vld [vmem:[%s9571_s3 + $0x520] ss:$8 sps:$4 sm:$0xff]   ;;  %v6962_v15 = vld [vmem:[%s9571_s3 + $0x434] ss:$8 sps:$4 sm:$0xff]  }
 0x1b0   : > { %v6965_v1 = vld [vmem:[%s9571_s3 + $0x514] ss:$8 sps:$4 sm:$0xff]  }
 0x1b2   : > { %2879 = vmatpush2.bf16.msra.mxu0 %v6870_v14  ;;  %3109 = vmatpush2.bf16.msra.mxu1 %v6873_v46  ;;  %v6960_v14 = vld [vmem:[%s9571_s3 + $0x430] ss:$8 sps:$4 sm:$0xff]  }
 0x1b3   : > { %2880 = vmatprep.subr.bf16.mxu0 %v6878_v57  ;;  %3110 = vmatprep.subr.bf16.mxu1 %v6881_v38  ;;  %v6963_v46 = vld [vmem:[%s9571_s3 + $0x510] ss:$8 sps:$4 sm:$0xff]   ;;  %v6968_v57 = vld [vmem:[%s9571_s3 + $0x424] ss:$8 sps:$4 sm:$0xff]  }
 0x1b4   : > { %v6971_v38 = vld [vmem:[%s9571_s3 + $0x504] ss:$8 sps:$4 sm:$0xff]  }
 0x1b6   : > { %2881 = vmatpush2.bf16.msra.mxu0 %v6876_v35  ;;  %3111 = vmatpush2.bf16.msra.mxu1 %v6879_v27  ;;  %v6966_v35 = vld [vmem:[%s9571_s3 + $0x420] ss:$8 sps:$4 sm:$0xff]  }
 0x1b7   : > { %2882 = vmatprep.subr.bf16.mxu0 %v6884_v45  ;;  %3112 = vmatprep.subr.bf16.mxu1 %v6887_v13  ;;  %v6969_v27 = vld [vmem:[%s9571_s3 + $0x500] ss:$8 sps:$4 sm:$0xff]   ;;  %v6974_v45 = vld [vmem:[%s9571_s3 + $0x414] ss:$8 sps:$4 sm:$0xff]  }
 0x1b8   : > { %v6977_v13 = vld [vmem:[%s9571_s3 + $0x4f4] ss:$8 sps:$4 sm:$0xff]  }
 0x1ba   : > { %2883 = vmatpush2.bf16.msra.mxu0 %v6882_v41  ;;  %3113 = vmatpush2.bf16.msra.mxu1 %v6885_v20  ;;  %v6972_v41 = vld [vmem:[%s9571_s3 + $0x410] ss:$8 sps:$4 sm:$0xff]  }
 0x1bb   : > { %2884 = vmatprep.subr.bf16.mxu0 %v6890_v18  ;;  %3114 = vmatprep.subr.bf16.mxu1 %v6893_v23  ;;  %v6975_v20 = vld [vmem:[%s9571_s3 + $0x4f0] ss:$8 sps:$4 sm:$0xff]   ;;  %v6980_v18 = vld [vmem:[%s9571_s3 + $0x404] ss:$8 sps:$4 sm:$0xff]  }
 0x1bc   : > { %v6983_v23 = vld [vmem:[%s9571_s3 + $0x4e4] ss:$8 sps:$4 sm:$0xff]  }
 0x1be   : > { %2885 = vmatpush2.bf16.msra.mxu0 %v6888_v47  ;;  %3115 = vmatpush2.bf16.msra.mxu1 %v6891_v48  ;;  %v6978_v47 = vld [vmem:[%s9571_s3 + $0x400] ss:$8 sps:$4 sm:$0xff]  }
 0x1bf   : > { %2886 = vmatprep.subr.bf16.mxu0 %v6896_v50  ;;  %3116 = vmatprep.subr.bf16.mxu1 %v6899_v53  ;;  %v6981_v48 = vld [vmem:[%s9571_s3 + $0x4e0] ss:$8 sps:$4 sm:$0xff]   ;;  %v6986_v50 = vld [vmem:[%s9571_s3 + $0x5b4] ss:$8 sps:$4 sm:$0xff]  }
 0x1c0   : > { %v6989_v53 = vld [vmem:[%s9571_s3 + $0x694] ss:$8 sps:$4 sm:$0xff]  }
 0x1c2   : > { %2887 = vmatpush2.bf16.msra.mxu0 %v6894_v44  ;;  %3117 = vmatpush2.bf16.msra.mxu1 %v6897_v49  ;;  %v6984_v44 = vld [vmem:[%s9571_s3 + $0x5b0] ss:$8 sps:$4 sm:$0xff]  }
 0x1c3   : > { %3316 = vmatprep.subr.bf16.mxu0 %v6902_v7  ;;  %3546 = vmatprep.subr.bf16.mxu1 %v6905_v21  ;;  %v6987_v49 = vld [vmem:[%s9571_s3 + $0x690] ss:$8 sps:$4 sm:$0xff]   ;;  %v6992_v7 = vld [vmem:[%s9571_s3 + $0x5a4] ss:$8 sps:$4 sm:$0xff]  }
 0x1c4   : > { %v6995_v21 = vld [vmem:[%s9571_s3 + $0x684] ss:$8 sps:$4 sm:$0xff]  }
 0x1c5   : > { %2889 = vmatmul.mubr.bf16.vlgmr.msra.gmra.mxu0 %v8481_v58  ;;  %3119 = vmatmul.mubr.bf16.vlgmr.msra.gmra.mxu1 %v8481_v58 }
 0x1c6   : > { %3317 = vmatpush1.bf16.msra.mxu0 %v6900_v39  ;;  %6002 = vmatprep.mubr.msk.bf16.mxu0 %vm9667_vm12, %v8479_v29  ;;  %v6990_v39 = vld [vmem:[%s9571_s3 + $0x5a0] ss:$8 sps:$4 sm:$0xff]   ;;  %vm9683_vm12 = vmmov %vm9674_vm2 }
 0x1c7   : > { %3547 = vmatpush1.bf16.msra.mxu1 %v6903_v61  ;;  %6059 = vmatprep.mubr.msk.bf16.mxu1 %vm9668_vm4, %v8479_v29  ;;  %v6993_v61 = vld [vmem:[%s9571_s3 + $0x680] ss:$8 sps:$4 sm:$0xff]   ;;  %vm9684_vm4 = vmmov %vm9674_vm2 }
 0x1c8   : > { %3318 = vmatprep.subr.bf16.mxu0 %v6908_v9  ;;  %3548 = vmatprep.subr.bf16.mxu1 %v6911_v12  ;;  %v6998_v9 = vld [vmem:[%s9571_s3 + $0x594] ss:$8 sps:$4 sm:$0xff]  }
 0x1c9   : > { %v7001_v12 = vld [vmem:[%s9571_s3 + $0x674] ss:$8 sps:$4 sm:$0xff]  }
 0x1ca   : > { %3319 = vmatpush1.bf16.msra.mxu0 %v6906_v40  ;;  %v6996_v40 = vld [vmem:[%s9571_s3 + $0x590] ss:$8 sps:$4 sm:$0xff]  }
 0x1cb   : > { %3549 = vmatpush1.bf16.msra.mxu1 %v6909_v26  ;;  %3320 = vmatprep.subr.bf16.mxu0 %v6914_v37  ;;  %v6999_v26 = vld [vmem:[%s9571_s3 + $0x670] ss:$8 sps:$4 sm:$0xff]   ;;  %v7004_v37 = vld [vmem:[%s9571_s3 + $0x584] ss:$8 sps:$4 sm:$0xff]  }
 0x1cc   : > { %3550 = vmatprep.subr.bf16.mxu1 %v6917_v62  ;;  %v7007_v62 = vld [vmem:[%s9571_s3 + $0x664] ss:$8 sps:$4 sm:$0xff]  }
 0x1ce   : > { %3321 = vmatpush1.bf16.msra.mxu0 %v6912_v5  ;;  %v7002_v5 = vld [vmem:[%s9571_s3 + $0x580] ss:$8 sps:$4 sm:$0xff]  }
 0x1cf   : > { %3551 = vmatpush1.bf16.msra.mxu1 %v6915_v32  ;;  %3322 = vmatprep.subr.bf16.mxu0 %v6920_v52  ;;  %v7005_v32 = vld [vmem:[%s9571_s3 + $0x660] ss:$8 sps:$4 sm:$0xff]   ;;  %v7010_v52 = vld [vmem:[%s9571_s3 + $0x574] ss:$8 sps:$4 sm:$0xff]  }
 0x1d0   : > { %3552 = vmatprep.subr.bf16.mxu1 %v6923_v55  ;;  %v7013_v55 = vld [vmem:[%s9571_s3 + $0x654] ss:$8 sps:$4 sm:$0xff]  }
 0x1d2   : > { %3323 = vmatpush1.bf16.msra.mxu0 %v6918_v3  ;;  %v7008_v3 = vld [vmem:[%s9571_s3 + $0x570] ss:$8 sps:$4 sm:$0xff]  }
 0x1d3   : > { %3553 = vmatpush1.bf16.msra.mxu1 %v6921_v34  ;;  %3324 = vmatprep.subr.bf16.mxu0 %v6926_v0  ;;  %v7011_v34 = vld [vmem:[%s9571_s3 + $0x650] ss:$8 sps:$4 sm:$0xff]   ;;  %v7016_v0 = vld [vmem:[%s9571_s3 + $0x564] ss:$8 sps:$4 sm:$0xff]  }
 0x1d4   : > { %3554 = vmatprep.subr.bf16.mxu1 %v6929_v59  ;;  %v7019_v59 = vld [vmem:[%s9571_s3 + $0x644] ss:$8 sps:$4 sm:$0xff]  }
 0x1d6   : > { %3325 = vmatpush1.bf16.msra.mxu0 %v6924_v43  ;;  %v7014_v43 = vld [vmem:[%s9571_s3 + $0x560] ss:$8 sps:$4 sm:$0xff]  }
 0x1d7   : > { %3555 = vmatpush1.bf16.msra.mxu1 %v6927_v24  ;;  %3326 = vmatprep.subr.bf16.mxu0 %v6932_v10  ;;  %v7017_v24 = vld [vmem:[%s9571_s3 + $0x640] ss:$8 sps:$4 sm:$0xff]   ;;  %v7022_v10 = vld [vmem:[%s9571_s3 + $0x554] ss:$8 sps:$4 sm:$0xff]  }
 0x1d8   : > { %3556 = vmatprep.subr.bf16.mxu1 %v6935_v56  ;;  %v7025_v56 = vld [vmem:[%s9571_s3 + $0x634] ss:$8 sps:$4 sm:$0xff]  }
 0x1da   : > { %3327 = vmatpush1.bf16.msra.mxu0 %v6930_v31  ;;  %v7020_v31 = vld [vmem:[%s9571_s3 + $0x550] ss:$8 sps:$4 sm:$0xff]  }
 0x1db   : > { %3557 = vmatpush1.bf16.msra.mxu1 %v6933_v51  ;;  %3328 = vmatprep.subr.bf16.mxu0 %v6938_v17  ;;  %v7023_v51 = vld [vmem:[%s9571_s3 + $0x630] ss:$8 sps:$4 sm:$0xff]   ;;  %v7028_v17 = vld [vmem:[%s9571_s3 + $0x544] ss:$8 sps:$4 sm:$0xff]  }
 0x1dc   : > { %3558 = vmatprep.subr.bf16.mxu1 %v6941_v54  ;;  %v7031_v54 = vld [vmem:[%s9571_s3 + $0x624] ss:$8 sps:$4 sm:$0xff]  }
 0x1de   : > { %3329 = vmatpush1.bf16.msra.mxu0 %v6936_v8  ;;  %v7026_v8 = vld [vmem:[%s9571_s3 + $0x540] ss:$8 sps:$4 sm:$0xff]  }
 0x1df   : > { %3559 = vmatpush1.bf16.msra.mxu1 %v6939_v4  ;;  %3330 = vmatprep.subr.bf16.mxu0 %v6944_v36  ;;  %v7029_v4 = vld [vmem:[%s9571_s3 + $0x620] ss:$8 sps:$4 sm:$0xff]   ;;  %v7034_v36 = vld [vmem:[%s9571_s3 + $0x614] ss:$8 sps:$4 sm:$0xff]  }
 0x1e0   : > { %3560 = vmatprep.subr.bf16.mxu1 %v6947_v60  ;;  %v7037_v60 = vld [vmem:[%s9571_s3 + $0x6f4] ss:$8 sps:$4 sm:$0xff]  }
 0x1e2   : > { %3331 = vmatpush1.bf16.msra.mxu0 %v6942_v25  ;;  %v7032_v25 = vld [vmem:[%s9571_s3 + $0x610] ss:$8 sps:$4 sm:$0xff]  }
 0x1e3   : > { %3561 = vmatpush1.bf16.msra.mxu1 %v6945_v28  ;;  %3336 = vmatprep.subr.bf16.mxu0 %v6950_v16  ;;  %v7035_v28 = vld [vmem:[%s9571_s3 + $0x6f0] ss:$8 sps:$4 sm:$0xff]   ;;  %v7040_v16 = vld [vmem:[%s9571_s3 + $0x604] ss:$8 sps:$4 sm:$0xff]  }
 0x1e4   : > { %3566 = vmatprep.subr.bf16.mxu1 %v6953_v11  ;;  %v7043_v11 = vld [vmem:[%s9571_s3 + $0x6e4] ss:$8 sps:$4 sm:$0xff]  }
 0x1e6   : > { %3337 = vmatpush2.bf16.msra.mxu0 %v6948_v33  ;;  %v7038_v33 = vld [vmem:[%s9571_s3 + $0x600] ss:$8 sps:$4 sm:$0xff]  }
 0x1e7   : > { %3567 = vmatpush2.bf16.msra.mxu1 %v6951_v30  ;;  %3338 = vmatprep.subr.bf16.mxu0 %v6956_v6  ;;  %v7041_v30 = vld [vmem:[%s9571_s3 + $0x6e0] ss:$8 sps:$4 sm:$0xff]   ;;  %v7046_v6 = vld [vmem:[%s9571_s3 + $0x5f4] ss:$8 sps:$4 sm:$0xff]  }
 0x1e8   : > { %3568 = vmatprep.subr.bf16.mxu1 %v6959_v19  ;;  %v7049_v19 = vld [vmem:[%s9571_s3 + $0x6d4] ss:$8 sps:$4 sm:$0xff]  }
 0x1ea   : > { %3339 = vmatpush2.bf16.msra.mxu0 %v6954_v22  ;;  %v7044_v22 = vld [vmem:[%s9571_s3 + $0x5f0] ss:$8 sps:$4 sm:$0xff]  }
 0x1eb   : > { %3569 = vmatpush2.bf16.msra.mxu1 %v6957_v42  ;;  %3340 = vmatprep.subr.bf16.mxu0 %v6962_v15  ;;  %v7047_v42 = vld [vmem:[%s9571_s3 + $0x6d0] ss:$8 sps:$4 sm:$0xff]   ;;  %v7052_v15 = vld [vmem:[%s9571_s3 + $0x5e4] ss:$8 sps:$4 sm:$0xff]  }
 0x1ec   : > { %3570 = vmatprep.subr.bf16.mxu1 %v6965_v1  ;;  %v7055_v1 = vld [vmem:[%s9571_s3 + $0x6c4] ss:$8 sps:$4 sm:$0xff]  }
 0x1ee   : > { %3341 = vmatpush2.bf16.msra.mxu0 %v6960_v14  ;;  %v7050_v14 = vld [vmem:[%s9571_s3 + $0x5e0] ss:$8 sps:$4 sm:$0xff]  }
 0x1ef   : > { %3571 = vmatpush2.bf16.msra.mxu1 %v6963_v46  ;;  %3342 = vmatprep.subr.bf16.mxu0 %v6968_v57  ;;  %v7053_v46 = vld [vmem:[%s9571_s3 + $0x6c0] ss:$8 sps:$4 sm:$0xff]   ;;  %v7058_v57 = vld [vmem:[%s9571_s3 + $0x5d4] ss:$8 sps:$4 sm:$0xff]  }
 0x1f0   : > { %3572 = vmatprep.subr.bf16.mxu1 %v6971_v38  ;;  %v7061_v38 = vld [vmem:[%s9571_s3 + $0x6b4] ss:$8 sps:$4 sm:$0xff]  }
 0x1f2   : > { %3343 = vmatpush2.bf16.msra.mxu0 %v6966_v35  ;;  %v7056_v35 = vld [vmem:[%s9571_s3 + $0x5d0] ss:$8 sps:$4 sm:$0xff]  }
 0x1f3   : > { %3573 = vmatpush2.bf16.msra.mxu1 %v6969_v27  ;;  %3344 = vmatprep.subr.bf16.mxu0 %v6974_v45  ;;  %v7059_v27 = vld [vmem:[%s9571_s3 + $0x6b0] ss:$8 sps:$4 sm:$0xff]   ;;  %v7064_v45 = vld [vmem:[%s9571_s3 + $0x5c4] ss:$8 sps:$4 sm:$0xff]  }
 0x1f4   : > { %3574 = vmatprep.subr.bf16.mxu1 %v6977_v13  ;;  %v7067_v13 = vld [vmem:[%s9571_s3 + $0x6a4] ss:$8 sps:$4 sm:$0xff]  }
 0x1f6   : > { %3345 = vmatpush2.bf16.msra.mxu0 %v6972_v41  ;;  %v7062_v41 = vld [vmem:[%s9571_s3 + $0x5c0] ss:$8 sps:$4 sm:$0xff]  }
 0x1f7   : > { %3575 = vmatpush2.bf16.msra.mxu1 %v6975_v20  ;;  %3346 = vmatprep.subr.bf16.mxu0 %v6980_v18  ;;  %v7065_v20 = vld [vmem:[%s9571_s3 + $0x6a0] ss:$8 sps:$4 sm:$0xff]   ;;  %v7070_v18 = vld [vmem:[%s9571_s3 + $0x774] ss:$8 sps:$4 sm:$0xff]  }
 0x1f8   : > { %3576 = vmatprep.subr.bf16.mxu1 %v6983_v23  ;;  %v7073_v23 = vld [vmem:[%s9571_s3 + $0x854] ss:$8 sps:$4 sm:$0xff]  }
 0x1fa   : > { %3347 = vmatpush2.bf16.msra.mxu0 %v6978_v47  ;;  %v7068_v47 = vld [vmem:[%s9571_s3 + $0x770] ss:$8 sps:$4 sm:$0xff]  }
 0x1fb   : > { %3577 = vmatpush2.bf16.msra.mxu1 %v6981_v48  ;;  %3762 = vmatprep.subr.bf16.mxu0 %v6986_v50  ;;  %v7071_v48 = vld [vmem:[%s9571_s3 + $0x850] ss:$8 sps:$4 sm:$0xff]   ;;  %v7076_v50 = vld [vmem:[%s9571_s3 + $0x764] ss:$8 sps:$4 sm:$0xff]  }
 0x1fc   : > { %3992 = vmatprep.subr.bf16.mxu1 %v6989_v53  ;;  %v7079_v53 = vld [vmem:[%s9571_s3 + $0x844] ss:$8 sps:$4 sm:$0xff]  }
 0x1fd   : > { %3349 = vmatmul.mubr.bf16.vlgmr.msra.gmra.mxu0 %v8481_v58 }
 0x1fe   : > { %3579 = vmatmul.mubr.bf16.vlgmr.msra.gmra.mxu1 %v8481_v58  ;;  %3763 = vmatpush1.bf16.msra.mxu0 %v6984_v44  ;;  %v7074_v44 = vld [vmem:[%s9571_s3 + $0x760] ss:$8 sps:$4 sm:$0xff]  }
 0x1ff   : > { %6116 = vmatprep.mubr.msk.bf16.mxu0 %vm9669_vm11, %v8479_v29  ;;  %3993 = vmatpush1.bf16.msra.mxu1 %v6987_v49  ;;  %v7077_v49 = vld [vmem:[%s9571_s3 + $0x840] ss:$8 sps:$4 sm:$0xff]   ;;  %vm9685_vm11 = vmmov %vm9680_vm6 }
 0x200   : > { %6173 = vmatprep.mubr.msk.bf16.mxu1 %vm9670_vm5, %v8479_v29  ;;  %3764 = vmatprep.subr.bf16.mxu0 %v6992_v7  ;;  %v7082_v7 = vld [vmem:[%s9571_s3 + $0x754] ss:$8 sps:$4 sm:$0xff]   ;;  %vm9686_vm5 = vmmov %vm9681_vm9 }
 0x201   : > { %3994 = vmatprep.subr.bf16.mxu1 %v6995_v21  ;;  %v7085_v21 = vld [vmem:[%s9571_s3 + $0x834] ss:$8 sps:$4 sm:$0xff]  }
 0x202   : > { %3765 = vmatpush1.bf16.msra.mxu0 %v6990_v39  ;;  %v7080_v39 = vld [vmem:[%s9571_s3 + $0x750] ss:$8 sps:$4 sm:$0xff]  }
 0x203   : > { %3995 = vmatpush1.bf16.msra.mxu1 %v6993_v61  ;;  %3766 = vmatprep.subr.bf16.mxu0 %v6998_v9  ;;  %v7083_v61 = vld [vmem:[%s9571_s3 + $0x830] ss:$8 sps:$4 sm:$0xff]   ;;  %v7091_v9 = vld [vmem:[%s9571_s3 + $0x824] ss:$8 sps:$4 sm:$0xff]  }
 0x204   : > { %3996 = vmatprep.subr.bf16.mxu1 %v7001_v12  ;;  %v7086_v12 = vld [vmem:[%s9571_s3 + $0x740] ss:$8 sps:$4 sm:$0xff]  }
 0x206   : > { %3767 = vmatpush1.bf16.msra.mxu0 %v6996_v40  ;;  %v7089_v40 = vld [vmem:[%s9571_s3 + $0x820] ss:$8 sps:$4 sm:$0xff]  }
 0x207   : > { %3997 = vmatpush1.bf16.msra.mxu1 %v6999_v26  ;;  %3768 = vmatprep.subr.bf16.mxu0 %v7004_v37  ;;  %v7094_v26 = vld [vmem:[%s9571_s3 + $0x734] ss:$8 sps:$4 sm:$0xff]  }
 0x208   : > { %3998 = vmatprep.subr.bf16.mxu1 %v7007_v62  ;;  %v7097_v37 = vld [vmem:[%s9571_s3 + $0x814] ss:$8 sps:$4 sm:$0xff]   ;;  %v7092_v62 = vld [vmem:[%s9571_s3 + $0x730] ss:$8 sps:$4 sm:$0xff]  }
 0x20a   : > { %3769 = vmatpush1.bf16.msra.mxu0 %v7002_v5  ;;  %v7095_v5 = vld [vmem:[%s9571_s3 + $0x810] ss:$8 sps:$4 sm:$0xff]  }
 0x20b   : > { %3999 = vmatpush1.bf16.msra.mxu1 %v7005_v32  ;;  %3770 = vmatprep.subr.bf16.mxu0 %v7010_v52  ;;  %v7100_v32 = vld [vmem:[%s9571_s3 + $0x724] ss:$8 sps:$4 sm:$0xff]  }
 0x20c   : > { %4000 = vmatprep.subr.bf16.mxu1 %v7013_v55  ;;  %v7103_v52 = vld [vmem:[%s9571_s3 + $0x804] ss:$8 sps:$4 sm:$0xff]   ;;  %v7098_v55 = vld [vmem:[%s9571_s3 + $0x720] ss:$8 sps:$4 sm:$0xff]  }
 0x20e   : > { %3771 = vmatpush1.bf16.msra.mxu0 %v7008_v3  ;;  %v7101_v3 = vld [vmem:[%s9571_s3 + $0x800] ss:$8 sps:$4 sm:$0xff]  }
 0x20f   : > { %4001 = vmatpush1.bf16.msra.mxu1 %v7011_v34  ;;  %3772 = vmatprep.subr.bf16.mxu0 %v7016_v0  ;;  %v7106_v34 = vld [vmem:[%s9571_s3 + $0x714] ss:$8 sps:$4 sm:$0xff]  }
 0x210   : > { %4002 = vmatprep.subr.bf16.mxu1 %v7019_v59  ;;  %v7109_v0 = vld [vmem:[%s9571_s3 + $0x7f4] ss:$8 sps:$4 sm:$0xff]   ;;  %v7104_v59 = vld [vmem:[%s9571_s3 + $0x710] ss:$8 sps:$4 sm:$0xff]  }
 0x212   : > { %3773 = vmatpush1.bf16.msra.mxu0 %v7014_v43  ;;  %v7107_v43 = vld [vmem:[%s9571_s3 + $0x7f0] ss:$8 sps:$4 sm:$0xff]  }
 0x213   : > { %4003 = vmatpush1.bf16.msra.mxu1 %v7017_v24  ;;  %3774 = vmatprep.subr.bf16.mxu0 %v7022_v10  ;;  %v7112_v24 = vld [vmem:[%s9571_s3 + $0x704] ss:$8 sps:$4 sm:$0xff]  }
 0x214   : > { %4004 = vmatprep.subr.bf16.mxu1 %v7025_v56  ;;  %v7115_v10 = vld [vmem:[%s9571_s3 + $0x7e4] ss:$8 sps:$4 sm:$0xff]   ;;  %v7110_v56 = vld [vmem:[%s9571_s3 + $0x700] ss:$8 sps:$4 sm:$0xff]  }
 0x216   : > { %3775 = vmatpush1.bf16.msra.mxu0 %v7020_v31  ;;  %v7113_v31 = vld [vmem:[%s9571_s3 + $0x7e0] ss:$8 sps:$4 sm:$0xff]  }
 0x217   : > { %4005 = vmatpush1.bf16.msra.mxu1 %v7023_v51  ;;  %3776 = vmatprep.subr.bf16.mxu0 %v7028_v17  ;;  %v7118_v51 = vld [vmem:[%s9571_s3 + $0x7d4] ss:$8 sps:$4 sm:$0xff]  }
 0x218   : > { %4006 = vmatprep.subr.bf16.mxu1 %v7031_v54  ;;  %v7121_v17 = vld [vmem:[%s9571_s3 + $0x8b4] ss:$8 sps:$4 sm:$0xff]   ;;  %v7116_v54 = vld [vmem:[%s9571_s3 + $0x7d0] ss:$8 sps:$4 sm:$0xff]  }
 0x21a   : > { %3777 = vmatpush1.bf16.msra.mxu0 %v7026_v8  ;;  %v7119_v8 = vld [vmem:[%s9571_s3 + $0x8b0] ss:$8 sps:$4 sm:$0xff]  }
 0x21b   : > { %4007 = vmatpush1.bf16.msra.mxu1 %v7029_v4  ;;  %3782 = vmatprep.subr.bf16.mxu0 %v7034_v36  ;;  %v7124_v4 = vld [vmem:[%s9571_s3 + $0x7c4] ss:$8 sps:$4 sm:$0xff]  }
 0x21c   : > { %4012 = vmatprep.subr.bf16.mxu1 %v7037_v60  ;;  %v7127_v36 = vld [vmem:[%s9571_s3 + $0x8a4] ss:$8 sps:$4 sm:$0xff]   ;;  %v7122_v60 = vld [vmem:[%s9571_s3 + $0x7c0] ss:$8 sps:$4 sm:$0xff]  }
 0x21e   : > { %3783 = vmatpush2.bf16.msra.mxu0 %v7032_v25  ;;  %v7125_v25 = vld [vmem:[%s9571_s3 + $0x8a0] ss:$8 sps:$4 sm:$0xff]  }
 0x21f   : > { %4013 = vmatpush2.bf16.msra.mxu1 %v7035_v28  ;;  %3784 = vmatprep.subr.bf16.mxu0 %v7040_v16  ;;  %v7130_v28 = vld [vmem:[%s9571_s3 + $0x7b4] ss:$8 sps:$4 sm:$0xff]  }
 0x220   : > { %4014 = vmatprep.subr.bf16.mxu1 %v7043_v11  ;;  %v7133_v16 = vld [vmem:[%s9571_s3 + $0x894] ss:$8 sps:$4 sm:$0xff]   ;;  %v7128_v11 = vld [vmem:[%s9571_s3 + $0x7b0] ss:$8 sps:$4 sm:$0xff]  }
 0x222   : > { %3785 = vmatpush2.bf16.msra.mxu0 %v7038_v33  ;;  %v7131_v33 = vld [vmem:[%s9571_s3 + $0x890] ss:$8 sps:$4 sm:$0xff]  }
 0x223   : > { %4015 = vmatpush2.bf16.msra.mxu1 %v7041_v30  ;;  %3786 = vmatprep.subr.bf16.mxu0 %v7046_v6  ;;  %v7136_v30 = vld [vmem:[%s9571_s3 + $0x7a4] ss:$8 sps:$4 sm:$0xff]  }
 0x224   : > { %4016 = vmatprep.subr.bf16.mxu1 %v7049_v19  ;;  %v7139_v6 = vld [vmem:[%s9571_s3 + $0x884] ss:$8 sps:$4 sm:$0xff]   ;;  %v7134_v19 = vld [vmem:[%s9571_s3 + $0x7a0] ss:$8 sps:$4 sm:$0xff]  }
 0x226   : > { %3787 = vmatpush2.bf16.msra.mxu0 %v7044_v22  ;;  %v7137_v22 = vld [vmem:[%s9571_s3 + $0x880] ss:$8 sps:$4 sm:$0xff]  }
 0x227   : > { %4017 = vmatpush2.bf16.msra.mxu1 %v7047_v42  ;;  %3788 = vmatprep.subr.bf16.mxu0 %v7052_v15  ;;  %v7142_v42 = vld [vmem:[%s9571_s3 + $0x794] ss:$8 sps:$4 sm:$0xff]  }
 0x228   : > { %4018 = vmatprep.subr.bf16.mxu1 %v7055_v1  ;;  %v7145_v15 = vld [vmem:[%s9571_s3 + $0x874] ss:$8 sps:$4 sm:$0xff]   ;;  %v7140_v1 = vld [vmem:[%s9571_s3 + $0x790] ss:$8 sps:$4 sm:$0xff]  }
 0x22a   : > { %3789 = vmatpush2.bf16.msra.mxu0 %v7050_v14  ;;  %v7143_v14 = vld [vmem:[%s9571_s3 + $0x870] ss:$8 sps:$4 sm:$0xff]  }
 0x22b   : > { %4019 = vmatpush2.bf16.msra.mxu1 %v7053_v46  ;;  %3790 = vmatprep.subr.bf16.mxu0 %v7058_v57  ;;  %v7148_v46 = vld [vmem:[%s9571_s3 + $0x784] ss:$8 sps:$4 sm:$0xff]  }
 0x22c   : > { %4020 = vmatprep.subr.bf16.mxu1 %v7061_v38  ;;  %v7151_v57 = vld [vmem:[%s9571_s3 + $0x864] ss:$8 sps:$4 sm:$0xff]   ;;  %v7146_v38 = vld [vmem:[%s9571_s3 + $0x780] ss:$8 sps:$4 sm:$0xff]  }
 0x22e   : > { %3791 = vmatpush2.bf16.msra.mxu0 %v7056_v35  ;;  %v7149_v35 = vld [vmem:[%s9571_s3 + $0x860] ss:$8 sps:$4 sm:$0xff]  }
 0x22f   : > { %4021 = vmatpush2.bf16.msra.mxu1 %v7059_v27  ;;  %3792 = vmatprep.subr.bf16.mxu0 %v7064_v45  ;;  %v7152_v27 = vld [vmem:[%s9573_s5 + $0x38] sm:$0xff]   ;;  %v7153_v45 = vld [vmem:[%s9573_s5 + $0x88] sm:$0xff]  }
 0x230   : > { %4022 = vmatprep.subr.bf16.mxu1 %v7067_v13  ;;  %v7154_v13 = vld [vmem:[%s9573_s5 + $0x30] sm:$0xff]  }
 0x232   : > { %3793 = vmatpush2.bf16.msra.mxu0 %v7062_v41  ;;  %v7155_v41 = vld [vmem:[%s9573_s5 + $0x80] sm:$0xff]  }
 0x233   : > { %4023 = vmatpush2.bf16.msra.mxu1 %v7065_v20  ;;  %4222 = vmatprep.subr.bf16.mxu0 %v7070_v18  ;;  %v7157_v20 = vld [vmem:[%s9573_s5 + $0x78] sm:$0xff]   ;;  %v7158_v18 = vld [vmem:[%s9573_s5 + $0x20] sm:$0xff]  }
 0x234   : > { %4452 = vmatprep.subr.bf16.mxu1 %v7073_v23  ;;  %v7159_v23 = vld [vmem:[%s9573_s5 + $0x70] sm:$0xff]  }
 0x235   : > { %3795 = vmatmul.mubr.bf16.vlgmr.msra.gmra.mxu0 %v8481_v58 }
 0x236   : > { %4025 = vmatmul.mubr.bf16.vlgmr.msra.gmra.mxu1 %v8481_v58  ;;  %4223 = vmatpush1.bf16.msra.mxu0 %v7068_v47  ;;  %v7160_v47 = vld [vmem:[%s9573_s5 + $0x18] sm:$0xff]  }
 0x237   : > { %6230 = vmatprep.mubr.msk.bf16.mxu0 %vm9671_vm8, %v8479_v29  ;;  %4453 = vmatpush1.bf16.msra.mxu1 %v7071_v48  ;;  %v7161_v48 = vld [vmem:[%s9573_s5 + $0x68] sm:$0xff]   ;;  %vm9687_vm8 = vmmov %vm9680_vm6 }
 0x238   : > { %6287 = vmatprep.mubr.msk.bf16.mxu1 %vm9672_vm3, %v8479_v29  ;;  %4224 = vmatprep.subr.bf16.mxu0 %v7076_v50  ;;  %v7088_v29 = vld [vmem:[%s9571_s3 + $0x744] ss:$8 sps:$4 sm:$0xff]   ;;  %v7162_v50 = vld [vmem:[%s9573_s5 + $0x10] sm:$0xff]   ;;  %vm9688_vm3 = vmmov %vm9686_vm5 }
 0x239   : > { %4454 = vmatprep.subr.bf16.mxu1 %v7079_v53  ;;  %v7163_v53 = vld [vmem:[%s9573_s5 + $0x60] sm:$0xff]  }
 0x23a   : > { %4225 = vmatpush1.bf16.msra.mxu0 %v7074_v44  ;;  %v7164_v44 = vld [vmem:[%s9573_s5 + $0x8] sm:$0xff]  }
 0x23b   : > { %4455 = vmatpush1.bf16.msra.mxu1 %v7077_v49  ;;  %4226 = vmatprep.subr.bf16.mxu0 %v7082_v7  ;;  %v7165_v49 = vld [vmem:[%s9573_s5 + $0x58] sm:$0xff]   ;;  %v7166_v7 = vld [vmem:[%s9573_s5] sm:$0xff]  }
 0x23c   : > { %4456 = vmatprep.subr.bf16.mxu1 %v7085_v21  ;;  %v7167_v21 = vld [vmem:[%s9573_s5 + $0x50] sm:$0xff]  }
 0x23e   : > { %4227 = vmatpush1.bf16.msra.mxu0 %v7080_v39  ;;  %v7168_v39 = vld [vmem:[%s9573_s5 + $0x48] sm:$0xff]  }
 0x23f   : > { %4457 = vmatpush1.bf16.msra.mxu1 %v7083_v61  ;;  %4228 = vmatprep.subr.bf16.mxu0 %v7088_v29  ;;  %v7169_v61 = vld [vmem:[%s9573_s5 + $0x98] sm:$0xff]   ;;  %v7170_v29 = vld [vmem:[%s9573_s5 + $0x40] sm:$0xff]  }
 0x240   : > { %4458 = vmatprep.subr.bf16.mxu1 %v7091_v9  ;;  %v7171_v9 = vld [vmem:[%s9573_s5 + $0x90] sm:$0xff]  }
 0x242   : > { %4229 = vmatpush1.bf16.msra.mxu0 %v7086_v12 }
 0x243   : > { %4459 = vmatpush1.bf16.msra.mxu1 %v7089_v40  ;;  %4230 = vmatprep.subr.bf16.mxu0 %v7094_v26 }
 0x244   : > { %4460 = vmatprep.subr.bf16.mxu1 %v7097_v37 }
 0x246   : > { %4231 = vmatpush1.bf16.msra.mxu0 %v7092_v62 }
 0x247   : > { %4461 = vmatpush1.bf16.msra.mxu1 %v7095_v5  ;;  %4232 = vmatprep.subr.bf16.mxu0 %v7100_v32 }
 0x248   : > { %4462 = vmatprep.subr.bf16.mxu1 %v7103_v52 }
 0x24a   : > { %4233 = vmatpush1.bf16.msra.mxu0 %v7098_v55 }
 0x24b   : > { %4463 = vmatpush1.bf16.msra.mxu1 %v7101_v3  ;;  %4234 = vmatprep.subr.bf16.mxu0 %v7106_v34 }
 0x24c   : > { %4464 = vmatprep.subr.bf16.mxu1 %v7109_v0 }
 0x24d   : > { %v2444_v12 = vpop.f32.mrf.mxu0  ;;  %v2660_v26 = vpop.f32.mrf.mxu1 }
 0x24e   : > { %4235 = vmatpush1.bf16.msra.mxu0 %v7104_v59 }
 0x24f   : > { %4465 = vmatpush1.bf16.msra.mxu1 %v7107_v43  ;;  %4236 = vmatprep.subr.bf16.mxu0 %v7112_v24  ;;  %v2446_v40 = vpop.f32.mrf.mxu0  ;;  %v2662_v62 = vpop.f32.mrf.mxu1 }
 0x250   : > { %4466 = vmatprep.subr.bf16.mxu1 %v7115_v10 }
 0x251   : > { %v2448_v37 = vpop.f32.mrf.mxu0  ;;  %v2664_v32 = vpop.f32.mrf.mxu1 }
 0x252   : > { %4237 = vmatpush1.bf16.msra.mxu0 %v7110_v56 }
 0x253   : > { %4467 = vmatpush1.bf16.msra.mxu1 %v7113_v31  ;;  %4242 = vmatprep.subr.bf16.mxu0 %v7118_v51  ;;  %v2450_v5 = vpop.f32.mrf.mxu0  ;;  %v2666_v55 = vpop.f32.mrf.mxu1 }
 0x254   : > { %4472 = vmatprep.subr.bf16.mxu1 %v7121_v17 }
 0x256   : > { %4243 = vmatpush2.bf16.msra.mxu0 %v7116_v54 }
 0x257   : > { %4473 = vmatpush2.bf16.msra.mxu1 %v7119_v8  ;;  %4244 = vmatprep.subr.bf16.mxu0 %v7124_v4 }
 0x258   : > { %4474 = vmatprep.subr.bf16.mxu1 %v7127_v36 }
 0x25a   : > { %4245 = vmatpush2.bf16.msra.mxu0 %v7122_v60 }
 0x25b   : > { %4475 = vmatpush2.bf16.msra.mxu1 %v7125_v25  ;;  %4246 = vmatprep.subr.bf16.mxu0 %v7130_v28  ;;  %v2674_v28 = vrot.slane %v2664_v32, 1 }
 0x25c   : > { %4476 = vmatprep.subr.bf16.mxu1 %v7133_v16 }
 0x25e   : > { %4247 = vmatpush2.bf16.msra.mxu0 %v7128_v11  ;;  %v2673_v11 = vrot.slane %v2660_v26, 1 }
 0x25f   : > { %4477 = vmatpush2.bf16.msra.mxu1 %v7131_v33  ;;  %4248 = vmatprep.subr.bf16.mxu0 %v7136_v30  ;;  %v2677_v30 = vrot.slane %v2666_v55, 1 }
 0x260   : > { %4478 = vmatprep.subr.bf16.mxu1 %v7139_v6 }
 0x262   : > { %4249 = vmatpush2.bf16.msra.mxu0 %v7134_v19  ;;  %v2675_v19 = vsel %vm9673_vm15, %v2673_v11, %v2674_v28  ;;  %vm9690_vm15 = vmmov %vm9675_vm0 }
 0x263   : > { %4479 = vmatpush2.bf16.msra.mxu1 %v7137_v22  ;;  %4250 = vmatprep.subr.bf16.mxu0 %v7142_v42 }
 0x264   : > { %4480 = vmatprep.subr.bf16.mxu1 %v7145_v15  ;;  %v2676_v15 = vrot.slane %v2662_v62, 1 }
 0x266   : > { %4251 = vmatpush2.bf16.msra.mxu0 %v7140_v1  ;;  %v2685_v1 = vadd.f32 %v2674_v28, %v2448_v37 }
 0x267   : > { %4481 = vmatpush2.bf16.msra.mxu1 %v7143_v14  ;;  %4252 = vmatprep.subr.bf16.mxu0 %v7148_v46 }
 0x268   : > { %4482 = vmatprep.subr.bf16.mxu1 %v7151_v57  ;;  %v2683_v57 = vadd.f32 %v2675_v19, %v2444_v12 }
 0x26a   : > { %4253 = vmatpush2.bf16.msra.mxu0 %v7146_v38  ;;  %v2678_v38 = vsel %vm9675_vm0, %v2676_v15, %v2677_v30 }
 0x26b   : > { %4483 = vmatpush2.bf16.msra.mxu1 %v7149_v35  ;;  %4663 = vmatprep.subr.bf16.mxu0 %v7280_v2 }
 0x26c   : > { %4766 = vmatprep.subr.bf16.mxu1 %v7280_v2 }
 0x26d   : > { %4255 = vmatmul.mubr.bf16.vlgmr.msra.gmra.mxu0 %v8481_v58 }
 0x26e   : > { %4485 = vmatmul.mubr.bf16.vlgmr.msra.gmra.mxu1 %v8481_v58  ;;  %4664 = vmatpush1.bf16.msra.mxu0 %v7153_v45  ;;  %v7156_v58 = vld [vmem:[%s9573_s5 + $0x28] sm:$0xff]  }
 0x26f   : > { %4767 = vmatpush1.bf16.msra.mxu1 %v7152_v27  ;;  %4665 = vmatprep.subr.bf16.mxu0 %v7280_v2 }
 0x270   : > { %4768 = vmatprep.subr.bf16.mxu1 %v7280_v2 }
 0x272   : > { %4666 = vmatpush1.bf16.msra.mxu0 %v7155_v41 }
 0x273   : > { %4769 = vmatpush1.bf16.msra.mxu1 %v7154_v13  ;;  %4667 = vmatprep.subr.bf16.mxu0 %v7280_v2 }
 0x274   : > { %4770 = vmatprep.subr.bf16.mxu1 %v7280_v2 }
 0x276   : > { %4668 = vmatpush1.bf16.msra.mxu0 %v7157_v20 }
 0x277   : > { %4771 = vmatpush1.bf16.msra.mxu1 %v7156_v58  ;;  %4669 = vmatprep.subr.bf16.mxu0 %v7280_v2 }
 0x278   : > { %4772 = vmatprep.subr.bf16.mxu1 %v7280_v2 }
 0x27a   : > { %4670 = vmatpush1.bf16.msra.mxu0 %v7159_v23 }
 0x27b   : > { %4773 = vmatpush1.bf16.msra.mxu1 %v7158_v18  ;;  %4671 = vmatprep.subr.bf16.mxu0 %v7280_v2 }
 0x27c   : > { %4774 = vmatprep.subr.bf16.mxu1 %v7280_v2 }
 0x27e   : > { %4672 = vmatpush1.bf16.msra.mxu0 %v7161_v48  ;;  %v2686_v48 = vadd.f32 %v2677_v30, %v2450_v5 }
 0x27f   : > { %4775 = vmatpush1.bf16.msra.mxu1 %v7160_v47  ;;  %4673 = vmatprep.subr.bf16.mxu0 %v7280_v2  ;;  %v2684_v47 = vadd.f32 %v2678_v38, %v2446_v40 }
 0x280   : > { %4776 = vmatprep.subr.bf16.mxu1 %v7280_v2 }
 0x282   : > { %4674 = vmatpush1.bf16.msra.mxu0 %v7163_v53 }
 0x283   : > { %4777 = vmatpush1.bf16.msra.mxu1 %v7162_v50  ;;  %4675 = vmatprep.subr.bf16.mxu0 %v7280_v2 }
 0x284   : > { %4778 = vmatprep.subr.bf16.mxu1 %v7280_v2 }
 0x285   : > { %v2890_v52 = vpop.f32.mrf.mxu0  ;;  %v3120_v34 = vpop.f32.mrf.mxu1 }
 0x286   : > { %4676 = vmatpush1.bf16.msra.mxu0 %v7165_v49  ;;  %v2903_v22 = vrot.slane %v2890_v52, 2  ;;  %v3133_v20 = vrot.slane %v3120_v34, 3 }
 0x287   : > { %4779 = vmatpush1.bf16.msra.mxu1 %v7164_v44  ;;  %4677 = vmatprep.subr.bf16.mxu0 %v7280_v2  ;;  %v2892_v3 = vpop.f32.mrf.mxu0  ;;  %v9255_v59 = vpop.f32.mrf.mxu1 }
 0x288   : > { %4780 = vmatprep.subr.bf16.mxu1 %v7280_v2  ;;  %v2906_v13 = vrot.slane %v2892_v3, 2  ;;  %v3136_v44 = vrot.slane %v9255_v59, 3 }
 0x289   : > { %v2894_v0 = vpop.f32.mrf.mxu0  ;;  %v3124_v24 = vpop.f32.mrf.mxu1 }
 0x28a   : > { %4678 = vmatpush1.bf16.msra.mxu0 %v7167_v21  ;;  %v2904_v33 = vrot.slane %v2894_v0, 2  ;;  %v3134_v35 = vrot.slane %v3124_v24, 3 }
 0x28b   : > { %4781 = vmatpush1.bf16.msra.mxu1 %v7166_v7  ;;  %4691 = vmatprep.subr.bf16.mxu0 %v7280_v2  ;;  %v2896_v43 = vpop.f32.mrf.mxu0  ;;  %v9259_v56 = vpop.f32.mrf.mxu1 }
 0x28c   : > { %4794 = vmatprep.subr.bf16.mxu1 %v7280_v2  ;;  %v2905_v14 = vsel %vm9674_vm2, %v2903_v22, %v2904_v33  ;;  %v2907_v46 = vrot.slane %v2896_v43, 2  ;;  %v2915_v41 = vadd.f32 %v2904_v33, %v2685_v1  ;;  %v3135_v49 = vsel %vm9677_vm14, %v3133_v20, %v3134_v35  ;;  %vm9691_vm2 = vmmov %vm9675_vm0 }
 0x28d   : > { %v2913_v18 = vadd.f32 %v2905_v14, %v2683_v57  ;;  %v3137_v7 = vrot.slane %v9259_v56, 3  ;;  %vm4659_vm0 = vcmask 261120  }
 0x28e   : > { %4692 = vmatpush2.bf16.msra.mxu0 %v7169_v61  ;;  %v2908_v50 = vsel %vm9676_vm10, %v2906_v13, %v2907_v46  ;;  %v2916_v61 = vadd.f32 %v2907_v46, %v2686_v48  ;;  %vm7282_vm10 = vmmov 0  }
 0x28f   : > { %4795 = vmatpush2.bf16.msra.mxu1 %v7168_v39  ;;  %4693 = vmatprep.subr.bf16.mxu0 %v7280_v2  ;;  %v3145_v39 = vadd.f32 %v3134_v35, %v2915_v41  ;;  %v3143_v26 = vadd.f32 %v3135_v49, %v2913_v18  ;;  %v2914_v40 = vadd.f32 %v2908_v50, %v2684_v47 }
 0x290   : > { %4796 = vmatprep.subr.bf16.mxu1 %v7280_v2 }
 0x292   : > { %4694 = vmatpush2.bf16.msra.mxu0 %v7171_v9 }
 0x293   : > { %4797 = vmatpush2.bf16.msra.mxu1 %v7170_v29  ;;  %4893 = vmatprep.subr.bf16.mxu0 %v7280_v2 }
 0x294   : > { %5021 = vmatprep.subr.bf16.mxu1 %v7280_v2 }
 0x2bd   : > { %v9257_v10 = vpop.f32.mrf.mxu0 }
 0x2be   : > { %v3580_v51 = vpop.f32.mrf.mxu1  ;;  %v3363_v32 = vrot.slane %v9257_v10, 4 }
 0x2bf   : > { %v9261_v31 = vpop.f32.mrf.mxu0 }
 0x2c0   : > { %v9265_v54 = vpop.f32.mrf.mxu1  ;;  %v3366_v0 = vrot.slane %v9261_v31, 4 }
 0x2c1   : > { %v9263_v17 = vpop.f32.mrf.mxu0 }
 0x2c2   : > { %v3584_v4 = vpop.f32.mrf.mxu1  ;;  %v3364_v29 = vrot.slane %v9263_v17, 4  ;;  %v3138_v17 = vsel %vm9680_vm6, %v3136_v44, %v3137_v7 }
 0x2c3   : > { %v9267_v8 = vpop.f32.mrf.mxu0 }
 0x2c4   : > { %v3586_v60 = vpop.f32.mrf.mxu1  ;;  %v3367_v37 = vrot.slane %v9267_v8, 4  ;;  %v3365_v8 = vsel %vm9681_vm9, %v3363_v32, %v3364_v29 }
 0x2c5   : > { %v3373_v47 = vadd.f32 %v3365_v8, %v3143_v26 }
 0x2c6   : > { %v3368_v10 = vsel %vm9682_vm13, %v3366_v0, %v3367_v37 }
 0x2f5   : > { %v3796_v36 = vpop.f32.mrf.mxu0 }
 0x2f6   : > { %v4026_v16 = vpop.f32.mrf.mxu1  ;;  %v3809_v23 = vrot.slane %v3796_v36, 1  ;;  %v3146_v36 = vadd.f32 %v3137_v7, %v2916_v61 }
 0x2f7   : > { %v3798_v25 = vpop.f32.mrf.mxu0  ;;  %v4039_v59 = vrot.slane %v4026_v16, 2 }
 0x2f8   : > { %v4028_v42 = vpop.f32.mrf.mxu1  ;;  %v3812_v9 = vrot.slane %v3798_v25, 1  ;;  %v3375_v25 = vadd.f32 %v3364_v29, %v3145_v39  ;;  %v3376_v44 = vadd.f32 %v3367_v37, %v3146_v36 }
 0x2f9   : > { %v3800_v6 = vpop.f32.mrf.mxu0 }
 0x2fa   : > { %v3810_v27 = vrot.slane %v3800_v6, 1  ;;  %v4030_v58 = vpop.f32.mrf.mxu1 }
 0x2fb   : > { %v3802_v45 = vpop.f32.mrf.mxu0  ;;  %v4040_v62 = vrot.slane %v4030_v58, 2 }
 0x2fc   : > { %v3813_v53 = vrot.slane %v3802_v45, 1  ;;  %v3811_v21 = vsel %vm9678_vm7, %v3809_v23, %v3810_v27  ;;  %v4032_v12 = vpop.f32.mrf.mxu1  ;;  %v3821_v55 = vadd.f32 %v3810_v27, %v3584_v4  ;;  %v3144_v23 = vadd.f32 %v3138_v17, %v2914_v40 }
 0x2fd   : > { %v3819_v52 = vadd.f32 %v3811_v21, %v3580_v51  ;;  %v4043_v24 = vrot.slane %v4032_v12, 2  ;;  %v4042_v51 = vrot.slane %v4028_v42, 2  ;;  %v4041_v4 = vsel %vm9683_vm12, %v4039_v59, %v4040_v62 }
 0x2fe   : > { %v3814_v3 = vsel %vm9679_vm1, %v3812_v9, %v3813_v53  ;;  %v3822_v43 = vadd.f32 %v3813_v53, %v3586_v60  ;;  %v4051_v16 = vadd.f32 %v4040_v62, %v3821_v55  ;;  %v4535_v53 = vld [vmem:[%s9572_s4] sm:$0x3]  ;;  %v3374_v39 = vadd.f32 %v3368_v10, %v3144_v23  ;;  %v7172_v10 = vld [vmem:[%s9573_s5 + $0x128] sm:$0xff]  }
 0x2ff   : > { %v3820_v11 = vadd.f32 %v3814_v3, %v9265_v54  ;;  %v4049_v31 = vadd.f32 %v4041_v4, %v3819_v52  ;;  %v4044_v19 = vsel %vm9684_vm4, %v4042_v51, %v4043_v24  ;;  %v9689_v40 = vsub.s32 0, %v8097_v63 }
 0x300   : > { %v4052_v22 = vadd.f32 %v4043_v24, %v3822_v43  ;;  %v9692_v43 = vsub.s32 1, %v8097_v63  ;;  %v7173_v63 = vld [vmem:[%s9573_s5 + $0xd8] sm:$0xff]  }
 0x301   : > { %v4050_v27 = vadd.f32 %v4044_v19, %v3820_v11  ;;  %v4540_v26 = vrot.slane %v4535_v53, %v9689_v40  ;;  %v7179_v19 = vld [vmem:[%s9573_s5 + $0xc0] sm:$0xff]   ;;  %v7281_v40 = vmov 0.0  }
 0x302   : > { %v9308_v24 = vrot.slane %v4535_v53, %v9692_v43  ;;  %v7195_v53 = vld [vmem:[%s9573_s5 + $0x160] sm:$0xff]  }
 0x32d   : > { %v4256_v5 = vpop.f32.mrf.mxu0 }
 0x32e   : > { %v4486_v34 = vpop.f32.mrf.mxu1  ;;  %v4269_v60 = vrot.slane %v4256_v5, 3 }
 0x32f   : > { %v4258_v56 = vpop.f32.mrf.mxu0  ;;  %v4499_v15 = vrot.slane %v4486_v34, 4 }
 0x330   : > { %v4488_v28 = vpop.f32.mrf.mxu1  ;;  %v4272_v46 = vrot.slane %v4258_v56, 3 }
 0x331   : > { %v4260_v33 = vpop.f32.mrf.mxu0  ;;  %v4502_v54 = vrot.slane %v4488_v28, 4 }
 0x332   : > { %v4270_v30 = vrot.slane %v4260_v33, 3  ;;  %v4490_v6 = vpop.f32.mrf.mxu1 }
 0x333   : > { %v4500_v1 = vrot.slane %v4490_v6, 4  ;;  %v4262_v14 = vpop.f32.mrf.mxu0  ;;  %v7178_v6 = vld [vmem:[%s9573_s5 + $0x110] sm:$0xff]  }
 0x334   : > { %v4271_v57 = vsel %vm9685_vm11, %v4269_v60, %v4270_v30  ;;  %v4281_v42 = vadd.f32 %v4270_v30, %v4051_v16  ;;  %v4273_v38 = vrot.slane %v4262_v14, 3  ;;  %v4492_v35 = vpop.f32.mrf.mxu1  ;;  %v7175_v16 = vld [vmem:[%s9573_s5 + $0xd0] sm:$0xff]   ;;  %v7176_v60 = vld [vmem:[%s9573_s5 + $0x118] sm:$0xff]   ;;  %v7177_v30 = vld [vmem:[%s9573_s5 + $0xc8] sm:$0xff]  }
 0x335   : > { %v4279_v45 = vadd.f32 %v4271_v57, %v4049_v31  ;;  %v4503_v13 = vrot.slane %v4492_v35, 4  ;;  %v4501_v41 = vsel %vm9686_vm5, %v4499_v15, %v4500_v1  ;;  %v7174_v31 = vld [vmem:[%s9573_s5 + $0x120] sm:$0xff]   ;;  %v7181_v15 = vld [vmem:[%s9573_s5 + $0xb8] sm:$0xff]   ;;  %v7183_v14 = vld [vmem:[%s9573_s5 + $0xb0] sm:$0xff]  }
 0x336   : > { %v4511_v58 = vadd.f32 %v4500_v1, %v4281_v42  ;;  %v4274_v20 = vsel %vm9687_vm8, %v4272_v46, %v4273_v38  ;;  %v4282_v18 = vadd.f32 %v4273_v38, %v4052_v22  ;;  %v7180_v22 = vld [vmem:[%s9573_s5 + $0x108] sm:$0xff]   ;;  %v7182_v1 = vld [vmem:[%s9573_s5 + $0x100] sm:$0xff]   ;;  %v7184_v46 = vld [vmem:[%s9573_s5 + $0xf8] sm:$0xff]  }
 0x337   : > { %v4509_v48 = vadd.f32 %v4501_v41, %v4279_v45  ;;  %v4280_v50 = vadd.f32 %v4274_v20, %v4050_v27  ;;  %v4504_v7 = vsel %vm9688_vm3, %v4502_v54, %v4503_v13  ;;  %v7185_v57 = vld [vmem:[%s9573_s5 + $0xa8] sm:$0xff]   ;;  %v7186_v42 = vld [vmem:[%s9573_s5 + $0xf0] sm:$0xff]   ;;  %v7187_v38 = vld [vmem:[%s9573_s5 + $0xa0] sm:$0xff]  }
 0x338   : > { %v4515_v49 = vmax.f32 %v3375_v25, %v4511_v58  ;;  %v4512_v21 = vadd.f32 %v4503_v13, %v4282_v18  ;;  %v7188_v27 = vld [vmem:[%s9573_s5 + $0x138] sm:$0xff]   ;;  %v7189_v54 = vld [vmem:[%s9573_s5 + $0xe8] sm:$0xff]   ;;  %v7190_v45 = vld [vmem:[%s9573_s5 + $0x130] sm:$0xff]  }
 0x339   : > { %v4513_v61 = vmax.f32 %v3373_v47, %v4509_v48  ;;  %v4510_v29 = vadd.f32 %v4504_v7, %v4280_v50  ;;  %v7191_v41 = vld [vmem:[%s9573_s5 + $0xe0] sm:$0xff]   ;;  %v7192_v18 = vld [vmem:[%s9573_s5 + $0x178] sm:$0xff]   ;;  %v7193_v48 = vld [vmem:[%s9573_s5 + $0x170] sm:$0xff]  }
 0x33a   : > { %v4522_v9 = vrot.slane %v4515_v49, 1  ;;  %v9295_v12 = vmax.f32 %v3376_v44, %v4512_v21  ;;  %v7194_v50 = vld [vmem:[%s9573_s5 + $0x168] sm:$0xff]   ;;  %v7196_v44 = vld [vmem:[%s9573_s5 + $0x158] sm:$0xff]   ;;  %v7199_v21 = vld [vmem:[%s9573_s5 + $0x140] sm:$0xff]  }
 0x33b   : > { %v4521_v62 = vrot.slane %v4513_v61, 1  ;;  %v4514_v5 = vmax.f32 %v3374_v39, %v4510_v29  ;;  %v7198_v7 = vld [vmem:[%s9573_s5 + $0x148] sm:$0xff]  }
 0x33c   : > { %v4533_v32 = vmax.f32 %v4515_v49, %v4522_v9  ;;  %v4525_v52 = vrot.slane %v9295_v12, 1  ;;  %v7197_v49 = vld [vmem:[%s9573_s5 + $0x150] sm:$0xff]   ;;  %v7200_v39 = vld [vmem:[%s9573_s5 + $0x188] sm:$0xff]  }
 0x33d   : > { %v4523_v37 = vsel %vm9690_vm15, %v4521_v62, %v4522_v9  ;;  %v4524_v55 = vrot.slane %v4514_v5, 1  ;;  %v7205_v62 = vld [vmem:[%s9575_s7 + $0x20] sm:$0xff]  }
 0x33e   : > { %v4531_v3 = vmax.f32 %v4513_v61, %v4523_v37  ;;  %v9301_v34 = vadd.f32 %v4540_v26, %v4533_v32  ;;  %v4534_v35 = vmax.f32 %v9295_v12, %v4525_v52  ;;  %v7201_v61 = vld [vmem:[%s9573_s5 + $0x180] sm:$0xff]   ;;  %v7202_v12 = vld [vmem:[%s9575_s7 + $0x38] sm:$0xff]   ;;  %v7207_v32 = vld [vmem:[%s9575_s7 + $0x10] sm:$0xff]  }
 0x33f   : > { %v4526_v0 = vsel %vm9691_vm2, %v4524_v55, %v4525_v52  ;;  %v7208_v52 = vld [vmem:[%s9575_s7 + $0x8] sm:$0xff]   ;;  %v7209_v37 = vld [vmem:[%s9575_s7] sm:$0xff]  }
 0x340   : > { %v4532_v59 = vmax.f32 %v4514_v5, %v4526_v0  ;;  %v4547_v56 = vadd.f32 %v4540_v26, %v4531_v3  ;;  %v5063_v13 = vadd.f32 %v9308_v24, %v4534_v35  ;;  %v5064_v29 = vmax.f32 %v9301_v34, 0.0  ;;  %v7203_v26 = vld [vmem:[%s9575_s7 + $0x30] sm:$0xff]   ;;  %v7206_v5 = vld [vmem:[%s9575_s7 + $0x18] sm:$0xff]  }
 0x341   : > { %v7215_v35 = vld [vmem:[%s9577_s9 + $0x10] sm:$0xff]  }
 0x342   : > { %v4548_v17 = vadd.f32 %v9308_v24, %v4532_v59  ;;  %v4549_v36 = vmax.f32 %v4547_v56, 0.0  ;;  %v5065_v58 = vmax.f32 %v5063_v13, 0.0  ;;  %v5066_v9 = vpack.c.bf16 %v5064_v29, %v5064_v29 }
 0x344   : > { %v4550_v8 = vmax.f32 %v4548_v17, 0.0  ;;  %v9311_v25 = vpack.c.bf16 %v4549_v36, %v4549_v36  ;;  %v5067_v47 = vpack.c.bf16 %v5065_v58, %v5065_v58 }
 0x346   : > { %v4552_v28 = vpack.c.bf16 %v4550_v8, %v4550_v8  ;;  %v4596_v11 = vrot.slane %v9311_v25, 1  ;;  %v4955_v20 = vrot.slane %v9311_v25, 3  ;;  %v4827_v23 = vrot.slane %v9311_v25, 2 }
 0x348   : > { %6329 = vmatprep.mubr.msk.bf16.mxu1 %vm4659_vm0, %v4552_v28  ;;  %v4597_v51 = vrot.slane %v4552_v28, 1  ;;  %v4956_v4 = vrot.slane %v4552_v28, 3  ;;  %v4828_v33 = vrot.slane %v4552_v28, 2 }
 0x349   : > { %4799 = vmatmul.mubr.bf16.vlgmr.msra.gmra.mxu1 %v9311_v25 }
 0x34a   : > { %5022 = vmatpush1.bf16.msra.mxu1 %v7172_v10  ;;  %6318 = vmatprep.mubr.msk.bf16.mxu0 %vm4659_vm0, %v4597_v51 }
 0x34b   : > { %6391 = vmatprep.mubr.msk.bf16.mxu1 %vm4659_vm0, %v4956_v4  ;;  %4696 = vmatmul.mubr.bf16.vlgmr.msra.gmra.mxu0 %v4596_v11 }
 0x34c   : > { %4894 = vmatpush1.bf16.msra.mxu0 %v7173_v63  ;;  %6360 = vmatprep.mubr.msk.bf16.mxu0 %vm4659_vm0, %v4828_v33 }
 0x34d   : > { %5023 = vmatprep.subr.bf16.mxu1 %v7280_v2  ;;  %4895 = vmatprep.subr.bf16.mxu0 %v7280_v2 }
 0x34e   : > { %5024 = vmatpush1.bf16.msra.mxu1 %v7174_v31 }
 0x34f   : > { %5025 = vmatprep.subr.bf16.mxu1 %v7280_v2 }
 0x350   : > { %4896 = vmatpush1.bf16.msra.mxu0 %v7175_v16  ;;  %v5193_v16 = vld [vmem:[%s9574_s6] sm:$0x1] }
 0x351   : > { %4897 = vmatprep.subr.bf16.mxu0 %v7280_v2 }
 0x352   : > { %5026 = vmatpush1.bf16.msra.mxu1 %v7176_v60 }
 0x353   : > { %5027 = vmatprep.subr.bf16.mxu1 %v7280_v2 }
 0x354   : > { %4898 = vmatpush1.bf16.msra.mxu0 %v7177_v30 }
 0x355   : > { %4899 = vmatprep.subr.bf16.mxu0 %v7280_v2 }
 0x356   : > { %5028 = vmatpush1.bf16.msra.mxu1 %v7178_v6 }
 0x357   : > { %5029 = vmatprep.subr.bf16.mxu1 %v7280_v2 }
 0x358   : > { %4900 = vmatpush1.bf16.msra.mxu0 %v7179_v19 }
 0x359   : > { %4901 = vmatprep.subr.bf16.mxu0 %v7280_v2 }
 0x35a   : > { %5030 = vmatpush1.bf16.msra.mxu1 %v7180_v22 }
 0x35b   : > { %5031 = vmatprep.subr.bf16.mxu1 %v7280_v2 }
 0x35c   : > { %4902 = vmatpush1.bf16.msra.mxu0 %v7181_v15 }
 0x35d   : > { %4903 = vmatprep.subr.bf16.mxu0 %v7280_v2 }
 0x35e   : > { %5032 = vmatpush1.bf16.msra.mxu1 %v7182_v1  ;;  %v7210_v1 = vld [vmem:[%s9577_s9 + $0x38] sm:$0xff]  }
 0x35f   : > { %5033 = vmatprep.subr.bf16.mxu1 %v7280_v2 }
 0x360   : > { %4904 = vmatpush1.bf16.msra.mxu0 %v7183_v14 }
 0x361   : > { %4905 = vmatprep.subr.bf16.mxu0 %v7280_v2 }
 0x362   : > { %5034 = vmatpush1.bf16.msra.mxu1 %v7184_v46  ;;  %v7211_v46 = vld [vmem:[%s9577_s9 + $0x30] sm:$0xff]  }
 0x363   : > { %5035 = vmatprep.subr.bf16.mxu1 %v7280_v2 }
 0x364   : > { %4906 = vmatpush1.bf16.msra.mxu0 %v7185_v57  ;;  %v7212_v57 = vld [vmem:[%s9577_s9 + $0x28] sm:$0xff]  }
 0x365   : > { %4907 = vmatprep.subr.bf16.mxu0 %v7280_v2 }
 0x366   : > { %5036 = vmatpush1.bf16.msra.mxu1 %v7186_v42  ;;  %v7213_v42 = vld [vmem:[%s9577_s9 + $0x20] sm:$0xff]  }
 0x367   : > { %5049 = vmatprep.subr.bf16.mxu1 %v7280_v2 }
 0x368   : > { %4908 = vmatpush1.bf16.msra.mxu0 %v7187_v38  ;;  %v7214_v38 = vld [vmem:[%s9577_s9 + $0x18] sm:$0xff]  }
 0x369   : > { %4921 = vmatprep.subr.bf16.mxu0 %v7280_v2 }
 0x36a   : > { %5050 = vmatpush2.bf16.msra.mxu1 %v7188_v27  ;;  %v7216_v27 = vld [vmem:[%s9577_s9 + $0x8] sm:$0xff]  }
 0x36b   : > { %5051 = vmatprep.subr.bf16.mxu1 %v7280_v2 }
 0x36c   : > { %4922 = vmatpush2.bf16.msra.mxu0 %v7189_v54  ;;  %v7217_v54 = vld [vmem:[%s9577_s9] sm:$0xff]  }
 0x36d   : > { %4923 = vmatprep.subr.bf16.mxu0 %v7280_v2 }
 0x36e   : > { %5052 = vmatpush2.bf16.msra.mxu1 %v7190_v45  ;;  %v5213_v45 = vld [vmem:[%s9576_s8] sm:$0x1] }
 0x36f   : > { %6465 = vmatprep.subr.bf16.mxu1 %v7281_v40 }
 0x370   : > { %4924 = vmatpush2.bf16.msra.mxu0 %v7191_v41 }
 0x371   : > { %5054 = vmatmul.mubr.bf16.vlgmr.msra.gmra.mxu1 %v4955_v20  ;;  %5152 = vmatprep.subr.bf16.mxu0 %v7280_v2 }
 0x372   : > { %6466 = vmatpush3.bf16.msra.mxu1 %v7202_v12  ;;  %6481 = vmatprep.mubr.msk.bf16.mxu1 %vm7282_vm10, %v7281_v40 }
 0x373   : > { %4926 = vmatmul.mubr.bf16.vlgmr.msra.gmra.mxu0 %v4827_v23  ;;  %6467 = vmatprep.subr.bf16.mxu1 %v7281_v40 }
 0x374   : > { %5153 = vmatpush1.bf16.msra.mxu0 %v7192_v18  ;;  %6422 = vmatprep.mubr.msk.bf16.mxu0 %vm4659_vm0, %v5067_v47 }
 0x375   : > { %5154 = vmatprep.subr.bf16.mxu0 %v7280_v2 }
 0x376   : > { %6468 = vmatpush3.bf16.msra.mxu1 %v7203_v26 }
 0x377   : > { %6469 = vmatprep.subr.bf16.mxu1 %v7281_v40 }
 0x378   : > { %5155 = vmatpush1.bf16.msra.mxu0 %v7193_v48  ;;  %v5320_v48 = vld [vmem:[%s9578_s10] sm:$0x1] }
 0x379   : > { %5156 = vmatprep.subr.bf16.mxu0 %v7280_v2 }
 0x37c   : > { %5157 = vmatpush1.bf16.msra.mxu0 %v7194_v50 }
 0x37d   : > { %5158 = vmatprep.subr.bf16.mxu0 %v7280_v2 }
 0x380   : > { %5159 = vmatpush1.bf16.msra.mxu0 %v7195_v53 }
 0x381   : > { %5160 = vmatprep.subr.bf16.mxu0 %v7280_v2 }
 0x384   : > { %5161 = vmatpush1.bf16.msra.mxu0 %v7196_v44 }
 0x385   : > { %5162 = vmatprep.subr.bf16.mxu0 %v7280_v2 }
 0x388   : > { %5163 = vmatpush1.bf16.msra.mxu0 %v7197_v49 }
 0x389   : > { %5164 = vmatprep.subr.bf16.mxu0 %v7280_v2 }
 0x38c   : > { %5165 = vmatpush1.bf16.msra.mxu0 %v7198_v7 }
 0x38d   : > { %5166 = vmatprep.subr.bf16.mxu0 %v7280_v2 }
 0x390   : > { %5167 = vmatpush1.bf16.msra.mxu0 %v7199_v21 }
 0x391   : > { %5180 = vmatprep.subr.bf16.mxu0 %v7280_v2 }
 0x394   : > { %5181 = vmatpush2.bf16.msra.mxu0 %v7200_v39 }
 0x395   : > { %5182 = vmatprep.subr.bf16.mxu0 %v7280_v2  ;;  %v7204_v2 = vld [vmem:[%s9575_s7 + $0x28] sm:$0xff]  }
 0x396   : > { %6470 = vmatpush3.bf16.msra.mxu1 %v7204_v2 }
 0x397   : > { %6471 = vmatprep.subr.bf16.mxu1 %v7281_v40 }
 0x398   : > { %5183 = vmatpush2.bf16.msra.mxu0 %v7201_v61 }
 0x39a   : > { %6472 = vmatpush3.bf16.msra.mxu1 %v7205_v62 }
 0x39b   : > { %5185 = vmatmul.mubr.bf16.vlgmr.msra.gmra.mxu0 %v5066_v9  ;;  %6473 = vmatprep.subr.bf16.mxu1 %v7281_v40 }
 0x39e   : > { %6474 = vmatpush3.bf16.msra.mxu1 %v7206_v5 }
 0x39f   : > { %6475 = vmatprep.subr.bf16.mxu1 %v7281_v40 }
 0x3a2   : > { %6476 = vmatpush3.bf16.msra.mxu1 %v7207_v32 }
 0x3a3   : > { %6477 = vmatprep.subr.bf16.mxu1 %v7281_v40 }
 0x3a6   : > { %6478 = vmatpush3.bf16.msra.mxu1 %v7208_v52 }
 0x3a7   : > { %6479 = vmatprep.subr.bf16.mxu1 %v7281_v40 }
 0x3aa   : > { %6480 = vmatpush3.bf16.msra.mxu1 %v7209_v37 }
 0x3ab   : > { %6485 = vmatprep.subr.bf16.mxu1 %v7281_v40 }
 0x409   : > { %v4800_v55 = vpop.f32.mrf.mxu1 }
 0x40b   : > { %v4697_v3 = vpop.f32.mrf.mxu0  ;;  %v4802_v34 = vpop.f32.mrf.mxu1 }
 0x40c   : > { %v4801_v0 = vadd.f32 %v4800_v55, %v4697_v3 }
 0x40d   : > { %v4699_v59 = vpop.f32.mrf.mxu0  ;;  %v4803_v43 = vpop.f32.mrf.mxu1 }
 0x40f   : > { %v4700_v24 = vpop.f32.mrf.mxu0  ;;  %v4804_v56 = vpop.f32.mrf.mxu1 }
 0x411   : > { %v4701_v17 = vpop.f32.mrf.mxu0 }
 0x431   : > { %v5055_v36 = vpop.f32.mrf.mxu1 }
 0x433   : > { %v4927_v8 = vpop.f32.mrf.mxu0  ;;  %v5057_v25 = vpop.f32.mrf.mxu1 }
 0x434   : > { %v4933_v11 = vadd.f32 %v4927_v8, %v4801_v0 }
 0x435   : > { %v4929_v28 = vpop.f32.mrf.mxu0  ;;  %v5058_v10 = vpop.f32.mrf.mxu1 }
 0x436   : > { %v5061_v33 = vadd.f32 %v5055_v36, %v4933_v11 }
 0x437   : > { %v4930_v51 = vpop.f32.mrf.mxu0  ;;  %v5059_v4 = vpop.f32.mrf.mxu1 }
 0x439   : > { %v4931_v63 = vpop.f32.mrf.mxu0 }
 0x45b   : > { %v5186_v31 = vpop.f32.mrf.mxu0 }
 0x45c   : > { %v5192_v60 = vadd.f32 %v5186_v31, %v5061_v33 }
 0x45d   : > { %v5188_v30 = vpop.f32.mrf.mxu0 }
 0x45e   : > { %v5194_v6 = vadd.f32 %v5193_v16, %v5192_v60 }
 0x45f   : > { %v5189_v19 = vpop.f32.mrf.mxu0 }
 0x460   : > { %v5195_v22 = vmax.f32 %v5194_v6, 0.0 }
 0x461   : > { %v5190_v15 = vpop.f32.mrf.mxu0 }
 0x462   : > { %v5196_v14 = vpack.c.bf16 %v5195_v22, %v5195_v22 }
 0x464   : > { %6482 = vmatmul.mubr.bf16.vlgmr.msra.gmra.mxu1 %v5196_v14 }
 0x465   : > { %6486 = vmatpush3.bf16.msra.mxu1 %v7210_v1  ;;  %6501 = vmatprep.mubr.msk.bf16.mxu1 %vm7282_vm10, %v7281_v40 }
 0x466   : > { %6487 = vmatprep.subr.bf16.mxu1 %v7281_v40 }
 0x469   : > { %6488 = vmatpush3.bf16.msra.mxu1 %v7211_v46 }
 0x46a   : > { %6489 = vmatprep.subr.bf16.mxu1 %v7281_v40 }
 0x46d   : > { %6490 = vmatpush3.bf16.msra.mxu1 %v7212_v57 }
 0x46e   : > { %6491 = vmatprep.subr.bf16.mxu1 %v7281_v40 }
 0x471   : > { %6492 = vmatpush3.bf16.msra.mxu1 %v7213_v42 }
 0x472   : > { %6493 = vmatprep.subr.bf16.mxu1 %v7281_v40 }
 0x475   : > { %6494 = vmatpush3.bf16.msra.mxu1 %v7214_v38 }
 0x476   : > { %6495 = vmatprep.subr.bf16.mxu1 %v7281_v40 }
 0x479   : > { %6496 = vmatpush3.bf16.msra.mxu1 %v7215_v35 }
 0x47a   : > { %6497 = vmatprep.subr.bf16.mxu1 %v7281_v40 }
 0x47d   : > { %6498 = vmatpush3.bf16.msra.mxu1 %v7216_v27 }
 0x47e   : > { %6499 = vmatprep.subr.bf16.mxu1 %v7281_v40 }
 0x481   : > { %6500 = vmatpush3.bf16.msra.mxu1 %v7217_v54 }
 0x524   : > { %v5296_v13 = vpop.f32.mrf.mxu1 }
 0x525   : > { %v5297_v41 = vadd.f32 %v5296_v13, %v5213_v45 }
 0x526   : > { %v6483_v58 = vpop.f32.mrf.mxu1 }
 0x527   : > { %v5302_v20 = vmax.f32 %v5297_v41, 0.0 }
 0x528   : > { %v5299_v18 = vpop.f32.mrf.mxu1 }
 0x529   : > { %v5303_v23 = vpack.c.bf16 %v5302_v20, %v5302_v20 }
 0x52a   : > { %v6484_v47 = vpop.f32.mrf.mxu1 }
 0x52b   : > { %6502 = vmatmul.mubr.bf16.vlgmr.msra.gmra.mxu1 %v5303_v23 }
 0x5eb   : > { %v5403_v50 = vpop.f32.mrf.mxu1 }
 0x5ec   : > { %v5404_v53 = vadd.f32 %v5403_v50, %v5320_v48 }
 0x5ed   : > { %v6503_v44 = vpop.f32.mrf.mxu1 }
 0x5ee   : > { %5409 = vst [vmem:[%s378_s15] sm:$0x1] %v5404_v53 }
 0x5ef   : > { %v5406_v49 = vpop.f32.mrf.mxu1 }
 0x5f0   : > { %7231 = shalt.err (!%p7228_p3)
}
 0x5f1   : > { %s7232_s19 = scalar_lea.hbm %s9527_s12, 16  ;;  %s7236_s15 = scalar_lea.hbm %s9579_s11, 32 }
 0x5f2   : > { %p7233_p4 = scmp.ne.s32.totalorder %s9527_s12, %s7232_s19  ;;  %p7237_p9 = scmp.lt.s32.totalorder %s9527_s12, %s9579_s11 }
 0x5f3   : > { %p7238_p10 = scmp.lt.s32.totalorder %s7236_s15, %s7232_s19 }
 0x5f4   : > { %p7234_p7 = pnand %p7233_p4, %p7382_p5 }
 0x5f5   : > { %p7239_p11 = por %p7238_p10, %p7237_p9 }
 0x5f6   : > { %p7235_p8 = pneg %p7234_p7 }
 0x5f8   : > { %p7240_p12 = pnand %p7239_p11, %p7235_p8 }
 0x5fa   : > { %7243 = shalt.err (!%p7240_p12)
}
 0x5fb   : > { %6505 = dma.vmem_to_hbm [thread:$0]  (%p7382_p5), %s9529_s25, 16, %s9527_s12, %s5411_s16   ;;  %v6504_v7 = vpop.f32.mrf.mxu1 }
 0x5fc PF: > { %p6511_p13 = scmp.ge.s32.totalorder %s7278_s20, 2  ;;  %s5435_s14 = sand.u32 1, %s7266_s17  }
 0x5fd   : > { %s5436_s21 = scalar_lea.sflag [#allocation4], %s5435_s14 }
 0x5fe   : > { %p6508_p0 = pnand %p6511_p13, %p7386_p6 }
 0x600   : > { %p6509_p1 = pneg %p6508_p0 }
 0x602   : > { %7261 = dma.done.wait (%p6509_p1), %s5436_s21, 16  }
 0x603   : > { %7263 = vsyncadd (%p6509_p1), %s5436_s21, 4294967280  ;;  %s9693_s26 = sld [smem:[#allocation6_spill]]  ;;  %p21_p2 = scmp.ge.s32.totalorder %s7369_s23, 4  }
 0x604   : > { %s9694_s19 = sld [smem:[#allocation7_spill]]  ;;  %s9695_s17 = smov %s7270_s18 }
 0x605   : > { %s9697_s20 = smov %s7369_s23  ;;  %23 = sbr.rel (!%p21_p2) target bundleno = 3 (0x3), region = 121 }
 0x609   : > { %s9696_s18 = smov %s9693_s26 }
 0x60a   :  { %5440 = vsyncpa [#allocation4], 1 }
 0x60b   :  { %5442 = vsyncpa [#allocation4 + $0x1], 1 }

</bundles_post_ra>
